<compile_context>
chip_gen: v6e
topology: v6e:2x2x1
jax: 0.10.0
libtpu: 0.0.40
codegen_flags: <defaults>
</compile_context>

<pallas_src>
import functools
import math

import jax
import jax.numpy as jnp
from jax import lax
from jax.experimental import pallas as pl
from jax.experimental.pallas import tpu as pltpu


_LANE = 128      # vreg lane width
_SUBLANE = 8     # f32 vreg sublane count


def _round_up(n, m):
    return ((n + m - 1) // m) * m


# ----------------------------------------------------------------------------
# Fused kernel: masked GRU encoder + LinearLogits classifier + losses.
# One trajectory stream per grid step.
# ----------------------------------------------------------------------------
def fused_gru_classifier_kernel(x_ref, len_ref, lab_ref,
                                wi_ref, bi_ref, wh_ref, bh_ref,
                                w1_ref, b1_ref, w2_ref, b2_ref,
                                logits_ref, preds_ref, ce_ref, went_ref,
                                *, T, B, entropy_stream, entropy_num_classes):
    # x_ref   [T*Bp, D]  time-major, batch padded to Bp (multiple of 8)
    # len_ref [Bp, 1]    int32 valid lengths (0 on padded batch rows)
    # lab_ref [Bp, 1]    int32 labels
    # GRU weights: gates r|z|n each padded to a 128-lane group (offsets 0/Hp/2Hp)
    # Classifier:  hidden and class axes padded to 128 lanes (pad bias = -1e30)
    TB, _ = x_ref.shape
    Hp = wh_ref.shape[0]
    Bp = TB // T

    # ---- 1. hoisted input projection for ALL timesteps (one MXU call) -------
    gx = (jnp.dot(x_ref[...], wi_ref[...], preferred_element_type=jnp.float32)
          + bi_ref[...])                                            # [T*Bp, 3*Hp]

    wh = wh_ref[...]
    bh = bh_ref[...]
    lengths = len_ref[...]                                          # [Bp, 1]

    # ---- 2. masked GRU recurrence: one [Bp,Hp]@[Hp,3Hp] matmul per step ------
    # All gate slices are 128-lane aligned and the per-step gx slice is a
    # sublane-aligned leading-axis slice -> no relayout on the serial chain.
    # Padded hidden lanes and padded batch rows provably stay at 0.
    h = jnp.zeros((Bp, Hp), jnp.float32)
    for t in range(T):                       # T is small & compile-time known
        gx_t = gx[t * Bp:(t + 1) * Bp, :]                           # [Bp, 3*Hp]
        gh = jnp.dot(h, wh, preferred_element_type=jnp.float32) + bh
        r = jax.nn.sigmoid(gx_t[:, 0:Hp] + gh[:, 0:Hp])
        z = jax.nn.sigmoid(gx_t[:, Hp:2 * Hp] + gh[:, Hp:2 * Hp])
        # b_hn stays inside r * (.) to match PyTorch GRU gate ordering.
        n = jnp.tanh(gx_t[:, 2 * Hp:3 * Hp] + r * gh[:, 2 * Hp:3 * Hp])
        h_new = (1.0 - z) * n + z * h
        h = jnp.where(lengths > t, h_new, h)     # hold state on padded steps

    # ---- 3. LinearLogits classifier + CE + adaptive-entropy loss ------------
    hid = jnp.maximum(
        jnp.dot(h, w1_ref[...], preferred_element_type=jnp.float32) + b1_ref[...],
        0.0)
    logits = (jnp.dot(hid, w2_ref[...], preferred_element_type=jnp.float32)
              + b2_ref[...])                                        # [Bp, Cp]
    logits_ref[...] = logits

    Cp = logits.shape[1]
    cls_idx = lax.broadcasted_iota(jnp.int32, (Bp, Cp), 1)
    maxv = jnp.max(logits, axis=1, keepdims=True)                   # [Bp, 1]
    # first-occurrence argmax (min index among exact-max ties)
    preds_ref[...] = jnp.min(jnp.where(logits == maxv, cls_idx, Cp),
                             axis=1, keepdims=True)

    # padded batch rows must not contribute to the batch means
    valid = (lax.broadcasted_iota(jnp.int32, (Bp, 1), 0) < B).astype(jnp.float32)

    # mean cross-entropy; padded class lanes carry bias -1e30 so exp underflows
    # to exactly 0 and they contribute nothing to the partition sum.
    labels = lab_ref[...]                                           # [Bp, 1]
    onehot = (cls_idx == labels).astype(jnp.float32)
    expx = jnp.exp(logits - maxv)
    sumexp = jnp.sum(expx, axis=1, keepdims=True)                   # [Bp, 1]
    lse = jnp.log(sumexp) + maxv
    tgt_logit = jnp.sum(onehot * logits, axis=1, keepdims=True)
    ce_ref[...] = jnp.sum(valid * (lse - tgt_logit),
                          axis=0, keepdims=True) * (1.0 / B)

    # adaptive entropy loss: computed ONLY for the stream that consumes it
    # (the target stream's entropy is discarded by the PyTorch forward).
    went_ref[...] = jnp.zeros_like(went_ref)
    if entropy_stream >= 0:
        @pl.when(pl.program_id(0) == entropy_stream)
        def _():
            probs = expx / sumexp
            entropy = -jnp.sum(probs * jnp.log(probs + 1e-10),
                               axis=1, keepdims=True)               # [Bp, 1]
            max_entropy = math.log(entropy_num_classes)              # static
            went_ref[...] = jnp.sum(valid * (entropy / max_entropy) * entropy,
                                    axis=0, keepdims=True) * (1.0 / B)


# ----------------------------------------------------------------------------
# Wrapper: run S streams (shared GRU, per-stream classifier) in ONE pallas_call.
# ----------------------------------------------------------------------------
def run_streams(trajs_list, lengths_list, labels_list, gru, cls,
                *, entropy_stream=-1, entropy_num_classes=1):
    S = len(trajs_list)
    B, T, D = trajs_list[0].shape
    Bp = _round_up(B, _SUBLANE)
    Hp = gru["wh"].shape[0]
    Gp = gru["wh"].shape[1]
    Cp = cls["w2"].shape[2]

    # Wrapper-side layout prep (cheap XLA ops, off the serial in-kernel path):
    # time-major, batch padded to a full sublane group, flattened to [T*Bp, D].
    x = jnp.stack([t.astype(jnp.float32) for t in trajs_list])       # [S,B,T,D]
    x = jnp.transpose(x, (0, 2, 1, 3))                                # [S,T,B,D]
    x = jnp.pad(x, ((0, 0), (0, 0), (0, Bp - B), (0, 0)))
    x = x.reshape(S, T * Bp, D)

    lens = jnp.stack([jnp.asarray(l, jnp.int32).reshape(B) for l in lengths_list])
    lens = jnp.pad(lens, ((0, 0), (0, Bp - B)))[..., None]            # [S,Bp,1]
    labs = jnp.stack([jnp.asarray(l, jnp.int32).reshape(B) for l in labels_list])
    labs = jnp.pad(labs, ((0, 0), (0, Bp - B)))[..., None]            # [S,Bp,1]

    kernel = functools.partial(fused_gru_classifier_kernel,
                               T=T, B=B,
                               entropy_stream=entropy_stream,
                               entropy_num_classes=entropy_num_classes)

    stream_map = lambda s: (s, 0, 0)      # per-stream blocks
    shared_map = lambda s: (0, 0)         # shared GRU weights: DMA'd once

    in_specs = [
        pl.BlockSpec((None, T * Bp, D), stream_map),   # x
        pl.BlockSpec((None, Bp, 1), stream_map),       # lengths
        pl.BlockSpec((None, Bp, 1), stream_map),       # labels
        pl.BlockSpec((D, Gp), shared_map),             # wi
        pl.BlockSpec((1, Gp), shared_map),             # bi
        pl.BlockSpec((Hp, Gp), shared_map),            # wh
        pl.BlockSpec((1, Gp), shared_map),             # bh
        pl.BlockSpec((None, Hp, Hp), stream_map),      # w1 (per-stream classifier)
        pl.BlockSpec((None, 1, Hp), stream_map),       # b1
        pl.BlockSpec((None, Hp, Cp), stream_map),      # w2
        pl.BlockSpec((None, 1, Cp), stream_map),       # b2
    ]
    out_shape = (jax.ShapeDtypeStruct((S, Bp, Cp), jnp.float32),      # logits
                 jax.ShapeDtypeStruct((S, Bp, 1), jnp.int32),         # preds
                 jax.ShapeDtypeStruct((S, 1, 1), jnp.float32),        # ce loss
                 jax.ShapeDtypeStruct((S, 1, 1), jnp.float32))        # entropy loss
    out_specs = (pl.BlockSpec((None, Bp, Cp), stream_map),
                 pl.BlockSpec((None, Bp, 1), stream_map),
                 pl.BlockSpec((None, 1, 1), stream_map),
                 pl.BlockSpec((None, 1, 1), stream_map))

    logits, preds, ce, went = pl.pallas_call(
        kernel,
        grid=(S,),
        in_specs=in_specs,
        out_specs=out_specs,
        out_shape=out_shape,
        compiler_params=pltpu.CompilerParams(
            # one stream per TensorCore on v7x; single launch everywhere
            dimension_semantics=("parallel",)),
    )(x, lens, labs,
      gru["wi"], gru["bi"], gru["wh"], gru["bh"],
      cls["w1"], cls["b1"], cls["w2"], cls["b2"])
    return logits, preds, ce, went


# ----------------------------------------------------------------------------
# Parameter init: weights pre-packed ONCE into the fused / 128-lane-padded
# layout (and pre-stacked per mode), so the forward pass does no weight prep.
# ----------------------------------------------------------------------------
def init_params(key, total_dim, hidden_dim, source_num_classes, target_num_classes):
    keys = iter(jax.random.split(key, 32))

    def u(shape, fan):
        bound = 1.0 / float(fan) ** 0.5
        return jax.random.uniform(next(keys), shape, jnp.float32, -bound, bound)

    D = total_dim
    H = hidden_dim
    Hp = _round_up(H, _LANE)          # hidden axis / each gate padded to 128 lanes
    Gp = 3 * Hp                       # gates r|z|n at lane offsets 0, Hp, 2*Hp
    Cp = _round_up(max(source_num_classes, target_num_classes), _LANE)

    def pack_gates(rows, real_rows):
        w = jnp.zeros((rows, Gp), jnp.float32)
        for g in range(3):
            w = w.at[:real_rows, g * Hp:g * Hp + H].set(u((real_rows, H), H))
        return w

    gru = {
        "wi": pack_gates(D, D),        # [D, Gp]   (W_ir | W_iz | W_in)
        "bi": pack_gates(1, 1),        # [1, Gp]
        "wh": pack_gates(Hp, H),       # [Hp, Gp]  (W_hr | W_hz | W_hn)
        "bh": pack_gates(1, 1),        # [1, Gp]
    }

    def classifier(num_classes):
        C = num_classes
        w1 = jnp.zeros((Hp, Hp), jnp.float32).at[:H, :H].set(u((H, H), H))
        b1 = jnp.zeros((1, Hp), jnp.float32).at[:, :H].set(u((1, H), H))
        w2 = jnp.zeros((Hp, Cp), jnp.float32).at[:H, :C].set(u((H, C), H))
        # padded class lanes get bias -1e30 so they never win argmax and
        # contribute exactly 0 to softmax / CE / entropy (keep this f32).
        b2 = jnp.full((1, Cp), -1e30, jnp.float32).at[:, :C].set(u((1, C), H))
        return {"w1": w1, "b1": b1, "w2": w2, "b2": b2}

    src = classifier(source_num_classes)
    tgt = classifier(target_num_classes)

    def stack_cls(cls_list):
        return {k: jnp.stack([c[k] for c in cls_list])
                for k in ("w1", "b1", "w2", "b2")}

    return {
        "gru": gru,
        "cls_pretrain": stack_cls([src, tgt]),   # stream 0 = source, 1 = target
        "cls_source": stack_cls([src]),
        "cls_target": stack_cls([tgt]),
        "source_num_classes": source_num_classes,
        "target_num_classes": target_num_classes,
    }


# ----------------------------------------------------------------------------
# TwoStageDualStreamModel.forward equivalent
# ----------------------------------------------------------------------------
def two_stage_dual_stream_forward(params,
                                  source_trajs, source_labels, source_length, source_mask,
                                  target_trajs, target_labels, target_length, target_mask,
                                  entropy_lambad=0.1, mode="pretrain"):
    # Masks are assumed to be prefix masks (valid steps contiguous from t=0), so
    # the per-sample lengths fully determine masking (pack_padded semantics).
    del source_mask, target_mask
    gru = params["gru"]
    if mode == "pretrain":
        if source_trajs.shape == target_trajs.shape:
            # fused path: both streams in ONE pallas_call (grid=(2,))
            _, _, ce, went = run_streams(
                [source_trajs, target_trajs],
                [source_length, target_length],
                [source_labels, target_labels],
                gru, params["cls_pretrain"],
                entropy_stream=0,
                entropy_num_classes=params["source_num_classes"])
            src_ce, tgt_ce, src_went = ce[0, 0, 0], ce[1, 0, 0], went[0, 0, 0]
        else:
            # shapes differ across domains -> one launch per stream
            _, _, ce_s, went_s = run_streams(
                [source_trajs], [source_length], [source_labels],
                gru, params["cls_source"],
                entropy_stream=0,
                entropy_num_classes=params["source_num_classes"])
            _, _, ce_t, _ = run_streams(
                [target_trajs], [target_length], [target_labels],
                gru, params["cls_target"])
            src_ce, tgt_ce, src_went = ce_s[0, 0, 0], ce_t[0, 0, 0], went_s[0, 0, 0]
        return 1.0 * src_ce + entropy_lambad * src_went + 1.0 * tgt_ce
    elif mode == "finetune":
        B = target_trajs.shape[0]
        C = params["target_num_classes"]
        logits, preds, ce, _ = run_streams(
            [target_trajs], [target_length], [target_labels],
            gru, params["cls_target"])
        return logits[0, :B, :C], preds[0, :B, 0], ce[0, 0, 0]
    else:
        raise ValueError(f"unknown mode {mode!r}")


if __name__ == "__main__":
    key = jax.random.PRNGKey(0)
    B, T = 2, 8
    type_dim, geo_dim, time_dim = 6, 5, 5
    total_dim = type_dim + geo_dim + time_dim        # 16
    hidden_dim = 32
    source_num_classes, target_num_classes = 10, 8

    k_params, k_data = jax.random.split(key)
    params = init_params(k_params, total_dim, hidden_dim,
                         source_num_classes, target_num_classes)

    ks = jax.random.split(k_data, 4)
    source_trajs = jax.random.normal(ks[0], (B, T, total_dim), jnp.float32)
    target_trajs = jax.random.normal(ks[1], (B, T, total_dim), jnp.float32)
    source_labels = jax.random.randint(ks[2], (B,), 0, source_num_classes)
    target_labels = jax.random.randint(ks[3], (B,), 0, target_num_classes)

    source_length = jnp.array([T, T - 3], jnp.int32)
    target_length = jnp.array([T - 1, T], jnp.int32)
    t_idx = jnp.arange(T)[None, :]
    source_mask = (t_idx < source_length[:, None]).astype(jnp.float32)
    target_mask = (t_idx < target_length[:, None]).astype(jnp.float32)

    loss = two_stage_dual_stream_forward(
        params, source_trajs, source_labels, source_length, source_mask,
        target_trajs, target_labels, target_length, target_mask,
        entropy_lambad=0.1, mode="pretrain")

    logits, preds, ft_loss = two_stage_dual_stream_forward(
        params, source_trajs, source_labels, source_length, source_mask,
        target_trajs, target_labels, target_length, target_mask,
        mode="finetune")

    jax.block_until_ready((loss, logits, preds, ft_loss))
    print("KERNEL_OK")
</pallas_src>

<mosaic_0001>
module attributes {stable_mosaic.version = 11 : i64} {
  func.func @fused_gru_classifier_kernel(%arg0: i32, %arg1: memref<1x64x16xf32, #tpu.memory_space<vmem>>, %arg2: memref<1x8x1xi32, #tpu.memory_space<vmem>>, %arg3: memref<1x8x1xi32, #tpu.memory_space<vmem>>, %arg4: memref<16x384xf32, #tpu.memory_space<vmem>>, %arg5: memref<1x384xf32, #tpu.memory_space<vmem>>, %arg6: memref<128x384xf32, #tpu.memory_space<vmem>>, %arg7: memref<1x384xf32, #tpu.memory_space<vmem>>, %arg8: memref<1x128x128xf32, #tpu.memory_space<vmem>>, %arg9: memref<1x1x128xf32, #tpu.memory_space<vmem>>, %arg10: memref<1x128x128xf32, #tpu.memory_space<vmem>>, %arg11: memref<1x1x128xf32, #tpu.memory_space<vmem>>, %arg12: memref<1x8x128xf32, #tpu.memory_space<vmem>>, %arg13: memref<1x8x1xi32, #tpu.memory_space<vmem>>, %arg14: memref<1x1x1xf32, #tpu.memory_space<vmem>>, %arg15: memref<1x1x1xf32, #tpu.memory_space<vmem>>) attributes {dimension_semantics = [#tpu.dimension_semantics<parallel>], iteration_bounds = array<i64: 2>, scalar_prefetch = 0 : i64, scratch_operands = 0 : i64, tpu.core_type = #tpu.core_type<tc>, window_params = [{transform_indices = @transform_0, window_bounds = array<i64: 1, 64, 16>}, {transform_indices = @transform_1, window_bounds = array<i64: 1, 8, 1>}, {transform_indices = @transform_2, window_bounds = array<i64: 1, 8, 1>}, {pipeline_mode = #tpu.pipeline_mode<synchronous>, transform_indices = @transform_3, window_bounds = array<i64: 16, 384>}, {pipeline_mode = #tpu.pipeline_mode<synchronous>, transform_indices = @transform_4, window_bounds = array<i64: 1, 384>}, {pipeline_mode = #tpu.pipeline_mode<synchronous>, transform_indices = @transform_5, window_bounds = array<i64: 128, 384>}, {pipeline_mode = #tpu.pipeline_mode<synchronous>, transform_indices = @transform_6, window_bounds = array<i64: 1, 384>}, {transform_indices = @transform_7, window_bounds = array<i64: 1, 128, 128>}, {transform_indices = @transform_8, window_bounds = array<i64: 1, 1, 128>}, {transform_indices = @transform_9, window_bounds = array<i64: 1, 128, 128>}, {transform_indices = @transform_10, window_bounds = array<i64: 1, 1, 128>}, {transform_indices = @transform_11, window_bounds = array<i64: 1, 8, 128>}, {transform_indices = @transform_12, window_bounds = array<i64: 1, 8, 1>}, {transform_indices = @transform_13, window_bounds = array<i64: 1, 1, 1>}, {transform_indices = @transform_14, window_bounds = array<i64: 1, 1, 1>}]} {
    %c0 = arith.constant 0 : index
    %c0_0 = arith.constant 0 : index
    %c0_1 = arith.constant 0 : index
    %0 = vector.load %arg1[%c0, %c0_0, %c0_1] : memref<1x64x16xf32, #tpu.memory_space<vmem>>, vector<1x64x16xf32>
    %1 = vector.shape_cast %0 : vector<1x64x16xf32> to vector<64x16xf32>
    %c0_2 = arith.constant 0 : index
    %c0_3 = arith.constant 0 : index
    %2 = vector.load %arg4[%c0_2, %c0_3] : memref<16x384xf32, #tpu.memory_space<vmem>>, vector<16x384xf32>
    %cst = arith.constant dense<0.000000e+00> : vector<64x384xf32>
    %3 = tpu.matmul %1, %2, %cst {dimension_numbers = #tpu.dot_dimension_numbers<[1], [0], [0], [1], [0, 0, 1, 1], [], []>} : vector<64x16xf32>, vector<16x384xf32>, vector<64x384xf32> -> vector<64x384xf32>
    %c0_4 = arith.constant 0 : index
    %c0_5 = arith.constant 0 : index
    %4 = vector.load %arg5[%c0_4, %c0_5] : memref<1x384xf32, #tpu.memory_space<vmem>>, vector<1x384xf32>
    %5 = vector.broadcast %4 : vector<1x384xf32> to vector<64x384xf32>
    %6 = arith.addf %3, %5 : vector<64x384xf32>
    %c0_6 = arith.constant 0 : index
    %c0_7 = arith.constant 0 : index
    %7 = vector.load %arg6[%c0_6, %c0_7] : memref<128x384xf32, #tpu.memory_space<vmem>>, vector<128x384xf32>
    %c0_8 = arith.constant 0 : index
    %c0_9 = arith.constant 0 : index
    %8 = vector.load %arg7[%c0_8, %c0_9] : memref<1x384xf32, #tpu.memory_space<vmem>>, vector<1x384xf32>
    %c0_10 = arith.constant 0 : index
    %c0_11 = arith.constant 0 : index
    %c0_12 = arith.constant 0 : index
    %9 = vector.load %arg2[%c0_10, %c0_11, %c0_12] : memref<1x8x1xi32, #tpu.memory_space<vmem>>, vector<1x8x1xi32>
    %10 = vector.shape_cast %9 : vector<1x8x1xi32> to vector<8x1xi32>
    %cst_13 = arith.constant 0.000000e+00 : f32
    %11 = vector.broadcast %cst_13 : f32 to vector<8x128xf32>
    %12 = vector.extract_strided_slice %6 {offsets = [0, 0], sizes = [8, 384], strides = [1, 1]} : vector<64x384xf32> to vector<8x384xf32>
    %cst_14 = arith.constant dense<0.000000e+00> : vector<8x384xf32>
    %13 = tpu.matmul %11, %7, %cst_14 {dimension_numbers = #tpu.dot_dimension_numbers<[1], [0], [0], [1], [0, 0, 1, 1], [], []>} : vector<8x128xf32>, vector<128x384xf32>, vector<8x384xf32> -> vector<8x384xf32>
    %14 = vector.broadcast %8 : vector<1x384xf32> to vector<8x384xf32>
    %15 = arith.addf %13, %14 : vector<8x384xf32>
    %16 = vector.extract_strided_slice %12 {offsets = [0, 0], sizes = [8, 128], strides = [1, 1]} : vector<8x384xf32> to vector<8x128xf32>
    %17 = vector.extract_strided_slice %15 {offsets = [0, 0], sizes = [8, 128], strides = [1, 1]} : vector<8x384xf32> to vector<8x128xf32>
    %18 = arith.addf %16, %17 : vector<8x128xf32>
    %19 = arith.negf %18 : vector<8x128xf32>
    %20 = math.exp %19 : vector<8x128xf32>
    %cst_15 = arith.constant 1.000000e+00 : f32
    %21 = vector.broadcast %cst_15 : f32 to vector<8x128xf32>
    %22 = arith.addf %21, %20 : vector<8x128xf32>
    %23 = arith.divf %21, %22 : vector<8x128xf32>
    %24 = vector.extract_strided_slice %12 {offsets = [0, 128], sizes = [8, 128], strides = [1, 1]} : vector<8x384xf32> to vector<8x128xf32>
    %25 = vector.extract_strided_slice %15 {offsets = [0, 128], sizes = [8, 128], strides = [1, 1]} : vector<8x384xf32> to vector<8x128xf32>
    %26 = arith.addf %24, %25 : vector<8x128xf32>
    %27 = arith.negf %26 : vector<8x128xf32>
    %28 = math.exp %27 : vector<8x128xf32>
    %cst_16 = arith.constant 1.000000e+00 : f32
    %29 = vector.broadcast %cst_16 : f32 to vector<8x128xf32>
    %30 = arith.addf %29, %28 : vector<8x128xf32>
    %31 = arith.divf %29, %30 : vector<8x128xf32>
    %32 = vector.extract_strided_slice %12 {offsets = [0, 256], sizes = [8, 128], strides = [1, 1]} : vector<8x384xf32> to vector<8x128xf32>
    %33 = vector.extract_strided_slice %15 {offsets = [0, 256], sizes = [8, 128], strides = [1, 1]} : vector<8x384xf32> to vector<8x128xf32>
    %34 = arith.mulf %23, %33 : vector<8x128xf32>
    %35 = arith.addf %32, %34 : vector<8x128xf32>
    %36 = math.tanh %35 : vector<8x128xf32>
    %cst_17 = arith.constant 1.000000e+00 : f32
    %37 = vector.broadcast %cst_17 : f32 to vector<8x128xf32>
    %38 = arith.subf %37, %31 : vector<8x128xf32>
    %39 = arith.mulf %38, %36 : vector<8x128xf32>
    %40 = arith.mulf %31, %11 : vector<8x128xf32>
    %41 = arith.addf %39, %40 : vector<8x128xf32>
    %c0_i32 = arith.constant 0 : i32
    %42 = vector.broadcast %c0_i32 : i32 to vector<8x1xi32>
    %43 = arith.cmpi sgt, %10, %42 : vector<8x1xi32>
    %44 = vector.shape_cast %43 : vector<8x1xi1> to vector<8x1xi1>
    %45 = vector.broadcast %44 : vector<8x1xi1> to vector<8x128xi1>
    %46 = arith.select %45, %41, %11 : vector<8x128xi1>, vector<8x128xf32>
    %47 = vector.extract_strided_slice %6 {offsets = [8, 0], sizes = [8, 384], strides = [1, 1]} : vector<64x384xf32> to vector<8x384xf32>
    %cst_18 = arith.constant dense<0.000000e+00> : vector<8x384xf32>
    %48 = tpu.matmul %46, %7, %cst_18 {dimension_numbers = #tpu.dot_dimension_numbers<[1], [0], [0], [1], [0, 0, 1, 1], [], []>} : vector<8x128xf32>, vector<128x384xf32>, vector<8x384xf32> -> vector<8x384xf32>
    %49 = vector.broadcast %8 : vector<1x384xf32> to vector<8x384xf32>
    %50 = arith.addf %48, %49 : vector<8x384xf32>
    %51 = vector.extract_strided_slice %47 {offsets = [0, 0], sizes = [8, 128], strides = [1, 1]} : vector<8x384xf32> to vector<8x128xf32>
    %52 = vector.extract_strided_slice %50 {offsets = [0, 0], sizes = [8, 128], strides = [1, 1]} : vector<8x384xf32> to vector<8x128xf32>
    %53 = arith.addf %51, %52 : vector<8x128xf32>
    %54 = arith.negf %53 : vector<8x128xf32>
    %55 = math.exp %54 : vector<8x128xf32>
    %cst_19 = arith.constant 1.000000e+00 : f32
    %56 = vector.broadcast %cst_19 : f32 to vector<8x128xf32>
    %57 = arith.addf %56, %55 : vector<8x128xf32>
    %58 = arith.divf %56, %57 : vector<8x128xf32>
    %59 = vector.extract_strided_slice %47 {offsets = [0, 128], sizes = [8, 128], strides = [1, 1]} : vector<8x384xf32> to vector<8x128xf32>
    %60 = vector.extract_strided_slice %50 {offsets = [0, 128], sizes = [8, 128], strides = [1, 1]} : vector<8x384xf32> to vector<8x128xf32>
    %61 = arith.addf %59, %60 : vector<8x128xf32>
    %62 = arith.negf %61 : vector<8x128xf32>
    %63 = math.exp %62 : vector<8x128xf32>
    %cst_20 = arith.constant 1.000000e+00 : f32
    %64 = vector.broadcast %cst_20 : f32 to vector<8x128xf32>
    %65 = arith.addf %64, %63 : vector<8x128xf32>
    %66 = arith.divf %64, %65 : vector<8x128xf32>
    %67 = vector.extract_strided_slice %47 {offsets = [0, 256], sizes = [8, 128], strides = [1, 1]} : vector<8x384xf32> to vector<8x128xf32>
    %68 = vector.extract_strided_slice %50 {offsets = [0, 256], sizes = [8, 128], strides = [1, 1]} : vector<8x384xf32> to vector<8x128xf32>
    %69 = arith.mulf %58, %68 : vector<8x128xf32>
    %70 = arith.addf %67, %69 : vector<8x128xf32>
    %71 = math.tanh %70 : vector<8x128xf32>
    %cst_21 = arith.constant 1.000000e+00 : f32
    %72 = vector.broadcast %cst_21 : f32 to vector<8x128xf32>
    %73 = arith.subf %72, %66 : vector<8x128xf32>
    %74 = arith.mulf %73, %71 : vector<8x128xf32>
    %75 = arith.mulf %66, %46 : vector<8x128xf32>
    %76 = arith.addf %74, %75 : vector<8x128xf32>
    %c1_i32 = arith.constant 1 : i32
    %77 = vector.broadcast %c1_i32 : i32 to vector<8x1xi32>
    %78 = arith.cmpi sgt, %10, %77 : vector<8x1xi32>
    %79 = vector.shape_cast %78 : vector<8x1xi1> to vector<8x1xi1>
    %80 = vector.broadcast %79 : vector<8x1xi1> to vector<8x128xi1>
    %81 = arith.select %80, %76, %46 : vector<8x128xi1>, vector<8x128xf32>
    %82 = vector.extract_strided_slice %6 {offsets = [16, 0], sizes = [8, 384], strides = [1, 1]} : vector<64x384xf32> to vector<8x384xf32>
    %cst_22 = arith.constant dense<0.000000e+00> : vector<8x384xf32>
    %83 = tpu.matmul %81, %7, %cst_22 {dimension_numbers = #tpu.dot_dimension_numbers<[1], [0], [0], [1], [0, 0, 1, 1], [], []>} : vector<8x128xf32>, vector<128x384xf32>, vector<8x384xf32> -> vector<8x384xf32>
    %84 = vector.broadcast %8 : vector<1x384xf32> to vector<8x384xf32>
    %85 = arith.addf %83, %84 : vector<8x384xf32>
    %86 = vector.extract_strided_slice %82 {offsets = [0, 0], sizes = [8, 128], strides = [1, 1]} : vector<8x384xf32> to vector<8x128xf32>
    %87 = vector.extract_strided_slice %85 {offsets = [0, 0], sizes = [8, 128], strides = [1, 1]} : vector<8x384xf32> to vector<8x128xf32>
    %88 = arith.addf %86, %87 : vector<8x128xf32>
    %89 = arith.negf %88 : vector<8x128xf32>
    %90 = math.exp %89 : vector<8x128xf32>
    %cst_23 = arith.constant 1.000000e+00 : f32
    %91 = vector.broadcast %cst_23 : f32 to vector<8x128xf32>
    %92 = arith.addf %91, %90 : vector<8x128xf32>
    %93 = arith.divf %91, %92 : vector<8x128xf32>
    %94 = vector.extract_strided_slice %82 {offsets = [0, 128], sizes = [8, 128], strides = [1, 1]} : vector<8x384xf32> to vector<8x128xf32>
    %95 = vector.extract_strided_slice %85 {offsets = [0, 128], sizes = [8, 128], strides = [1, 1]} : vector<8x384xf32> to vector<8x128xf32>
    %96 = arith.addf %94, %95 : vector<8x128xf32>
    %97 = arith.negf %96 : vector<8x128xf32>
    %98 = math.exp %97 : vector<8x128xf32>
    %cst_24 = arith.constant 1.000000e+00 : f32
    %99 = vector.broadcast %cst_24 : f32 to vector<8x128xf32>
    %100 = arith.addf %99, %98 : vector<8x128xf32>
    %101 = arith.divf %99, %100 : vector<8x128xf32>
    %102 = vector.extract_strided_slice %82 {offsets = [0, 256], sizes = [8, 128], strides = [1, 1]} : vector<8x384xf32> to vector<8x128xf32>
    %103 = vector.extract_strided_slice %85 {offsets = [0, 256], sizes = [8, 128], strides = [1, 1]} : vector<8x384xf32> to vector<8x128xf32>
    %104 = arith.mulf %93, %103 : vector<8x128xf32>
    %105 = arith.addf %102, %104 : vector<8x128xf32>
    %106 = math.tanh %105 : vector<8x128xf32>
    %cst_25 = arith.constant 1.000000e+00 : f32
    %107 = vector.broadcast %cst_25 : f32 to vector<8x128xf32>
    %108 = arith.subf %107, %101 : vector<8x128xf32>
    %109 = arith.mulf %108, %106 : vector<8x128xf32>
    %110 = arith.mulf %101, %81 : vector<8x128xf32>
    %111 = arith.addf %109, %110 : vector<8x128xf32>
    %c2_i32 = arith.constant 2 : i32
    %112 = vector.broadcast %c2_i32 : i32 to vector<8x1xi32>
    %113 = arith.cmpi sgt, %10, %112 : vector<8x1xi32>
    %114 = vector.shape_cast %113 : vector<8x1xi1> to vector<8x1xi1>
    %115 = vector.broadcast %114 : vector<8x1xi1> to vector<8x128xi1>
    %116 = arith.select %115, %111, %81 : vector<8x128xi1>, vector<8x128xf32>
    %117 = vector.extract_strided_slice %6 {offsets = [24, 0], sizes = [8, 384], strides = [1, 1]} : vector<64x384xf32> to vector<8x384xf32>
    %cst_26 = arith.constant dense<0.000000e+00> : vector<8x384xf32>
    %118 = tpu.matmul %116, %7, %cst_26 {dimension_numbers = #tpu.dot_dimension_numbers<[1], [0], [0], [1], [0, 0, 1, 1], [], []>} : vector<8x128xf32>, vector<128x384xf32>, vector<8x384xf32> -> vector<8x384xf32>
    %119 = vector.broadcast %8 : vector<1x384xf32> to vector<8x384xf32>
    %120 = arith.addf %118, %119 : vector<8x384xf32>
    %121 = vector.extract_strided_slice %117 {offsets = [0, 0], sizes = [8, 128], strides = [1, 1]} : vector<8x384xf32> to vector<8x128xf32>
    %122 = vector.extract_strided_slice %120 {offsets = [0, 0], sizes = [8, 128], strides = [1, 1]} : vector<8x384xf32> to vector<8x128xf32>
    %123 = arith.addf %121, %122 : vector<8x128xf32>
    %124 = arith.negf %123 : vector<8x128xf32>
    %125 = math.exp %124 : vector<8x128xf32>
    %cst_27 = arith.constant 1.000000e+00 : f32
    %126 = vector.broadcast %cst_27 : f32 to vector<8x128xf32>
    %127 = arith.addf %126, %125 : vector<8x128xf32>
    %128 = arith.divf %126, %127 : vector<8x128xf32>
    %129 = vector.extract_strided_slice %117 {offsets = [0, 128], sizes = [8, 128], strides = [1, 1]} : vector<8x384xf32> to vector<8x128xf32>
    %130 = vector.extract_strided_slice %120 {offsets = [0, 128], sizes = [8, 128], strides = [1, 1]} : vector<8x384xf32> to vector<8x128xf32>
    %131 = arith.addf %129, %130 : vector<8x128xf32>
    %132 = arith.negf %131 : vector<8x128xf32>
    %133 = math.exp %132 : vector<8x128xf32>
    %cst_28 = arith.constant 1.000000e+00 : f32
    %134 = vector.broadcast %cst_28 : f32 to vector<8x128xf32>
    %135 = arith.addf %134, %133 : vector<8x128xf32>
    %136 = arith.divf %134, %135 : vector<8x128xf32>
    %137 = vector.extract_strided_slice %117 {offsets = [0, 256], sizes = [8, 128], strides = [1, 1]} : vector<8x384xf32> to vector<8x128xf32>
    %138 = vector.extract_strided_slice %120 {offsets = [0, 256], sizes = [8, 128], strides = [1, 1]} : vector<8x384xf32> to vector<8x128xf32>
    %139 = arith.mulf %128, %138 : vector<8x128xf32>
    %140 = arith.addf %137, %139 : vector<8x128xf32>
    %141 = math.tanh %140 : vector<8x128xf32>
    %cst_29 = arith.constant 1.000000e+00 : f32
    %142 = vector.broadcast %cst_29 : f32 to vector<8x128xf32>
    %143 = arith.subf %142, %136 : vector<8x128xf32>
    %144 = arith.mulf %143, %141 : vector<8x128xf32>
    %145 = arith.mulf %136, %116 : vector<8x128xf32>
    %146 = arith.addf %144, %145 : vector<8x128xf32>
    %c3_i32 = arith.constant 3 : i32
    %147 = vector.broadcast %c3_i32 : i32 to vector<8x1xi32>
    %148 = arith.cmpi sgt, %10, %147 : vector<8x1xi32>
    %149 = vector.shape_cast %148 : vector<8x1xi1> to vector<8x1xi1>
    %150 = vector.broadcast %149 : vector<8x1xi1> to vector<8x128xi1>
    %151 = arith.select %150, %146, %116 : vector<8x128xi1>, vector<8x128xf32>
    %152 = vector.extract_strided_slice %6 {offsets = [32, 0], sizes = [8, 384], strides = [1, 1]} : vector<64x384xf32> to vector<8x384xf32>
    %cst_30 = arith.constant dense<0.000000e+00> : vector<8x384xf32>
    %153 = tpu.matmul %151, %7, %cst_30 {dimension_numbers = #tpu.dot_dimension_numbers<[1], [0], [0], [1], [0, 0, 1, 1], [], []>} : vector<8x128xf32>, vector<128x384xf32>, vector<8x384xf32> -> vector<8x384xf32>
    %154 = vector.broadcast %8 : vector<1x384xf32> to vector<8x384xf32>
    %155 = arith.addf %153, %154 : vector<8x384xf32>
    %156 = vector.extract_strided_slice %152 {offsets = [0, 0], sizes = [8, 128], strides = [1, 1]} : vector<8x384xf32> to vector<8x128xf32>
    %157 = vector.extract_strided_slice %155 {offsets = [0, 0], sizes = [8, 128], strides = [1, 1]} : vector<8x384xf32> to vector<8x128xf32>
    %158 = arith.addf %156, %157 : vector<8x128xf32>
    %159 = arith.negf %158 : vector<8x128xf32>
    %160 = math.exp %159 : vector<8x128xf32>
    %cst_31 = arith.constant 1.000000e+00 : f32
    %161 = vector.broadcast %cst_31 : f32 to vector<8x128xf32>
    %162 = arith.addf %161, %160 : vector<8x128xf32>
    %163 = arith.divf %161, %162 : vector<8x128xf32>
    %164 = vector.extract_strided_slice %152 {offsets = [0, 128], sizes = [8, 128], strides = [1, 1]} : vector<8x384xf32> to vector<8x128xf32>
    %165 = vector.extract_strided_slice %155 {offsets = [0, 128], sizes = [8, 128], strides = [1, 1]} : vector<8x384xf32> to vector<8x128xf32>
    %166 = arith.addf %164, %165 : vector<8x128xf32>
    %167 = arith.negf %166 : vector<8x128xf32>
    %168 = math.exp %167 : vector<8x128xf32>
    %cst_32 = arith.constant 1.000000e+00 : f32
    %169 = vector.broadcast %cst_32 : f32 to vector<8x128xf32>
    %170 = arith.addf %169, %168 : vector<8x128xf32>
    %171 = arith.divf %169, %170 : vector<8x128xf32>
    %172 = vector.extract_strided_slice %152 {offsets = [0, 256], sizes = [8, 128], strides = [1, 1]} : vector<8x384xf32> to vector<8x128xf32>
    %173 = vector.extract_strided_slice %155 {offsets = [0, 256], sizes = [8, 128], strides = [1, 1]} : vector<8x384xf32> to vector<8x128xf32>
    %174 = arith.mulf %163, %173 : vector<8x128xf32>
    %175 = arith.addf %172, %174 : vector<8x128xf32>
    %176 = math.tanh %175 : vector<8x128xf32>
    %cst_33 = arith.constant 1.000000e+00 : f32
    %177 = vector.broadcast %cst_33 : f32 to vector<8x128xf32>
    %178 = arith.subf %177, %171 : vector<8x128xf32>
    %179 = arith.mulf %178, %176 : vector<8x128xf32>
    %180 = arith.mulf %171, %151 : vector<8x128xf32>
    %181 = arith.addf %179, %180 : vector<8x128xf32>
    %c4_i32 = arith.constant 4 : i32
    %182 = vector.broadcast %c4_i32 : i32 to vector<8x1xi32>
    %183 = arith.cmpi sgt, %10, %182 : vector<8x1xi32>
    %184 = vector.shape_cast %183 : vector<8x1xi1> to vector<8x1xi1>
    %185 = vector.broadcast %184 : vector<8x1xi1> to vector<8x128xi1>
    %186 = arith.select %185, %181, %151 : vector<8x128xi1>, vector<8x128xf32>
    %187 = vector.extract_strided_slice %6 {offsets = [40, 0], sizes = [8, 384], strides = [1, 1]} : vector<64x384xf32> to vector<8x384xf32>
    %cst_34 = arith.constant dense<0.000000e+00> : vector<8x384xf32>
    %188 = tpu.matmul %186, %7, %cst_34 {dimension_numbers = #tpu.dot_dimension_numbers<[1], [0], [0], [1], [0, 0, 1, 1], [], []>} : vector<8x128xf32>, vector<128x384xf32>, vector<8x384xf32> -> vector<8x384xf32>
    %189 = vector.broadcast %8 : vector<1x384xf32> to vector<8x384xf32>
    %190 = arith.addf %188, %189 : vector<8x384xf32>
    %191 = vector.extract_strided_slice %187 {offsets = [0, 0], sizes = [8, 128], strides = [1, 1]} : vector<8x384xf32> to vector<8x128xf32>
    %192 = vector.extract_strided_slice %190 {offsets = [0, 0], sizes = [8, 128], strides = [1, 1]} : vector<8x384xf32> to vector<8x128xf32>
    %193 = arith.addf %191, %192 : vector<8x128xf32>
    %194 = arith.negf %193 : vector<8x128xf32>
    %195 = math.exp %194 : vector<8x128xf32>
    %cst_35 = arith.constant 1.000000e+00 : f32
    %196 = vector.broadcast %cst_35 : f32 to vector<8x128xf32>
    %197 = arith.addf %196, %195 : vector<8x128xf32>
    %198 = arith.divf %196, %197 : vector<8x128xf32>
    %199 = vector.extract_strided_slice %187 {offsets = [0, 128], sizes = [8, 128], strides = [1, 1]} : vector<8x384xf32> to vector<8x128xf32>
    %200 = vector.extract_strided_slice %190 {offsets = [0, 128], sizes = [8, 128], strides = [1, 1]} : vector<8x384xf32> to vector<8x128xf32>
    %201 = arith.addf %199, %200 : vector<8x128xf32>
    %202 = arith.negf %201 : vector<8x128xf32>
    %203 = math.exp %202 : vector<8x128xf32>
    %cst_36 = arith.constant 1.000000e+00 : f32
    %204 = vector.broadcast %cst_36 : f32 to vector<8x128xf32>
    %205 = arith.addf %204, %203 : vector<8x128xf32>
    %206 = arith.divf %204, %205 : vector<8x128xf32>
    %207 = vector.extract_strided_slice %187 {offsets = [0, 256], sizes = [8, 128], strides = [1, 1]} : vector<8x384xf32> to vector<8x128xf32>
    %208 = vector.extract_strided_slice %190 {offsets = [0, 256], sizes = [8, 128], strides = [1, 1]} : vector<8x384xf32> to vector<8x128xf32>
    %209 = arith.mulf %198, %208 : vector<8x128xf32>
    %210 = arith.addf %207, %209 : vector<8x128xf32>
    %211 = math.tanh %210 : vector<8x128xf32>
    %cst_37 = arith.constant 1.000000e+00 : f32
    %212 = vector.broadcast %cst_37 : f32 to vector<8x128xf32>
    %213 = arith.subf %212, %206 : vector<8x128xf32>
    %214 = arith.mulf %213, %211 : vector<8x128xf32>
    %215 = arith.mulf %206, %186 : vector<8x128xf32>
    %216 = arith.addf %214, %215 : vector<8x128xf32>
    %c5_i32 = arith.constant 5 : i32
    %217 = vector.broadcast %c5_i32 : i32 to vector<8x1xi32>
    %218 = arith.cmpi sgt, %10, %217 : vector<8x1xi32>
    %219 = vector.shape_cast %218 : vector<8x1xi1> to vector<8x1xi1>
    %220 = vector.broadcast %219 : vector<8x1xi1> to vector<8x128xi1>
    %221 = arith.select %220, %216, %186 : vector<8x128xi1>, vector<8x128xf32>
    %222 = vector.extract_strided_slice %6 {offsets = [48, 0], sizes = [8, 384], strides = [1, 1]} : vector<64x384xf32> to vector<8x384xf32>
    %cst_38 = arith.constant dense<0.000000e+00> : vector<8x384xf32>
    %223 = tpu.matmul %221, %7, %cst_38 {dimension_numbers = #tpu.dot_dimension_numbers<[1], [0], [0], [1], [0, 0, 1, 1], [], []>} : vector<8x128xf32>, vector<128x384xf32>, vector<8x384xf32> -> vector<8x384xf32>
    %224 = vector.broadcast %8 : vector<1x384xf32> to vector<8x384xf32>
    %225 = arith.addf %223, %224 : vector<8x384xf32>
    %226 = vector.extract_strided_slice %222 {offsets = [0, 0], sizes = [8, 128], strides = [1, 1]} : vector<8x384xf32> to vector<8x128xf32>
    %227 = vector.extract_strided_slice %225 {offsets = [0, 0], sizes = [8, 128], strides = [1, 1]} : vector<8x384xf32> to vector<8x128xf32>
    %228 = arith.addf %226, %227 : vector<8x128xf32>
    %229 = arith.negf %228 : vector<8x128xf32>
    %230 = math.exp %229 : vector<8x128xf32>
    %cst_39 = arith.constant 1.000000e+00 : f32
    %231 = vector.broadcast %cst_39 : f32 to vector<8x128xf32>
    %232 = arith.addf %231, %230 : vector<8x128xf32>
    %233 = arith.divf %231, %232 : vector<8x128xf32>
    %234 = vector.extract_strided_slice %222 {offsets = [0, 128], sizes = [8, 128], strides = [1, 1]} : vector<8x384xf32> to vector<8x128xf32>
    %235 = vector.extract_strided_slice %225 {offsets = [0, 128], sizes = [8, 128], strides = [1, 1]} : vector<8x384xf32> to vector<8x128xf32>
    %236 = arith.addf %234, %235 : vector<8x128xf32>
    %237 = arith.negf %236 : vector<8x128xf32>
    %238 = math.exp %237 : vector<8x128xf32>
    %cst_40 = arith.constant 1.000000e+00 : f32
    %239 = vector.broadcast %cst_40 : f32 to vector<8x128xf32>
    %240 = arith.addf %239, %238 : vector<8x128xf32>
    %241 = arith.divf %239, %240 : vector<8x128xf32>
    %242 = vector.extract_strided_slice %222 {offsets = [0, 256], sizes = [8, 128], strides = [1, 1]} : vector<8x384xf32> to vector<8x128xf32>
    %243 = vector.extract_strided_slice %225 {offsets = [0, 256], sizes = [8, 128], strides = [1, 1]} : vector<8x384xf32> to vector<8x128xf32>
    %244 = arith.mulf %233, %243 : vector<8x128xf32>
    %245 = arith.addf %242, %244 : vector<8x128xf32>
    %246 = math.tanh %245 : vector<8x128xf32>
    %cst_41 = arith.constant 1.000000e+00 : f32
    %247 = vector.broadcast %cst_41 : f32 to vector<8x128xf32>
    %248 = arith.subf %247, %241 : vector<8x128xf32>
    %249 = arith.mulf %248, %246 : vector<8x128xf32>
    %250 = arith.mulf %241, %221 : vector<8x128xf32>
    %251 = arith.addf %249, %250 : vector<8x128xf32>
    %c6_i32 = arith.constant 6 : i32
    %252 = vector.broadcast %c6_i32 : i32 to vector<8x1xi32>
    %253 = arith.cmpi sgt, %10, %252 : vector<8x1xi32>
    %254 = vector.shape_cast %253 : vector<8x1xi1> to vector<8x1xi1>
    %255 = vector.broadcast %254 : vector<8x1xi1> to vector<8x128xi1>
    %256 = arith.select %255, %251, %221 : vector<8x128xi1>, vector<8x128xf32>
    %257 = vector.extract_strided_slice %6 {offsets = [56, 0], sizes = [8, 384], strides = [1, 1]} : vector<64x384xf32> to vector<8x384xf32>
    %cst_42 = arith.constant dense<0.000000e+00> : vector<8x384xf32>
    %258 = tpu.matmul %256, %7, %cst_42 {dimension_numbers = #tpu.dot_dimension_numbers<[1], [0], [0], [1], [0, 0, 1, 1], [], []>} : vector<8x128xf32>, vector<128x384xf32>, vector<8x384xf32> -> vector<8x384xf32>
    %259 = vector.broadcast %8 : vector<1x384xf32> to vector<8x384xf32>
    %260 = arith.addf %258, %259 : vector<8x384xf32>
    %261 = vector.extract_strided_slice %257 {offsets = [0, 0], sizes = [8, 128], strides = [1, 1]} : vector<8x384xf32> to vector<8x128xf32>
    %262 = vector.extract_strided_slice %260 {offsets = [0, 0], sizes = [8, 128], strides = [1, 1]} : vector<8x384xf32> to vector<8x128xf32>
    %263 = arith.addf %261, %262 : vector<8x128xf32>
    %264 = arith.negf %263 : vector<8x128xf32>
    %265 = math.exp %264 : vector<8x128xf32>
    %cst_43 = arith.constant 1.000000e+00 : f32
    %266 = vector.broadcast %cst_43 : f32 to vector<8x128xf32>
    %267 = arith.addf %266, %265 : vector<8x128xf32>
    %268 = arith.divf %266, %267 : vector<8x128xf32>
    %269 = vector.extract_strided_slice %257 {offsets = [0, 128], sizes = [8, 128], strides = [1, 1]} : vector<8x384xf32> to vector<8x128xf32>
    %270 = vector.extract_strided_slice %260 {offsets = [0, 128], sizes = [8, 128], strides = [1, 1]} : vector<8x384xf32> to vector<8x128xf32>
    %271 = arith.addf %269, %270 : vector<8x128xf32>
    %272 = arith.negf %271 : vector<8x128xf32>
    %273 = math.exp %272 : vector<8x128xf32>
    %cst_44 = arith.constant 1.000000e+00 : f32
    %274 = vector.broadcast %cst_44 : f32 to vector<8x128xf32>
    %275 = arith.addf %274, %273 : vector<8x128xf32>
    %276 = arith.divf %274, %275 : vector<8x128xf32>
    %277 = vector.extract_strided_slice %257 {offsets = [0, 256], sizes = [8, 128], strides = [1, 1]} : vector<8x384xf32> to vector<8x128xf32>
    %278 = vector.extract_strided_slice %260 {offsets = [0, 256], sizes = [8, 128], strides = [1, 1]} : vector<8x384xf32> to vector<8x128xf32>
    %279 = arith.mulf %268, %278 : vector<8x128xf32>
    %280 = arith.addf %277, %279 : vector<8x128xf32>
    %281 = math.tanh %280 : vector<8x128xf32>
    %cst_45 = arith.constant 1.000000e+00 : f32
    %282 = vector.broadcast %cst_45 : f32 to vector<8x128xf32>
    %283 = arith.subf %282, %276 : vector<8x128xf32>
    %284 = arith.mulf %283, %281 : vector<8x128xf32>
    %285 = arith.mulf %276, %256 : vector<8x128xf32>
    %286 = arith.addf %284, %285 : vector<8x128xf32>
    %c7_i32 = arith.constant 7 : i32
    %287 = vector.broadcast %c7_i32 : i32 to vector<8x1xi32>
    %288 = arith.cmpi sgt, %10, %287 : vector<8x1xi32>
    %289 = vector.shape_cast %288 : vector<8x1xi1> to vector<8x1xi1>
    %290 = vector.broadcast %289 : vector<8x1xi1> to vector<8x128xi1>
    %291 = arith.select %290, %286, %256 : vector<8x128xi1>, vector<8x128xf32>
    %c0_46 = arith.constant 0 : index
    %c0_47 = arith.constant 0 : index
    %c0_48 = arith.constant 0 : index
    %292 = vector.load %arg8[%c0_46, %c0_47, %c0_48] : memref<1x128x128xf32, #tpu.memory_space<vmem>>, vector<1x128x128xf32>
    %293 = vector.shape_cast %292 : vector<1x128x128xf32> to vector<128x128xf32>
    %cst_49 = arith.constant dense<0.000000e+00> : vector<8x128xf32>
    %294 = tpu.matmul %291, %293, %cst_49 {dimension_numbers = #tpu.dot_dimension_numbers<[1], [0], [0], [1], [0, 0, 1, 1], [], []>} : vector<8x128xf32>, vector<128x128xf32>, vector<8x128xf32> -> vector<8x128xf32>
    %c0_50 = arith.constant 0 : index
    %c0_51 = arith.constant 0 : index
    %c0_52 = arith.constant 0 : index
    %295 = vector.load %arg9[%c0_50, %c0_51, %c0_52] : memref<1x1x128xf32, #tpu.memory_space<vmem>>, vector<1x1x128xf32>
    %296 = vector.shape_cast %295 : vector<1x1x128xf32> to vector<1x128xf32>
    %297 = vector.broadcast %296 : vector<1x128xf32> to vector<8x128xf32>
    %298 = arith.addf %294, %297 : vector<8x128xf32>
    %cst_53 = arith.constant 0.000000e+00 : f32
    %299 = vector.broadcast %cst_53 : f32 to vector<8x128xf32>
    %300 = arith.maximumf %298, %299 : vector<8x128xf32>
    %c0_54 = arith.constant 0 : index
    %c0_55 = arith.constant 0 : index
    %c0_56 = arith.constant 0 : index
    %301 = vector.load %arg10[%c0_54, %c0_55, %c0_56] : memref<1x128x128xf32, #tpu.memory_space<vmem>>, vector<1x128x128xf32>
    %302 = vector.shape_cast %301 : vector<1x128x128xf32> to vector<128x128xf32>
    %cst_57 = arith.constant dense<0.000000e+00> : vector<8x128xf32>
    %303 = tpu.matmul %300, %302, %cst_57 {dimension_numbers = #tpu.dot_dimension_numbers<[1], [0], [0], [1], [0, 0, 1, 1], [], []>} : vector<8x128xf32>, vector<128x128xf32>, vector<8x128xf32> -> vector<8x128xf32>
    %c0_58 = arith.constant 0 : index
    %c0_59 = arith.constant 0 : index
    %c0_60 = arith.constant 0 : index
    %304 = vector.load %arg11[%c0_58, %c0_59, %c0_60] : memref<1x1x128xf32, #tpu.memory_space<vmem>>, vector<1x1x128xf32>
    %305 = vector.shape_cast %304 : vector<1x1x128xf32> to vector<1x128xf32>
    %306 = vector.broadcast %305 : vector<1x128xf32> to vector<8x128xf32>
    %307 = arith.addf %303, %306 : vector<8x128xf32>
    %c0_61 = arith.constant 0 : index
    %c0_62 = arith.constant 0 : index
    %c0_63 = arith.constant 0 : index
    %308 = vector.load %arg12[%c0_61, %c0_62, %c0_63] : memref<1x8x128xf32, #tpu.memory_space<vmem>>, vector<1x8x128xf32>
    %309 = vector.shape_cast %308 : vector<1x8x128xf32> to vector<8x128xf32>
    %310 = vector.shape_cast %307 : vector<8x128xf32> to vector<1x8x128xf32>
    tpu.vector_store %arg12[%c0_61, %c0_62, %c0_63], %310 {strides = array<i32>} : memref<1x8x128xf32, #tpu.memory_space<vmem>>, vector<1x8x128xf32>,
    %311 = tpu.iota {dimensions = array<i32: 1>} : vector<8x128xi32>
    %cst_64 = arith.constant dense<0xFF800000> : vector<8xf32>
    %312 = vector.multi_reduction <maximumf>, %307, %cst_64 [1] : vector<8x128xf32> to vector<8xf32>
    %313 = vector.shape_cast %312 : vector<8xf32> to vector<8x1xf32>
    %314 = vector.broadcast %313 : vector<8x1xf32> to vector<8x128xf32>
    %315 = arith.cmpf oeq, %307, %314 : vector<8x128xf32>
    %c128_i32 = arith.constant 128 : i32
    %316 = vector.broadcast %c128_i32 : i32 to vector<8x128xi32>
    %317 = arith.select %315, %311, %316 : vector<8x128xi1>, vector<8x128xi32>
    %cst_65 = arith.constant dense<2147483647> : vector<8xi32>
    %318 = vector.multi_reduction <minsi>, %317, %cst_65 [1] : vector<8x128xi32> to vector<8xi32>
    %319 = vector.shape_cast %318 : vector<8xi32> to vector<8x1xi32>
    %c0_66 = arith.constant 0 : index
    %c0_67 = arith.constant 0 : index
    %c0_68 = arith.constant 0 : index
    %320 = vector.load %arg13[%c0_66, %c0_67, %c0_68] : memref<1x8x1xi32, #tpu.memory_space<vmem>>, vector<1x8x1xi32>
    %321 = vector.shape_cast %320 : vector<1x8x1xi32> to vector<8x1xi32>
    %322 = vector.shape_cast %319 : vector<8x1xi32> to vector<1x8x1xi32>
    tpu.vector_store %arg13[%c0_66, %c0_67, %c0_68], %322 {strides = array<i32>} : memref<1x8x1xi32, #tpu.memory_space<vmem>>, vector<1x8x1xi32>,
    %323 = tpu.iota {dimensions = array<i32: 0>} : vector<8x1xi32>
    %c2_i32_69 = arith.constant 2 : i32
    %324 = vector.broadcast %c2_i32_69 : i32 to vector<8x1xi32>
    %325 = arith.cmpi slt, %323, %324 : vector<8x1xi32>
    %326 = arith.extui %325 : vector<8x1xi1> to vector<8x1xi32>
    %327 = arith.sitofp %326 : vector<8x1xi32> to vector<8x1xf32>
    %c0_70 = arith.constant 0 : index
    %c0_71 = arith.constant 0 : index
    %c0_72 = arith.constant 0 : index
    %328 = vector.load %arg3[%c0_70, %c0_71, %c0_72] : memref<1x8x1xi32, #tpu.memory_space<vmem>>, vector<1x8x1xi32>
    %329 = vector.shape_cast %328 : vector<1x8x1xi32> to vector<8x1xi32>
    %330 = vector.broadcast %329 : vector<8x1xi32> to vector<8x128xi32>
    %331 = arith.cmpi eq, %311, %330 : vector<8x128xi32>
    %332 = arith.extui %331 : vector<8x128xi1> to vector<8x128xi32>
    %333 = arith.sitofp %332 : vector<8x128xi32> to vector<8x128xf32>
    %334 = vector.broadcast %313 : vector<8x1xf32> to vector<8x128xf32>
    %335 = arith.subf %307, %334 : vector<8x128xf32>
    %336 = math.exp %335 : vector<8x128xf32>
    %cst_73 = arith.constant dense<0.000000e+00> : vector<8xf32>
    %337 = vector.multi_reduction <add>, %336, %cst_73 [1] : vector<8x128xf32> to vector<8xf32>
    %338 = vector.shape_cast %337 : vector<8xf32> to vector<8x1xf32>
    %339 = math.log %338 : vector<8x1xf32>
    %340 = arith.addf %339, %313 : vector<8x1xf32>
    %341 = arith.mulf %333, %307 : vector<8x128xf32>
    %cst_74 = arith.constant dense<0.000000e+00> : vector<8xf32>
    %342 = vector.multi_reduction <add>, %341, %cst_74 [1] : vector<8x128xf32> to vector<8xf32>
    %343 = vector.shape_cast %342 : vector<8xf32> to vector<8x1xf32>
    %344 = arith.subf %340, %343 : vector<8x1xf32>
    %345 = arith.mulf %327, %344 : vector<8x1xf32>
    %cst_75 = arith.constant dense<0.000000e+00> : vector<1xf32>
    %346 = vector.multi_reduction <add>, %345, %cst_75 [0] : vector<8x1xf32> to vector<1xf32>
    %347 = vector.shape_cast %346 : vector<1xf32> to vector<1x1xf32>
    %cst_76 = arith.constant 5.000000e-01 : f32
    %348 = vector.broadcast %cst_76 : f32 to vector<1x1xf32>
    %349 = arith.mulf %347, %348 : vector<1x1xf32>
    %c0_77 = arith.constant 0 : index
    %c0_78 = arith.constant 0 : index
    %c0_79 = arith.constant 0 : index
    %350 = vector.load %arg14[%c0_77, %c0_78, %c0_79] : memref<1x1x1xf32, #tpu.memory_space<vmem>>, vector<1x1x1xf32>
    %351 = vector.shape_cast %350 : vector<1x1x1xf32> to vector<1x1xf32>
    %352 = vector.shape_cast %349 : vector<1x1xf32> to vector<1x1x1xf32>
    tpu.vector_store %arg14[%c0_77, %c0_78, %c0_79], %352 {strides = array<i32>} : memref<1x1x1xf32, #tpu.memory_space<vmem>>, vector<1x1x1xf32>,
    %cst_80 = arith.constant 0.000000e+00 : f32
    %353 = vector.broadcast %cst_80 : f32 to vector<1x1xf32>
    %c0_81 = arith.constant 0 : index
    %c0_82 = arith.constant 0 : index
    %c0_83 = arith.constant 0 : index
    %354 = vector.load %arg15[%c0_81, %c0_82, %c0_83] : memref<1x1x1xf32, #tpu.memory_space<vmem>>, vector<1x1x1xf32>
    %355 = vector.shape_cast %354 : vector<1x1x1xf32> to vector<1x1xf32>
    %356 = vector.shape_cast %353 : vector<1x1xf32> to vector<1x1x1xf32>
    tpu.vector_store %arg15[%c0_81, %c0_82, %c0_83], %356 {strides = array<i32>} : memref<1x1x1xf32, #tpu.memory_space<vmem>>, vector<1x1x1xf32>,
    %c0_i32_84 = arith.constant 0 : i32
    %357 = arith.cmpi eq, %arg0, %c0_i32_84 : i32
    %358 = arith.extui %357 : i1 to i32
    %c0_i32_85 = arith.constant 0 : i32
    %359 = arith.cmpi ne, %358, %c0_i32_85 : i32
    scf.if %359 {
      %360 = vector.broadcast %338 : vector<8x1xf32> to vector<8x128xf32>
      %361 = arith.divf %336, %360 : vector<8x128xf32>
      %cst_86 = arith.constant 1.000000e-10 : f32
      %362 = vector.broadcast %cst_86 : f32 to vector<8x128xf32>
      %363 = arith.addf %361, %362 : vector<8x128xf32>
      %364 = math.log %363 : vector<8x128xf32>
      %365 = arith.mulf %361, %364 : vector<8x128xf32>
      %cst_87 = arith.constant dense<0.000000e+00> : vector<8xf32>
      %366 = vector.multi_reduction <add>, %365, %cst_87 [1] : vector<8x128xf32> to vector<8xf32>
      %367 = vector.shape_cast %366 : vector<8xf32> to vector<8x1xf32>
      %cst_88 = arith.constant 0.000000e+00 : f32
      %368 = vector.broadcast %cst_88 : f32 to vector<8x1xf32>
      %369 = arith.subf %368, %367 : vector<8x1xf32>
      %cst_89 = arith.constant 2.30258512 : f32
      %370 = vector.broadcast %cst_89 : f32 to vector<8x1xf32>
      %371 = arith.divf %369, %370 : vector<8x1xf32>
      %372 = arith.mulf %327, %371 : vector<8x1xf32>
      %373 = arith.mulf %372, %369 : vector<8x1xf32>
      %cst_90 = arith.constant dense<0.000000e+00> : vector<1xf32>
      %374 = vector.multi_reduction <add>, %373, %cst_90 [0] : vector<8x1xf32> to vector<1xf32>
      %375 = vector.shape_cast %374 : vector<1xf32> to vector<1x1xf32>
      %cst_91 = arith.constant 5.000000e-01 : f32
      %376 = vector.broadcast %cst_91 : f32 to vector<1x1xf32>
      %377 = arith.mulf %375, %376 : vector<1x1xf32>
      %c0_92 = arith.constant 0 : index
      %c0_93 = arith.constant 0 : index
      %c0_94 = arith.constant 0 : index
      %378 = vector.load %arg15[%c0_92, %c0_93, %c0_94] : memref<1x1x1xf32, #tpu.memory_space<vmem>>, vector<1x1x1xf32>
      %379 = vector.shape_cast %378 : vector<1x1x1xf32> to vector<1x1xf32>
      %380 = vector.shape_cast %377 : vector<1x1xf32> to vector<1x1x1xf32>
      tpu.vector_store %arg15[%c0_92, %c0_93, %c0_94], %380 {strides = array<i32>} : memref<1x1x1xf32, #tpu.memory_space<vmem>>, vector<1x1x1xf32>,
    } else {
    }
    return
  }
  func.func @transform_0(%arg0: i32) -> (i32, i32, i32) {
    %c0_i32 = arith.constant 0 : i32
    %c0_i32_0 = arith.constant 0 : i32
    %c0_i32_1 = arith.constant 0 : i32
    return %arg0, %c0_i32, %c0_i32_0 : i32, i32, i32
  }
  func.func @transform_1(%arg0: i32) -> (i32, i32, i32) {
    %c0_i32 = arith.constant 0 : i32
    %c0_i32_0 = arith.constant 0 : i32
    %c0_i32_1 = arith.constant 0 : i32
    return %arg0, %c0_i32, %c0_i32_0 : i32, i32, i32
  }
  func.func @transform_2(%arg0: i32) -> (i32, i32, i32) {
    %c0_i32 = arith.constant 0 : i32
    %c0_i32_0 = arith.constant 0 : i32
    %c0_i32_1 = arith.constant 0 : i32
    return %arg0, %c0_i32, %c0_i32_0 : i32, i32, i32
  }
  func.func @transform_3(%arg0: i32) -> (i32, i32) {
    %c0_i32 = arith.constant 0 : i32
    %c0_i32_0 = arith.constant 0 : i32
    %c0_i32_1 = arith.constant 0 : i32
    return %c0_i32, %c0_i32_0 : i32, i32
  }
  func.func @transform_4(%arg0: i32) -> (i32, i32) {
    %c0_i32 = arith.constant 0 : i32
    %c0_i32_0 = arith.constant 0 : i32
    %c0_i32_1 = arith.constant 0 : i32
    return %c0_i32, %c0_i32_0 : i32, i32
  }
  func.func @transform_5(%arg0: i32) -> (i32, i32) {
    %c0_i32 = arith.constant 0 : i32
    %c0_i32_0 = arith.constant 0 : i32
    %c0_i32_1 = arith.constant 0 : i32
    return %c0_i32, %c0_i32_0 : i32, i32
  }
  func.func @transform_6(%arg0: i32) -> (i32, i32) {
    %c0_i32 = arith.constant 0 : i32
    %c0_i32_0 = arith.constant 0 : i32
    %c0_i32_1 = arith.constant 0 : i32
    return %c0_i32, %c0_i32_0 : i32, i32
  }
  func.func @transform_7(%arg0: i32) -> (i32, i32, i32) {
    %c0_i32 = arith.constant 0 : i32
    %c0_i32_0 = arith.constant 0 : i32
    %c0_i32_1 = arith.constant 0 : i32
    return %arg0, %c0_i32, %c0_i32_0 : i32, i32, i32
  }
  func.func @transform_8(%arg0: i32) -> (i32, i32, i32) {
    %c0_i32 = arith.constant 0 : i32
    %c0_i32_0 = arith.constant 0 : i32
    %c0_i32_1 = arith.constant 0 : i32
    return %arg0, %c0_i32, %c0_i32_0 : i32, i32, i32
  }
  func.func @transform_9(%arg0: i32) -> (i32, i32, i32) {
    %c0_i32 = arith.constant 0 : i32
    %c0_i32_0 = arith.constant 0 : i32
    %c0_i32_1 = arith.constant 0 : i32
    return %arg0, %c0_i32, %c0_i32_0 : i32, i32, i32
  }
  func.func @transform_10(%arg0: i32) -> (i32, i32, i32) {
    %c0_i32 = arith.constant 0 : i32
    %c0_i32_0 = arith.constant 0 : i32
    %c0_i32_1 = arith.constant 0 : i32
    return %arg0, %c0_i32, %c0_i32_0 : i32, i32, i32
  }
  func.func @transform_11(%arg0: i32) -> (i32, i32, i32) {
    %c0_i32 = arith.constant 0 : i32
    %c0_i32_0 = arith.constant 0 : i32
    %c0_i32_1 = arith.constant 0 : i32
    return %arg0, %c0_i32, %c0_i32_0 : i32, i32, i32
  }
  func.func @transform_12(%arg0: i32) -> (i32, i32, i32) {
    %c0_i32 = arith.constant 0 : i32
    %c0_i32_0 = arith.constant 0 : i32
    %c0_i32_1 = arith.constant 0 : i32
    return %arg0, %c0_i32, %c0_i32_0 : i32, i32, i32
  }
  func.func @transform_13(%arg0: i32) -> (i32, i32, i32) {
    %c0_i32 = arith.constant 0 : i32
    %c0_i32_0 = arith.constant 0 : i32
    %c0_i32_1 = arith.constant 0 : i32
    return %arg0, %c0_i32, %c0_i32_0 : i32, i32, i32
  }
  func.func @transform_14(%arg0: i32) -> (i32, i32, i32) {
    %c0_i32 = arith.constant 0 : i32
    %c0_i32_0 = arith.constant 0 : i32
    %c0_i32_1 = arith.constant 0 : i32
    return %arg0, %c0_i32, %c0_i32_0 : i32, i32, i32
  }
}

</mosaic_0001>

<bundles_post_ra>
// kernel: tpu_custom_call.1
= control target key start
LH: loop header
LB: loop body
LE: loop exit
PB: predicated region body
PF: predicated region fallthrough
CT: control target
= control target key end

     0   :  { %s5239_s0 = inlined_call_operand.vmem [shape: f32[2,64,16], index: 0, kind: input, shape index: {}]   ;;  %s5240_s1 = inlined_call_operand.vmem [shape: s32[2,8,1], index: 1, kind: input, shape index: {}]   ;;  %s5241_s2 = inlined_call_operand.vmem [shape: s32[2,8,1], index: 2, kind: input, shape index: {}]   ;;  %s5242_s3 = inlined_call_operand.vmem [shape: f32[16,384], index: 3, kind: input, shape index: {}]   ;;  %s5243_s4 = inlined_call_operand.vmem [shape: f32[1,384], index: 4, kind: input, shape index: {}]   ;;  %s5244_s5 = inlined_call_operand.hbm [shape: f32[128,384], index: 5, kind: input, shape index: {}]   ;;  %s5245_s6 = inlined_call_operand.vmem [shape: f32[1,384], index: 6, kind: input, shape index: {}]   ;;  %s5246_s7 = inlined_call_operand.hbm [shape: f32[2,128,128], index: 7, kind: input, shape index: {}]   ;;  %s5247_s8 = inlined_call_operand.vmem [shape: f32[2,1,128], index: 8, kind: input, shape index: {}]   ;;  %s5248_s9 = inlined_call_operand.hbm [shape: f32[2,128,128], index: 9, kind: input, shape index: {}]   ;;  %s5249_s10 = inlined_call_operand.vmem [shape: f32[2,1,128], index: 10, kind: input, shape index: {}]   ;;  %s5250_s11 = inlined_call_operand.hbm [shape: f32[2,8,128], index: 11, kind: output, shape index: {0}]   ;;  %s5251_s12 = inlined_call_operand.vmem [shape: s32[2,8,1], index: 12, kind: output, shape index: {1}]   ;;  %s5252_s13 = inlined_call_operand.vmem [shape: f32[2,1,1], index: 13, kind: output, shape index: {2}]   ;;  %s5253_s14 = inlined_call_operand.vmem [shape: f32[2,1,1], index: 14, kind: output, shape index: {3}]  }
   0x1   :  { %5304 = sst [smem:[#allocation49_spill]] %s5246_s7 }
   0x2   :  { %5305 = sst [smem:[#allocation50_spill]] %s5250_s11 }
   0x3   :  { %5306 = sst [smem:[#allocation51_spill]] %s5251_s12 }
   0x4   :  { %20 = vsyncpa [#allocation3], 0 }
   0x5   :  { %21 = vsyncpa [#allocation6], 0 }
   0x6   :  { %23 = vsyncpa [#allocation6 + $0x1], 0 }
   0x7   :  { %24 = vsyncpa [#allocation4], 0 }
   0x8   :  { %26 = vsyncpa [#allocation4 + $0x1], 0  ;;  %s3917_s29 = smov 0   ;;  %s3919_s30 = smov 0  }
   0x9   :  { %s3921_s15 = smov 0   ;;  %s3923_s16 = smov 0  }
   0xa LB: > { %5307 = sst [smem:[#allocation12_spill]] %s3825_s15  ;;  %s3938_s17 = sadd.s32 1, %s3829_s16   ;;  %s3829_s16 = sphi %s3923_s16, %s5427_s16   ;;  %s3825_s15 = sphi %s3921_s15, %s5429_s15   ;;  %s3821_s30 = sphi %s3919_s30, %s5431_s30   ;;  %s3817_s29 = sphi %s3917_s29, %s5430_s29  }
   0xb   : > { %5308 = sst [smem:[#allocation13_spill]] %s3829_s16  ;;  %s201_s18 = sadd.s32 1, %s3825_s15 }
   0xc   : > { %5309 = sst [smem:[#allocation14_spill]] %s3938_s17  ;;  %s198_s19 = ssub.s32 %s3829_s16, %s3938_s17 }
   0xd   : > { %p208_p0 = scmp.ne.s32.totalorder %s3825_s15, %s3821_s30  ;;  %p199_p1 = scmp.eq.s32.totalorder %s198_s19, 0 }
   0xe   : > { %p209_p2 = scmp.eq.s32.totalorder %s3829_s16, 0  ;;  %p3498_p4 = scmp.lt.s32.totalorder %s3829_s16, 2 }
   0xf   : > { %s3949_s20 = scalar_select %p199_p1, %s3825_s15, %s201_s18  }
  0x10   : > { %p210_p5 = por %p209_p2, %p208_p0  ;;  %s464_s21 = sand.u32 1, %s3829_s16  }
  0x11   : > { %5310 = sst [smem:[#allocation15_spill]] %s3949_s20  ;;  %s466_s22 = sand.u32 1, %s3825_s15  }
  0x12   : > { %s3956_s23 = sshll.u32 %s466_s22, 7  ;;  %s5254_s24 = sshll.u32 %s3829_s16, 11 }
  0x13   : > { %s5311_s7 = sld [smem:[#allocation49_spill]]  ;;  %s468_s28 = scalar_lea.vmem [#allocation5], %s3956_s23 }
  0x14   : > { %s475_s18 = sshll.u32 %s468_s28, 4  ;;  %p3967_p6 = pnand %p3498_p4, %p210_p5  ;;  %s3971_s18 = int_to_ptr.vmem [resolvable:$true] %s475_s18 }
  0x15   : > { %s3973_s22 = scalar_lea.sflag [#allocation6], %s464_s21 }
  0x16   : > { %p3681_p8 = pneg %p3967_p6 }
  0x19   : > { %s3964_s27 = scalar_lea.hbm %s5311_s7, %s5254_s24  ;;  %s3684_s28 = scalar_lea.hbm %s5311_s7, 4096 }
  0x1a   : > { %s3679_s20 = scalar_lea.hbm %s3964_s27, 2048  ;;  %p3685_p11 = scmp.lt.s32.totalorder %s3964_s27, %s5311_s7 }
  0x1b   : > { %p3680_p7 = scmp.ne.s32.totalorder %s3964_s27, %s3679_s20  ;;  %p3686_p12 = scmp.lt.s32.totalorder %s3684_s28, %s3679_s20 }
  0x1d   : > { %p3682_p9 = pnand %p3681_p8, %p3680_p7  ;;  %p3687_p13 = por %p3686_p12, %p3685_p11 }
  0x1f   : > { %p3683_p10 = pneg %p3682_p9 }
  0x21   : > { %p3688_p1 = pnand %p3687_p13, %p3683_p10 }
  0x23   : > { %3691 = shalt.err (!%p3688_p1)
}
  0x24   : > { %s3692_s21 = scalar_lea.vmem %s3971_s18, 2048  ;;  %s3831_s25 = smov [#allocation5]  }
  0x25   : > { %p3693_p2 = scmp.ne.s32.totalorder %s3971_s18, %s3692_s21  ;;  %s3697_s26 = sshll.u32 %s3831_s25, 4  ;;  %s3698_s26 = int_to_ptr.vmem [resolvable:$false] %s3697_s26 }
  0x26   : > { %s3699_s11 = scalar_lea.vmem %s3698_s26, 4096  ;;  %p3700_p7 = scmp.lt.s32.totalorder %s3971_s18, %s3698_s26 }
  0x27   : > { %p3695_p4 = pnand %p3693_p2, %p3681_p8  ;;  %p3701_p9 = scmp.lt.s32.totalorder %s3699_s11, %s3692_s21 }
  0x29   : > { %p3696_p5 = pneg %p3695_p4  ;;  %p3702_p3 = por %p3701_p9, %p3700_p7 }
  0x2b   : > { %p3703_p11 = pnand %p3702_p3, %p3696_p5 }
  0x2d   : > { %3706 = shalt.err (!%p3703_p11)
}
  0x2e   : > { %s5258_s17 = smov 128   ;;  %s5259_s20 = smov 8  }
  0x2f   : > { %3489 = dma.hbm_to_vmem [thread:$0]  (!%p3967_p6), %s3964_s27, 2048, %s3971_s18, %s3973_s22, %s5258_s17, %s5258_s17, %s5259_s20  }
  0x30   : > { %s5313_s11 = sshll.u32 %s3829_s16, 11  ;;  %s495_s25 = scalar_lea.vmem [#allocation7], %s3956_s23 }
  0x31   : > { %s4008_s21 = scalar_lea.hbm %s5248_s9, %s5313_s11  ;;  %s502_s26 = sshll.u32 %s495_s25, 4  ;;  %s4039_s26 = int_to_ptr.vmem [resolvable:$true] %s502_s26 }
  0x32   : > { %s4012_s7 = sadd.s32 4294967295, %s3829_s16   ;;  %s2860_s12 = sadd.s32 4294967294, %s3829_s16  }
  0x33   : > { %p214_p3 = scmp.ne.s32.totalorder %s3821_s30, %s3817_s29  ;;  %p5262_p10 = scmp.eq.s32.totalorder %s4012_s7, 0 }
  0x34   : > { %p316_p12 = scmp.eq.s32.totalorder %s4012_s7, 1  ;;  %p322_p13 = scmp.eq.s32.totalorder %s2860_s12, 1 }
  0x35   : > { %p4021_p1 = por %p5262_p10, %p214_p3  ;;  %p2861_p2 = scmp.ge.s32.totalorder %s3829_s16, 1 }
  0x36   : > { %p4029_p4 = por %p316_p12, %p208_p0  ;;  %p4033_p5 = por %p322_p13, %p214_p3 }
  0x37   : > { %s5314_s27 = scalar_select %p4021_p1, 1, 0 }
  0x38   : > { %s5315_s23 = scalar_select %p4029_p4, 1, 0 }
  0x39   : > { %s5316_s18 = scalar_select %p4033_p5, 1, 0 }
  0x3a   : > { %p407_p7 = scmp.lt.s32.totalorder %s3829_s16, 3  ;;  %s3834_s11 = smov [#allocation2]  }
  0x3b   : > { %5317 = sst [smem:[#allocation16_spill]] %s5316_s18  ;;  %s425_s24 = sshll.u32 %s3834_s11, 4  ;;  %s4047_s24 = int_to_ptr.vmem [resolvable:$true] %s425_s24 }
  0x3c   : > { %p4041_p11 = pnand %p2861_p2, %p407_p7  ;;  %s3707_s28 = scalar_lea.hbm %s4008_s21, 2048 }
  0x3d   : > { %p3708_p3 = scmp.ne.s32.totalorder %s4008_s21, %s3707_s28  ;;  %s3712_s20 = scalar_lea.hbm %s5248_s9, 4096 }
  0x3e   : > { %p3713_p2 = scmp.lt.s32.totalorder %s4008_s21, %s5248_s9  ;;  %p3714_p7 = scmp.lt.s32.totalorder %s3712_s20, %s3707_s28 }
  0x3f   : > { %p3710_p12 = pnand %p3708_p3, %p3681_p8 }
  0x40   : > { %p3715_p9 = por %p3714_p7, %p3713_p2 }
  0x41   : > { %p3711_p13 = pneg %p3710_p12 }
  0x43   : > { %p3716_p10 = pnand %p3715_p9, %p3711_p13 }
  0x45   : > { %3719 = shalt.err (!%p3716_p10)
}
  0x46   : > { %s3720_s11 = scalar_lea.vmem %s4039_s26, 2048  ;;  %s3835_s17 = smov [#allocation7]  }
  0x47   : > { %p3721_p0 = scmp.ne.s32.totalorder %s4039_s26, %s3720_s11  ;;  %s3725_s25 = sshll.u32 %s3835_s17, 4  ;;  %s3726_s25 = int_to_ptr.vmem [resolvable:$false] %s3725_s25 }
  0x48   : > { %s3727_s18 = scalar_lea.vmem %s3726_s25, 4096  ;;  %p3728_p5 = scmp.lt.s32.totalorder %s4039_s26, %s3726_s25 }
  0x49   : > { %p3723_p3 = pnand %p3721_p0, %p3681_p8  ;;  %p3729_p4 = scmp.lt.s32.totalorder %s3727_s18, %s3720_s11 }
  0x4b   : > { %p3724_p12 = pneg %p3723_p3  ;;  %p3730_p1 = por %p3729_p4, %p3728_p5 }
  0x4d   : > { %p3731_p2 = pnand %p3730_p1, %p3724_p12 }
  0x4f   : > { %3734 = shalt.err (!%p3731_p2)
}
  0x50   : > { %s5319_s15 = smov 8   ;;  %s5320_s16 = smov 128  }
  0x51   : > { %3492 = dma.hbm_to_vmem [thread:$0]  (!%p3967_p6), %s4008_s21, 2048, %s4039_s26, %s3973_s22, %s5320_s16, %s5320_s16, %s5319_s15  }
  0x52   : > { %p5321_p8 = scmp.eq.s32.totalorder %s4012_s7, 0  ;;  %p5322_p10 = pneg %p4041_p11 }
  0x53   : > { %s3746_s20 = scalar_lea.vmem %s4047_s24, 6144  ;;  %p3754_p13 = scmp.lt.s32.totalorder %s4047_s24, %s4047_s24 }
  0x54   : > { %p3483_p4 = pnand %p5322_p10, %p5321_p8  ;;  %p3747_p5 = scmp.ne.s32.totalorder %s4047_s24, %s3746_s20 }
  0x55   : > { %p3755_p7 = scmp.lt.s32.totalorder %s3746_s20, %s3746_s20 }
  0x56   : > { %p3737_p1 = pneg %p3483_p4 }
  0x57   : > { %p3756_p3 = por %p3755_p7, %p3754_p13 }
  0x58   : > { %p3749_p9 = pnand %p3747_p5, %p3737_p1 }
  0x5a   : > { %p3750_p0 = pneg %p3749_p9 }
  0x5c   : > { %p3757_p12 = pnand %p3756_p3, %p3750_p0 }
  0x5e   : > { %3760 = shalt.err (!%p3757_p12)
}
  0x5f   : > { %s3836_s19 = smov 384   ;;  %s3837_s18 = smov 24  }
  0x60   : > { %3485 = dma.hbm_to_vmem [thread:$0]  (!%p3483_p4), %s5244_s5, 6144, %s4047_s24, [#allocation3], %s3836_s19, %s3836_s19, %s3837_s18  }
  0x61   : > { %520 = sbr.rel (%p4041_p11) target bundleno = 3205 (0xc85), region = 64 }
  0x66   : > { %p5323_p6 = scmp.eq.s32.totalorder %s4012_s7, 0 }
  0x68   : > { %3804 = dma.done.wait (%p5323_p6), [#allocation3], 6144   ;;  %p5324_p2 = pmov %p5323_p6 }
  0x69   : > { %s526_s21 = sand.u32 1, %s4012_s7   ;;  %s4096_s26 = sand.u32 1, %s3821_s30  }
  0x6a   : > { %3806 = vsyncadd (%p5324_p2), [#allocation3], 4294961152  ;;  %s5266_s11 = sshll.u32 %s4096_s26, 7  ;;  %s527_s17 = scalar_lea.sflag [#allocation6], %s526_s21 }
  0x6b   : > { %s4101_s24 = scalar_lea.vmem [#allocation5], %s5266_s11  ;;  %p5325_p11 = scmp.ne.s32.totalorder %s5314_s27, 0 }
  0x6d   : > { %3808 = dma.done.wait (%p5325_p11), %s527_s17, 4096  }
  0x6e   : > { %3810 = vsyncadd (%p5325_p11), %s527_s17, 4294963200  ;;  %p618_p8 = scmp.lt.s32.totalorder %s4012_s7, 1  ;;  %v5270_v0 = vmov 0.0   ;;  %v5268_v1 = vmov 0   ;;  %v659_v2 = vld [vmem:[%s5242_s3 + $0x20] sm:$0xff]  ;;  %v658_v3 = vld [vmem:[%s5242_s3 + $0x18] sm:$0xff] }
  0x6f   : > { %767 = vmatprep.mubr.f32.mxu0 %v5270_v0  ;;  %3541 = vset.pattern.permute.xlu0 %v5268_v1  ;;  %v656_v4 = vld [vmem:[%s5242_s3 + $0x8] sm:$0xff]  ;;  %v655_v5 = vld [vmem:[%s5242_s3] sm:$0xff]  ;;  %vm678_vm0 = vcmask 130048   ;;  %v4133_v7 = vld [vmem:[#allocation2 + $0x170] sm:$0xff]  ;;  %vm3840_vm5 = vmmov 0   ;;  %s5413_s16 = sshll.u32 %s4096_s26, 7 }
  0x70   : > { %s4111_s12 = scalar_select %p618_p8, %s4012_s7, 1  ;;  %3542 = vset.pattern.permute.xlu1 %v5268_v1  ;;  %731 = vmatprep.subr.mxu0 %v659_v2  ;;  %5326 = vst [vmem:[#allocation17_spill] sm:$0xff] %v4133_v7  ;;  %v4136_v8 = vld [vmem:[#allocation2 + $0x168] sm:$0xff]  ;;  %v4138_v9 = vld [vmem:[#allocation2 + $0x158] sm:$0xff]  ;;  %v4142_v10 = vld [vmem:[#allocation2 + $0x150] sm:$0xff] }
  0x71   : > { %732 = vmatpush1.msra.mxu0 %v658_v3  ;;  %v4147_v12 = vld [vmem:[#allocation2 + $0x140] sm:$0xff]  ;;  %v4150_v13 = vld [vmem:[#allocation2 + $0x138] sm:$0xff]  ;;  %v4153_v14 = vld [vmem:[#allocation2 + $0x128] sm:$0xff]  ;;  %s5124_s19 = scalar_lea.vmem [#allocation7], %s5413_s16  ;;  %s2874_s17 = sshll.u32 %s4096_s26, 3 }
  0x72   : > { %s2925_s25 = sshll.u32 %s4111_s12, 6  ;;  %733 = vmatprep.subr.mxu0 %v656_v4  ;;  %v4157_v15 = vld [vmem:[#allocation2 + $0x120] sm:$0xff]  ;;  %v4164_v17 = vld [vmem:[#allocation2 + $0x110] sm:$0xff]  ;;  %v4167_v18 = vld [vmem:[#allocation2 + $0x108] sm:$0xff]  ;;  %s4237_s20 = sshll.u32 %s4111_s12, 3 }
  0x73   : > { %s4118_s27 = scalar_lea.vmem %s5239_s0, %s2925_s25  ;;  %734 = vmatpush1.msra.mxu0 %v655_v5  ;;  %v4170_v19 = vld [vmem:[#allocation2 + $0xf8] sm:$0xff]  ;;  %v4175_v20 = vld [vmem:[#allocation2 + $0xf0] sm:$0xff]  ;;  %v660_v21 = vld [vmem:[%s5242_s3 + $0x28] sm:$0xff]  ;;  %s626_s28 = scalar_lea.vmem %s5240_s1, %s4237_s20 }
  0x74   : > { %v647_v6 = vld [vmem:[%s4118_s27] sm:$0xff]  ;;  %987 = vmatprep.subr.mxu0 %v4133_v7  ;;  %v648_v11 = vld [vmem:[%s4118_s27 + $0x8] sm:$0xff]  ;;  %v4162_v16 = vld [vmem:[%s4118_s27 + $0x10] sm:$0xff]  ;;  %3106 = vmatprep.subr.mxu1 %v660_v21  ;;  %s630_s15 = scalar_lea.vmem %s5241_s2, %s4237_s20  ;;  %s636_s21 = scalar_lea.vmem %s5249_s10, %s4111_s12 }
  0x75   : > { %3110 = vmatprep.mubr.msk.f32.mxu1 %vm678_vm0, %v647_v6  ;;  %2880 = vmatmul.mubr.msk.f32.vlgmr.msra.gmra.mxu0 %vm678_vm0, %v647_v6  ;;  %v4183_v22 = vld [vmem:[%s4118_s27 + $0x18] sm:$0xff]  ;;  %v4185_v23 = vld [vmem:[#allocation2 + $0xe0] sm:$0xff]  ;;  %v4191_v25 = vld [vmem:[#allocation2 + $0xc8] sm:$0xff]  ;;  %s5174_s11 = scalar_lea.vmem [#allocation8], %s2874_s17  ;;  %s5183_s16 = scalar_lea.vmem %s5253_s14, %s4111_s12 }
  0x76   : > { %988 = vmatpush1.msra.mxu0 %v4136_v8  ;;  %773 = vmatprep.mubr.f32.mxu0 %v5270_v0  ;;  %v4188_v24 = vld [vmem:[#allocation2 + $0xd8] sm:$0xff]  ;;  %v657_v26 = vld [vmem:[%s5242_s3 + $0x10] sm:$0xff]  ;;  %v4199_v27 = vld [vmem:[#allocation2 + $0xc0] sm:$0xff]  ;;  %s643_s18 = scalar_lea.vmem %s5252_s13, %s4111_s12  ;;  %s5419_s22 = sld [smem:[#allocation51_spill]] }
  0x77   : > { %989 = vmatprep.subr.mxu0 %v4138_v9  ;;  %3107 = vmatpush3.msra.mxu1 %v660_v21  ;;  %v4204_v28 = vld [vmem:[%s4118_s27 + $0x20] sm:$0xff]  ;;  %v4206_v29 = vld [vmem:[#allocation2 + $0xb0] sm:$0xff]  ;;  %v4209_v30 = vld [vmem:[#allocation2 + $0xa8] sm:$0xff]  ;;  %p5420_p10 = scmp.ne.s32.totalorder %s4012_s7, 0 }
  0x78   : > { %990 = vmatpush1.msra.mxu0 %v4142_v10  ;;  %3108 = vmatprep.subr.mxu1 %v657_v26  ;;  %v4212_v31 = vld [vmem:[#allocation2 + $0x98] sm:$0xff]  ;;  %v4217_v32 = vld [vmem:[#allocation2 + $0x90] sm:$0xff]  ;;  %v4222_v33 = vld [vmem:[%s4118_s27 + $0x28] sm:$0xff] }
  0x79   : > { %2881 = vmatmul.mubr.msk.f32.gmra.mxu0 %vm678_vm0, %v648_v11  ;;  %991 = vmatprep.subr.mxu0 %v4147_v12  ;;  %v4224_v34 = vld [vmem:[#allocation2 + $0x80] sm:$0xff]  ;;  %v4227_v35 = vld [vmem:[#allocation2 + $0x78] sm:$0xff]  ;;  %v4231_v36 = vld [vmem:[#allocation2 + $0x68] sm:$0xff] }
  0x7a   : > { %992 = vmatpush1.msra.mxu0 %v4150_v13  ;;  %779 = vmatprep.mubr.f32.mxu0 %v5270_v0  ;;  %v4234_v37 = vld [vmem:[#allocation2 + $0x178] sm:$0xff]  ;;  %v4242_v38 = vld [vmem:[#allocation2 + $0x60] sm:$0xff]  ;;  %v4247_v39 = vld [vmem:[%s4118_s27 + $0x30] sm:$0xff] }
  0x7b   : > { %993 = vmatprep.subr.mxu0 %v4153_v14  ;;  %3109 = vmatpush3.msra.mxu1 %v657_v26  ;;  %v4249_v40 = vld [vmem:[#allocation2 + $0x50] sm:$0xff]  ;;  %v4252_v41 = vld [vmem:[#allocation2 + $0x48] sm:$0xff]  ;;  %v4260_v42 = vld [vmem:[#allocation2 + $0x38] sm:$0xff] }
  0x7c   : > { %994 = vmatpush1.msra.mxu0 %v4157_v15  ;;  %3122 = vmatprep.subr.mxu1 %v5270_v0  ;;  %v4263_v43 = vld [vmem:[#allocation2 + $0x160] sm:$0xff]  ;;  %v4268_v44 = vld [vmem:[#allocation2 + $0x30] sm:$0xff]  ;;  %v654_v45 = vld [vmem:[%s4118_s27 + $0x38] sm:$0xff] }
  0x7d   : > { %2882 = vmatmul.mubr.msk.f32.gmra.mxu0 %vm678_vm0, %v4162_v16  ;;  %995 = vmatprep.subr.mxu0 %v4164_v17  ;;  %v4273_v46 = vld [vmem:[#allocation2 + $0x20] sm:$0xff]  ;;  %v4278_v48 = vld [vmem:[#allocation2 + $0x18] sm:$0xff]  ;;  %v4282_v49 = vld [vmem:[#allocation2 + $0x8] sm:$0xff] }
  0x7e   : > { %996 = vmatpush1.msra.mxu0 %v4167_v18  ;;  %785 = vmatprep.mubr.f32.mxu0 %v5270_v0  ;;  %5327 = vst [vmem:[#allocation18_spill] sm:$0xff] %v4273_v46  ;;  %v4275_v47 = vld [vmem:[%s626_s28] sm:$0xff]  ;;  %5329 = vst [vmem:[#allocation20_spill] sm:$0xff] %v4278_v48  ;;  %v4285_v50 = vld [vmem:[#allocation2 + $0x148] sm:$0xff]  ;;  %s633_s28 = scalar_lea.vmem %s5247_s8, %s4111_s12 }
  0x7f   : > { %997 = vmatprep.subr.mxu0 %v4170_v19  ;;  %3111 = vmatmul.mubr.msk.f32.vlgmr.msra.gmra.mxu1 %vm678_vm0, %v648_v11  ;;  %5328 = vst [vmem:[#allocation19_spill] sm:$0xff] %v4275_v47  ;;  %5330 = vst [vmem:[#allocation21_spill] sm:$0xff] %v4282_v49  ;;  %v4289_v51 = vld [vmem:[#allocation2] sm:$0xff]  ;;  %vm1149_vm1 = vcmp.gt.s32.totalorder %v4275_v47, 0  ;;  %v4294_v52 = vld [vmem:[#allocation2 + $0x130] sm:$0xff]  ;;  %vm1318_vm2 = vcmp.gt.s32.totalorder %v4275_v47, 1  ;;  %v5267_v11 = vlaneseq }
  0x80   : > { %998 = vmatpush1.msra.mxu0 %v4175_v20  ;;  %3123 = vmatpush3.msra.mxu1 %v4234_v37  ;;  %5331 = vst [vmem:[#allocation22_spill] sm:$0xff] %v4289_v51  ;;  %v4300_v53 = vld [vmem:[#allocation2 + $0x118] sm:$0xff]  ;;  %v1150_v54 = vsel %vm1149_vm1, 1, %v5268_v1  ;;  %v4307_v55 = vld [vmem:[#allocation2 + $0x100] sm:$0xff]  ;;  %v4313_v56 = vld [vmem:[#allocation2 + $0xe8] sm:$0xff]  ;;  %v1319_v57 = vsel %vm1318_vm2, 1, %v5268_v1 }
  0x81   : > { %2883 = vmatmul.mubr.msk.f32.gmra.mxu0 %vm678_vm0, %v4183_v22  ;;  %999 = vmatprep.subr.mxu0 %v4185_v23  ;;  %vm1825_vm3 = vcmp.gt.s32.totalorder %v4275_v47, 4  ;;  %v4323_v58 = vld [vmem:[#allocation2 + $0xd0] sm:$0xff]  ;;  %v4328_v59 = vld [vmem:[#allocation2 + $0xb8] sm:$0xff]  ;;  %vm2163_vm4 = vcmp.gt.s32.totalorder %v4275_v47, 6  ;;  %v4338_v61 = vld [vmem:[#allocation2 + $0xa0] sm:$0xff] }
  0x82   : > { %1000 = vmatpush1.msra.mxu0 %v4188_v24  ;;  %791 = vmatprep.mubr.f32.mxu0 %v5270_v0  ;;  %v1826_v60 = vsel %vm1825_vm3, 1, %v5268_v1  ;;  %v4343_v62 = vld [vmem:[#allocation2 + $0x88] sm:$0xff]  ;;  %v2164_v63 = vsel %vm2163_vm4, 1, %v5268_v1  ;;  %v4351_v2 = vld [vmem:[#allocation2 + $0x70] sm:$0xff]  ;;  %v4356_v3 = vld [vmem:[#allocation2 + $0x58] sm:$0xff]  ;;  %vm2581_vm4 = vcmask 0  }
  0x83   : > { %1001 = vmatprep.subr.mxu0 %v4191_v25  ;;  %3124 = vmatprep.subr.mxu1 %v5270_v0  ;;  %v4362_v4 = vld [vmem:[#allocation2 + $0x40] sm:$0xff]  ;;  %v4368_v5 = vld [vmem:[#allocation2 + $0x28] sm:$0xff]  ;;  %v4374_v6 = vld [vmem:[#allocation2 + $0x10] sm:$0xff] }
  0x84   : > { %1002 = vmatpush1.msra.mxu0 %v4199_v27  ;;  %3125 = vmatpush3.msra.mxu1 %v4263_v43  ;;  %5332 = vst [vmem:[#allocation23_spill] sm:$0xff] %v4362_v4  ;;  %5333 = vst [vmem:[#allocation24_spill] sm:$0xff] %v4368_v5 }
  0x85   : > { %2884 = vmatmul.mubr.msk.f32.gmra.mxu0 %vm678_vm0, %v4204_v28  ;;  %1003 = vmatprep.subr.mxu0 %v4206_v29  ;;  %5334 = vst [vmem:[#allocation25_spill] sm:$0xff] %v4374_v6 }
  0x86   : > { %1004 = vmatpush1.msra.mxu0 %v4209_v30  ;;  %797 = vmatprep.mubr.f32.mxu0 %v5270_v0 }
  0x87   : > { %1005 = vmatprep.subr.mxu0 %v4212_v31  ;;  %3126 = vmatprep.subr.mxu1 %v5270_v0 }
  0x88   : > { %1006 = vmatpush1.msra.mxu0 %v4217_v32  ;;  %3127 = vmatpush3.msra.mxu1 %v4285_v50 }
  0x89   : > { %2885 = vmatmul.mubr.msk.f32.gmra.mxu0 %vm678_vm0, %v4222_v33  ;;  %1007 = vmatprep.subr.mxu0 %v4224_v34 }
  0x8a   : > { %1008 = vmatpush1.msra.mxu0 %v4227_v35  ;;  %803 = vmatprep.mubr.f32.mxu0 %v5270_v0 }
  0x8b   : > { %1009 = vmatprep.subr.mxu0 %v4231_v36  ;;  %3128 = vmatprep.subr.mxu1 %v5270_v0 }
  0x8c   : > { %1010 = vmatpush1.msra.mxu0 %v4242_v38  ;;  %3129 = vmatpush3.msra.mxu1 %v4294_v52 }
  0x8d   : > { %2886 = vmatmul.mubr.msk.f32.gmra.mxu0 %vm678_vm0, %v4247_v39  ;;  %1011 = vmatprep.subr.mxu0 %v4249_v40 }
  0x8e   : > { %1012 = vmatpush1.msra.mxu0 %v4252_v41  ;;  %809 = vmatprep.mubr.f32.mxu0 %v5270_v0 }
  0x8f   : > { %1013 = vmatprep.subr.mxu0 %v4260_v42  ;;  %3130 = vmatprep.subr.mxu1 %v5270_v0 }
  0x90   : > { %1014 = vmatpush1.msra.mxu0 %v4268_v44  ;;  %3113 = vmatprep.mubr.msk.f32.mxu1 %vm678_vm0, %v4162_v16  ;;  %v4441_v16 = vshrl.u32 %v5267_v11, 7 }
  0x91   : > { %2887 = vmatmul.mubr.msk.f32.gmra.mxu0 %vm678_vm0, %v654_v45  ;;  %1015 = vmatprep.subr.mxu0 %v4273_v46 }
  0x92   : > { %1016 = vmatpush1.msra.mxu0 %v4278_v48  ;;  %1051 = vmatprep.mubr.f32.mxu0 %v5270_v0  ;;  %5335 = vst [vmem:[#allocation26_spill] sm:$0xff] %v4441_v16  ;;  %v665_v21 = vsub.s32 0, %v4441_v16 }
  0x93   : > { %1017 = vmatprep.subr.mxu0 %v4282_v49  ;;  %3131 = vmatpush3.msra.mxu1 %v4300_v53 }
  0x94   : > { %1018 = vmatpush1.msra.mxu0 %v4289_v51  ;;  %1152 = vperm.xlu0 %3541, %v1150_v54  }
  0x95   : > { %1052 = vmatmul.mubr.f32.vlgmr.msra.gmra.mxu0 %v5270_v0  ;;  %3132 = vmatprep.subr.mxu1 %v5270_v0 }
  0x96   : > { %3114 = vmatmul.mubr.msk.f32.gmra.mxu1 %vm678_vm0, %v4183_v22  ;;  %1156 = vmatprep.subr.mxu0 %v4133_v7  ;;  %v661_v22 = vld [vmem:[%s5243_s4] sm:$0x7] }
  0x97   : > { %3133 = vmatpush3.msra.mxu1 %v4307_v55  ;;  %3116 = vmatprep.mubr.msk.f32.mxu1 %vm678_vm0, %v4204_v28  ;;  %v669_v28 = vsub.s32 1, %v4441_v16 }
  0x98   : > { %3134 = vmatprep.subr.mxu1 %v5270_v0  ;;  %1321 = vperm.xlu0 %3541, %v1319_v57  }
  0x99   : > { %3135 = vmatpush3.msra.mxu1 %v4313_v56  ;;  %1157 = vmatpush1.msra.mxu0 %v4136_v8  ;;  %v670_v54 = vrot.slane %v661_v22, %v669_v28 }
  0x9a   : > { %3136 = vmatprep.subr.mxu1 %v5270_v0  ;;  %3117 = vmatmul.mubr.msk.f32.gmra.mxu1 %vm678_vm0, %v4222_v33 }
  0x9b   : > { %3137 = vmatpush3.msra.mxu1 %v4323_v58  ;;  %3119 = vmatprep.mubr.msk.f32.mxu1 %vm678_vm0, %v4247_v39  ;;  %v666_v39 = vrot.slane %v661_v22, %v665_v21 }
  0x9c   : > { %3138 = vmatprep.subr.mxu1 %v5270_v0  ;;  %1828 = vperm.xlu0 %3541, %v1826_v60  }
  0x9d   : > { %3139 = vmatpush3.msra.mxu1 %v4328_v59  ;;  %1158 = vmatprep.subr.mxu0 %v4138_v9 }
  0x9e   : > { %3140 = vmatprep.subr.mxu1 %v5270_v0  ;;  %3120 = vmatmul.mubr.msk.f32.gmra.mxu1 %vm678_vm0, %v654_v45 }
  0x9f   : > { %3141 = vmatpush3.msra.mxu1 %v4338_v61  ;;  %3154 = vmatprep.mubr.msk.f32.mxu1 %vm3840_vm5, %v5270_v0 }
  0xa0   : > { %3142 = vmatprep.subr.mxu1 %v5270_v0  ;;  %2166 = vperm.xlu0 %3541, %v2164_v63  }
  0xa1   : > { %3143 = vmatpush3.msra.mxu1 %v4343_v62  ;;  %1159 = vmatpush1.msra.mxu0 %v4142_v10 }
  0xa2   : > { %3144 = vmatprep.subr.mxu1 %v5270_v0  ;;  %1160 = vmatprep.subr.mxu0 %v4147_v12 }
  0xa3   : > { %3145 = vmatpush3.msra.mxu1 %v4351_v2  ;;  %1161 = vmatpush1.msra.mxu0 %v4150_v13 }
  0xa4   : > { %3146 = vmatprep.subr.mxu1 %v5270_v0  ;;  %1162 = vmatprep.subr.mxu0 %v4153_v14 }
  0xa5   : > { %3147 = vmatpush3.msra.mxu1 %v4356_v3  ;;  %1163 = vmatpush1.msra.mxu0 %v4157_v15 }
  0xa6   : > { %3148 = vmatprep.subr.mxu1 %v5270_v0  ;;  %1164 = vmatprep.subr.mxu0 %v4164_v17 }
  0xa7   : > { %3149 = vmatpush3.msra.mxu1 %v4362_v4  ;;  %1165 = vmatpush1.msra.mxu0 %v4167_v18 }
  0xa8   : > { %3150 = vmatprep.subr.mxu1 %v5270_v0  ;;  %1166 = vmatprep.subr.mxu0 %v4170_v19 }
  0xa9   : > { %3151 = vmatpush3.msra.mxu1 %v4368_v5  ;;  %1167 = vmatpush1.msra.mxu0 %v4175_v20 }
  0xaa   : > { %3152 = vmatprep.subr.mxu1 %v5270_v0  ;;  %1168 = vmatprep.subr.mxu0 %v4185_v23 }
  0xab   : > { %3153 = vmatpush3.msra.mxu1 %v4374_v6  ;;  %1169 = vmatpush1.msra.mxu0 %v4188_v24 }
  0xac   : > { %3155 = vmatmul.mubr.f32.vlgmr.msra.gmra.mxu1 %v5270_v0  ;;  %3157 = vmatprep.subr.mxu1 %v5270_v0 }
  0xad   : > { %3158 = vmatpush3.msra.mxu1 %v4234_v37  ;;  %1170 = vmatprep.subr.mxu0 %v4191_v25 }
  0xae   : > { %3159 = vmatprep.subr.mxu1 %v5270_v0  ;;  %1171 = vmatpush1.msra.mxu0 %v4199_v27 }
  0xaf   : > { %3160 = vmatpush3.msra.mxu1 %v4263_v43  ;;  %1172 = vmatprep.subr.mxu0 %v4206_v29 }
  0xb0   : > { %3161 = vmatprep.subr.mxu1 %v5270_v0  ;;  %1173 = vmatpush1.msra.mxu0 %v4209_v30 }
  0xb1   : > { %3162 = vmatpush3.msra.mxu1 %v4285_v50  ;;  %1174 = vmatprep.subr.mxu0 %v4212_v31 }
  0xb2   : > { %3163 = vmatprep.subr.mxu1 %v5270_v0  ;;  %1175 = vmatpush1.msra.mxu0 %v4217_v32 }
  0xb3   : > { %3164 = vmatpush3.msra.mxu1 %v4294_v52  ;;  %1176 = vmatprep.subr.mxu0 %v4224_v34 }
  0xb4   : > { %3165 = vmatprep.subr.mxu1 %v5270_v0  ;;  %1177 = vmatpush1.msra.mxu0 %v4227_v35 }
  0xb5   : > { %3166 = vmatpush3.msra.mxu1 %v4300_v53  ;;  %1178 = vmatprep.subr.mxu0 %v4231_v36 }
  0xb6   : > { %3167 = vmatprep.subr.mxu1 %v5270_v0  ;;  %1179 = vmatpush1.msra.mxu0 %v4242_v38 }
  0xb7   : > { %3168 = vmatpush3.msra.mxu1 %v4307_v55  ;;  %1180 = vmatprep.subr.mxu0 %v4249_v40 }
  0xb8   : > { %3169 = vmatprep.subr.mxu1 %v5270_v0  ;;  %1181 = vmatpush1.msra.mxu0 %v4252_v41 }
  0xb9   : > { %3170 = vmatpush3.msra.mxu1 %v4313_v56  ;;  %1182 = vmatprep.subr.mxu0 %v4260_v42 }
  0xba   : > { %3171 = vmatprep.subr.mxu1 %v5270_v0  ;;  %1183 = vmatpush1.msra.mxu0 %v4268_v44 }
  0xbb   : > { %3172 = vmatpush3.msra.mxu1 %v4323_v58  ;;  %1184 = vmatprep.subr.mxu0 %v4273_v46 }
  0xbc   : > { %3173 = vmatprep.subr.mxu1 %v5270_v0  ;;  %1185 = vmatpush1.msra.mxu0 %v4278_v48 }
  0xbd   : > { %3174 = vmatpush3.msra.mxu1 %v4328_v59  ;;  %1186 = vmatprep.subr.mxu0 %v4282_v49 }
  0xbe   : > { %3175 = vmatprep.subr.mxu1 %v5270_v0  ;;  %1187 = vmatpush1.msra.mxu0 %v4289_v51 }
  0xbf   : > { %3176 = vmatpush3.msra.mxu1 %v4338_v61  ;;  %1220 = vmatprep.mubr.f32.mxu0 %v5270_v0 }
  0xc0   : > { %3177 = vmatprep.subr.mxu1 %v5270_v0  ;;  %3189 = vmatprep.mubr.msk.f32.mxu1 %vm3840_vm5, %v5270_v0 }
  0xc1   : > { %3178 = vmatpush3.msra.mxu1 %v4343_v62  ;;  %1325 = vmatprep.subr.mxu0 %v4133_v7 }
  0xc2   : > { %3179 = vmatprep.subr.mxu1 %v5270_v0 }
  0xc3   : > { %3180 = vmatpush3.msra.mxu1 %v4351_v2 }
  0xc4   : > { %3181 = vmatprep.subr.mxu1 %v5270_v0 }
  0xc5   : > { %3182 = vmatpush3.msra.mxu1 %v4356_v3 }
  0xc6   : > { %3183 = vmatprep.subr.mxu1 %v5270_v0 }
  0xc7   : > { %3184 = vmatpush3.msra.mxu1 %v4362_v4 }
  0xc8   : > { %3185 = vmatprep.subr.mxu1 %v5270_v0 }
  0xc9   : > { %3186 = vmatpush3.msra.mxu1 %v4368_v5 }
  0xca   : > { %3187 = vmatprep.subr.mxu1 %v5270_v0 }
  0xcb   : > { %3188 = vmatpush3.msra.mxu1 %v4374_v6  ;;  %v673_v6 = vsub.s32 2, %v4441_v16 }
  0xcc   : > { %3192 = vmatprep.subr.mxu1 %v5270_v0 }
 0x135   : > { %v769_v26 = vpop.f32.mrf.mxu0 }
 0x137   : > { %v771_v33 = vpop.f32.mrf.mxu0 }
 0x139   : > { %v775_v45 = vpop.f32.mrf.mxu0 }
 0x13a   : > { %v4448_v57 = vadd.f32 %v775_v45, %v666_v39  ;;  %v674_v45 = vrot.slane %v661_v22, %v673_v6 }
 0x13b   : > { %v777_v60 = vpop.f32.mrf.mxu0 }
 0x13c   : > { %5336 = vst [vmem:[#allocation27_spill] sm:$0xff] %v4448_v57  ;;  %v4450_v63 = vadd.f32 %v777_v60, %v670_v54 }
 0x13d   : > { %v781_v11 = vpop.f32.mrf.mxu0 }
 0x13e   : > { %5337 = vst [vmem:[#allocation28_spill] sm:$0xff] %v4450_v63  ;;  %v4452_v1 = vadd.f32 %v781_v11, %v666_v39 }
 0x13f   : > { %v783_v0 = vpop.f32.mrf.mxu0  ;;  %v3112_v11 = vpop.f32.mrf.mxu1 }
 0x140   : > { %5338 = vst [vmem:[#allocation29_spill] sm:$0xff] %v4452_v1  ;;  %v4454_v47 = vadd.f32 %v783_v0, %v670_v54  ;;  %v4465_v46 = vadd.f32 %v3112_v11, %v674_v45 }
 0x141   : > { %v787_v7 = vpop.f32.mrf.mxu0 }
 0x142   : > { %5339 = vst [vmem:[#allocation30_spill] sm:$0xff] %v4454_v47  ;;  %v4457_v51 = vadd.f32 %v787_v7, %v666_v39  ;;  %5344 = vst [vmem:[#allocation35_spill] sm:$0xff] %v4465_v46 }
 0x143   : > { %v789_v49 = vpop.f32.mrf.mxu0 }
 0x144   : > { %5340 = vst [vmem:[#allocation31_spill] sm:$0xff] %v4457_v51  ;;  %v4459_v5 = vadd.f32 %v789_v49, %v670_v54 }
 0x145   : > { %v793_v48 = vpop.f32.mrf.mxu0 }
 0x146   : > { %5341 = vst [vmem:[#allocation32_spill] sm:$0xff] %v4459_v5  ;;  %v4461_v57 = vadd.f32 %v793_v48, %v666_v39  ;;  %v969_v48 = vld [vmem:[%s5245_s6] sm:$0x7] }
 0x147   : > { %v795_v60 = vpop.f32.mrf.mxu0  ;;  %v4480_v11 = vrot.slane %v969_v48, %v665_v21 }
 0x148   : > { %5342 = vst [vmem:[#allocation33_spill] sm:$0xff] %v4461_v57  ;;  %v4463_v63 = vadd.f32 %v795_v60, %v670_v54  ;;  %v882_v57 = vpop.f32.mrf.mxu1 }
 0x149   : > { %v799_v1 = vpop.f32.mrf.mxu0  ;;  %5350 = vst [vmem:[#allocation41_spill] sm:$0xff] %v4480_v11 }
 0x14a   : > { %5343 = vst [vmem:[#allocation34_spill] sm:$0xff] %v4463_v63  ;;  %v4467_v0 = vadd.f32 %v799_v1, %v666_v39 }
 0x14b   : > { %v801_v47 = vpop.f32.mrf.mxu0 }
 0x14c   : > { %5345 = vst [vmem:[#allocation36_spill] sm:$0xff] %v4467_v0  ;;  %v4469_v16 = vadd.f32 %v801_v47, %v670_v54 }
 0x14d   : > { %v805_v7 = vpop.f32.mrf.mxu0 }
 0x14e   : > { %5346 = vst [vmem:[#allocation37_spill] sm:$0xff] %v4469_v16  ;;  %v4471_v51 = vadd.f32 %v805_v7, %v666_v39  ;;  %v770_v16 = vadd.f32 %v769_v26, %v666_v39 }
 0x14f   : > { %v807_v49 = vpop.f32.mrf.mxu0 }
 0x150   : > { %5347 = vst [vmem:[#allocation38_spill] sm:$0xff] %v4471_v51  ;;  %v4476_v22 = vadd.f32 %v807_v49, %v670_v54  ;;  %v4485_v51 = vrot.slane %v969_v48, %v669_v28 }
 0x151   : > { %v811_v60 = vpop.f32.mrf.mxu0 }
 0x152   : > { %5348 = vst [vmem:[#allocation39_spill] sm:$0xff] %v4476_v22  ;;  %v4478_v63 = vadd.f32 %v811_v60, %v666_v39 }
 0x153   : > { %v813_v1 = vpop.f32.mrf.mxu0 }
 0x154   : > { %5349 = vst [vmem:[#allocation40_spill] sm:$0xff] %v4478_v63  ;;  %v4482_v0 = vadd.f32 %v813_v1, %v670_v54  ;;  %v772_v1 = vadd.f32 %v771_v33, %v670_v54 }
 0x155   : > { %v1053_v47 = vpop.f32.mrf.mxu0 }
 0x156   : > { %5351 = vst [vmem:[#allocation42_spill] sm:$0xff] %v4482_v0  ;;  %v1054_v7 = vadd.f32 %v1053_v47, %v4480_v11  ;;  %v3115_v4 = vpop.f32.mrf.mxu1 }
 0x157   : > { %v1055_v5 = vpop.f32.mrf.mxu0  ;;  %v4487_v49 = vadd.f32 %v3115_v4, %v674_v45 }
 0x158   : > { %v1128_v46 = vadd.f32 %v1054_v7, %v770_v16  ;;  %v1056_v60 = vadd.f32 %v1055_v5, %v4485_v51  ;;  %v892_v21 = vpop.f32.mrf.mxu1 }
 0x159   : > { %5352 = vst [vmem:[#allocation43_spill] sm:$0xff] %v4487_v49  ;;  %v4490_v63 = vadd.f32 %v892_v21, %v674_v45  ;;  %v5370_v49 = vld [vmem:[#allocation27_spill] sm:$0xff] }
 0x15a   : > { %v2896_v22 = vmul.f32 -1.442695, %v1128_v46  ;;  %v3118_v0 = vpop.f32.mrf.mxu1  ;;  %v1135_v39 = vadd.f32 %v1056_v60, %v772_v1 }
 0x15b   : > { %5353 = vst [vmem:[#allocation44_spill] sm:$0xff] %v4490_v63  ;;  %v4492_v26 = vadd.f32 %v3118_v0, %v674_v45 }
 0x15c   : > { %3543 = vpow2.f32 %v2896_v22  ;;  %v902_v28 = vpop.f32.mrf.mxu1  ;;  %v2897_v4 = vmul.f32 -1.442695, %v1135_v39  ;;  %v4500_v22 = vrot.slane %v969_v48, %v673_v6  ;;  %v5360_v48 = vld [vmem:[#allocation18_spill] sm:$0xff] }
 0x15d   : > { %5354 = vst [vmem:[#allocation45_spill] sm:$0xff] %v4492_v26  ;;  %v4494_v47 = vadd.f32 %v902_v28, %v674_v45  ;;  %v1153_v26 = vpop.permute.xlu0 %1152 }
 0x15e   : > { %v3121_v11 = vpop.f32.mrf.mxu1  ;;  %3545 = vpow2.f32 %v2897_v4  ;;  %vm1154_vm6 = vcmp.eq.s32.totalorder %v1153_v26, 1  ;;  %v5361_v26 = vld [vmem:[#allocation20_spill] sm:$0xff] }
 0x15f   : > { %5355 = vst [vmem:[#allocation46_spill] sm:$0xff] %v4494_v47  ;;  %v4496_v16 = vadd.f32 %v3121_v11, %v674_v45  ;;  %v883_v11 = vadd.f32 %v882_v57, %v674_v45  ;;  %v5358_v57 = vmov 0.0  }
 0x160   : > { %v912_v7 = vpop.f32.mrf.mxu1  ;;  %2583 = vst.msk [vmem:[%s5183_s16] sm:$0x1] %vm2581_vm4, %v5358_v57 }
 0x161   : > { %5356 = vst [vmem:[#allocation47_spill] sm:$0xff] %v4496_v16  ;;  %v4498_v46 = vadd.f32 %v912_v7, %v674_v45  ;;  %v5359_v45 = vld [vmem:[#allocation23_spill] sm:$0xff] }
 0x163   : > { %5357 = vst [vmem:[#allocation48_spill] sm:$0xff] %v4498_v46 }
 0x169   : > { %v3544_v5 = vpop.eup %3543 }
 0x16a   : > { %v1132_v21 = vadd.f32 1.0, %v3544_v5 }
 0x16b   : > { %v3546_v0 = vpop.eup %3545 }
 0x16c   : > { %3547 = vrcp.f32 %v1132_v21  ;;  %v1124_v33 = vpop.f32.mrf.mxu1  ;;  %v1139_v60 = vadd.f32 1.0, %v3546_v0  ;;  %v5365_v0 = vld [vmem:[#allocation25_spill] sm:$0xff] }
 0x16d   : > { %v1125_v1 = vadd.f32 %v1124_v33, %v4500_v22  ;;  %v5364_v33 = vld [vmem:[#allocation22_spill] sm:$0xff] }
 0x16e   : > { %v3156_v54 = vpop.f32.mrf.mxu1  ;;  %3549 = vrcp.f32 %v1139_v60  ;;  %v5366_v60 = vld [vmem:[#allocation17_spill] sm:$0xff] }
 0x179   : > { %v3548_v28 = vpop.eup %3547 }
 0x17a   : > { %v1142_v16 = vmul.f32 %v3548_v28, %v1125_v1  ;;  %v5367_v1 = vld [vmem:[#allocation19_spill] sm:$0xff]  ;;  %v5368_v28 = vmov 0  }
 0x17b   : > { %v3550_v7 = vpop.eup %3549  ;;  %vm1487_vm7 = vcmp.gt.s32.totalorder %v5367_v1, 2  ;;  %vm1656_vm8 = vcmp.gt.s32.totalorder %v5367_v1, 3  ;;  %vm1994_vm9 = vcmp.gt.s32.totalorder %v5367_v1, 5  ;;  %vm2332_vm10 = vcmp.gt.s32.totalorder %v5367_v1, 7 }
 0x17c   : > { %v1143_v39 = vadd.f32 %v1142_v16, %v883_v11  ;;  %v1145_v46 = vsub.f32 1.0, %v3550_v7  ;;  %v1147_v21 = vmul.f32 0.0, %v3550_v7  ;;  %v5362_v16 = vld [vmem:[#allocation24_spill] sm:$0xff]  ;;  %v1488_v11 = vsel %vm1487_vm7, 1, %v5368_v28 }
 0x17d   : > { %1490 = vperm.xlu1 %3542, %v1488_v11   ;;  %v1995_v7 = vsel %vm1994_vm9, 1, %v5368_v28  ;;  %vm2547_vm7 = vcmask 7168  }
 0x17e   : > { %3551 = vtanh.f32 %v1143_v39  ;;  %v1657_v39 = vsel %vm1656_vm8, 1, %v5368_v28 }
 0x181   : > { %1659 = vperm.xlu1 %3542, %v1657_v39  }
 0x185   : > { %1997 = vperm.xlu1 %3542, %v1995_v7  }
 0x18b   : > { %v3552_v4 = vpop.eup %3551 }
 0x18c   : > { %v1146_v5 = vmul.f32 %v3552_v4, %v1145_v46  ;;  %v5363_v46 = vld [vmem:[#allocation21_spill] sm:$0xff]  ;;  %v2333_v4 = vsel %vm2332_vm10, 1, %v5368_v28 }
 0x18d   : > { %2335 = vperm.xlu1 %3542, %v2333_v4  }
 0x18e   : > { %v1148_v54 = vadd.f32 %v1147_v21, %v1146_v5  ;;  %v2554_v5 = vld [vmem:[%s630_s15] sm:$0xff] }
 0x190   : > { %v4503_v6 = vsel %vm1154_vm6, %v1148_v54, 0.0  ;;  %2898 = vmatmul.mubr.msk.f32.vlgmr.msra.gmra.mxu0 %vm1154_vm6, %v1148_v54  ;;  %3190 = vmatmul.mubr.msk.f32.vlgmr.msra.gmra.mxu1 %vm1154_vm6, %v1148_v54 }
 0x191   : > { %1326 = vmatpush1.msra.mxu0 %v4136_v8  ;;  %3193 = vmatpush3.msra.mxu1 %v4234_v37 }
 0x192   : > { %1327 = vmatprep.subr.mxu0 %v4138_v9  ;;  %3194 = vmatprep.subr.mxu1 %v5358_v57 }
 0x193   : > { %1328 = vmatpush1.msra.mxu0 %v4142_v10  ;;  %3195 = vmatpush3.msra.mxu1 %v4263_v43 }
 0x194   : > { %1329 = vmatprep.subr.mxu0 %v4147_v12  ;;  %3196 = vmatprep.subr.mxu1 %v5358_v57 }
 0x195   : > { %1330 = vmatpush1.msra.mxu0 %v4150_v13  ;;  %3197 = vmatpush3.msra.mxu1 %v4285_v50 }
 0x196   : > { %1331 = vmatprep.subr.mxu0 %v4153_v14  ;;  %3198 = vmatprep.subr.mxu1 %v5358_v57 }
 0x197   : > { %1332 = vmatpush1.msra.mxu0 %v4157_v15  ;;  %3199 = vmatpush3.msra.mxu1 %v4294_v52 }
 0x198   : > { %1333 = vmatprep.subr.mxu0 %v4164_v17  ;;  %3200 = vmatprep.subr.mxu1 %v5358_v57 }
 0x199   : > { %1334 = vmatpush1.msra.mxu0 %v4167_v18  ;;  %3201 = vmatpush3.msra.mxu1 %v4300_v53 }
 0x19a   : > { %1335 = vmatprep.subr.mxu0 %v4170_v19  ;;  %3202 = vmatprep.subr.mxu1 %v5358_v57 }
 0x19b   : > { %1336 = vmatpush1.msra.mxu0 %v4175_v20  ;;  %3203 = vmatpush3.msra.mxu1 %v4307_v55 }
 0x19c   : > { %1337 = vmatprep.subr.mxu0 %v4185_v23  ;;  %3204 = vmatprep.subr.mxu1 %v5358_v57 }
 0x19d   : > { %1338 = vmatpush1.msra.mxu0 %v4188_v24  ;;  %3205 = vmatpush3.msra.mxu1 %v4313_v56 }
 0x19e   : > { %1339 = vmatprep.subr.mxu0 %v4191_v25  ;;  %3206 = vmatprep.subr.mxu1 %v5358_v57 }
 0x19f   : > { %1340 = vmatpush1.msra.mxu0 %v4199_v27  ;;  %3207 = vmatpush3.msra.mxu1 %v4323_v58 }
 0x1a0   : > { %1341 = vmatprep.subr.mxu0 %v4206_v29  ;;  %3208 = vmatprep.subr.mxu1 %v5358_v57 }
 0x1a1   : > { %1342 = vmatpush1.msra.mxu0 %v4209_v30  ;;  %3209 = vmatpush3.msra.mxu1 %v4328_v59 }
 0x1a2   : > { %1343 = vmatprep.subr.mxu0 %v4212_v31  ;;  %3210 = vmatprep.subr.mxu1 %v5358_v57 }
 0x1a3   : > { %1344 = vmatpush1.msra.mxu0 %v4217_v32  ;;  %3211 = vmatpush3.msra.mxu1 %v4338_v61 }
 0x1a4   : > { %1345 = vmatprep.subr.mxu0 %v4224_v34  ;;  %3212 = vmatprep.subr.mxu1 %v5358_v57 }
 0x1a5   : > { %1346 = vmatpush1.msra.mxu0 %v4227_v35  ;;  %3213 = vmatpush3.msra.mxu1 %v4343_v62 }
 0x1a6   : > { %1347 = vmatprep.subr.mxu0 %v4231_v36  ;;  %3214 = vmatprep.subr.mxu1 %v5358_v57 }
 0x1a7   : > { %1348 = vmatpush1.msra.mxu0 %v4242_v38  ;;  %3215 = vmatpush3.msra.mxu1 %v4351_v2 }
 0x1a8   : > { %1349 = vmatprep.subr.mxu0 %v4249_v40  ;;  %3216 = vmatprep.subr.mxu1 %v5358_v57 }
 0x1a9   : > { %1350 = vmatpush1.msra.mxu0 %v4252_v41  ;;  %3217 = vmatpush3.msra.mxu1 %v4356_v3 }
 0x1aa   : > { %1351 = vmatprep.subr.mxu0 %v4260_v42  ;;  %3218 = vmatprep.subr.mxu1 %v5358_v57 }
 0x1ab   : > { %1352 = vmatpush1.msra.mxu0 %v4268_v44  ;;  %3219 = vmatpush3.msra.mxu1 %v5359_v45 }
 0x1ac   : > { %1353 = vmatprep.subr.mxu0 %v5360_v48  ;;  %3220 = vmatprep.subr.mxu1 %v5358_v57 }
 0x1ad   : > { %1354 = vmatpush1.msra.mxu0 %v5361_v26  ;;  %3221 = vmatpush3.msra.mxu1 %v5362_v16 }
 0x1ae   : > { %1355 = vmatprep.subr.mxu0 %v5363_v46  ;;  %3222 = vmatprep.subr.mxu1 %v5358_v57 }
 0x1af   : > { %1356 = vmatpush1.msra.mxu0 %v5364_v33  ;;  %1389 = vmatprep.mubr.f32.mxu0 %v5358_v57 }
 0x1b0   : > { %3223 = vmatpush3.msra.mxu1 %v5365_v0  ;;  %3224 = vmatprep.mubr.msk.f32.mxu1 %vm3840_vm5, %v5358_v57  ;;  %v5371_v0 = vld [vmem:[#allocation28_spill] sm:$0xff] }
 0x1b1   : > { %1494 = vmatprep.subr.mxu0 %v5366_v60  ;;  %3227 = vmatprep.subr.mxu1 %v5358_v57  ;;  %v5369_v60 = vld [vmem:[#allocation41_spill] sm:$0xff] }
 0x1b2   : > { %2556 = vperm.xlu1 %3542, %v2554_v5  }
 0x250   : > { %v1222_v21 = vpop.f32.mrf.mxu0  ;;  %v1293_v54 = vpop.f32.mrf.mxu1 }
 0x251   : > { %v1223_v11 = vadd.f32 %v1222_v21, %v5369_v60  ;;  %v1294_v21 = vadd.f32 %v1293_v54, %v4500_v22 }
 0x252   : > { %v1224_v47 = vpop.f32.mrf.mxu0  ;;  %v3191_v39 = vpop.f32.mrf.mxu1 }
 0x253   : > { %v1297_v63 = vadd.f32 %v1223_v11, %v5370_v49  ;;  %v1225_v1 = vadd.f32 %v1224_v47, %v4485_v51  ;;  %v5372_v49 = vld [vmem:[#allocation35_spill] sm:$0xff] }
 0x255   : > { %v2900_v7 = vmul.f32 -1.442695, %v1297_v63  ;;  %v1304_v28 = vadd.f32 %v1225_v1, %v5371_v0 }
 0x257   : > { %3553 = vpow2.f32 %v2900_v7  ;;  %v2901_v33 = vmul.f32 -1.442695, %v1304_v28 }
 0x259   : > { %3555 = vpow2.f32 %v2901_v33  ;;  %v1322_v33 = vpop.permute.xlu0 %1321 }
 0x25a   : > { %vm1323_vm11 = vcmp.eq.s32.totalorder %v1322_v33, 1  ;;  %v4717_v33 = vld [vmem:[#allocation2 + $0xf0] sm:$0xff] }
 0x264   : > { %v3554_v46 = vpop.eup %3553 }
 0x265   : > { %v1301_v4 = vadd.f32 1.0, %v3554_v46 }
 0x266   : > { %v3556_v16 = vpop.eup %3555 }
 0x267   : > { %3557 = vrcp.f32 %v1301_v4  ;;  %v1308_v5 = vadd.f32 1.0, %v3556_v16 }
 0x269   : > { %3559 = vrcp.f32 %v1308_v5 }
 0x274   : > { %v3558_v60 = vpop.eup %3557 }
 0x275   : > { %v1311_v39 = vmul.f32 %v3558_v60, %v1294_v21  ;;  %v1491_v60 = vpop.permute.xlu1 %1490 }
 0x276   : > { %v3560_v26 = vpop.eup %3559  ;;  %vm1492_vm12 = vcmp.eq.s32.totalorder %v1491_v60, 1 }
 0x277   : > { %v1312_v11 = vadd.f32 %v1311_v39, %v5372_v49  ;;  %v1316_v63 = vmul.f32 %v3560_v26, %v4503_v6  ;;  %v1314_v47 = vsub.f32 1.0, %v3560_v26  ;;  %v4677_v39 = vld [vmem:[#allocation2 + $0x168] sm:$0xff]  ;;  %v4681_v49 = vld [vmem:[#allocation2 + $0x158] sm:$0xff] }
 0x279   : > { %3561 = vtanh.f32 %v1312_v11  ;;  %v4685_v11 = vld [vmem:[#allocation2 + $0x150] sm:$0xff] }
 0x286   : > { %v3562_v0 = vpop.eup %3561 }
 0x287   : > { %v1315_v1 = vmul.f32 %v3562_v0, %v1314_v47  ;;  %v4693_v47 = vld [vmem:[#allocation2 + $0x138] sm:$0xff]  ;;  %v4701_v0 = vld [vmem:[#allocation2 + $0x120] sm:$0xff] }
 0x289   : > { %v1317_v7 = vadd.f32 %v1316_v63, %v1315_v1  ;;  %v4689_v63 = vld [vmem:[#allocation2 + $0x140] sm:$0xff]  ;;  %v4709_v1 = vld [vmem:[#allocation2 + $0x108] sm:$0xff] }
 0x28b   : > { %v4592_v46 = vsel %vm1323_vm11, %v1317_v7, %v4503_v6  ;;  %v4725_v7 = vld [vmem:[#allocation2 + $0xd8] sm:$0xff] }
 0x28c   : > { %1390 = vmatmul.mubr.f32.vlgmr.msra.gmra.mxu0 %v4592_v46  ;;  %3225 = vmatmul.mubr.f32.vlgmr.msra.gmra.mxu1 %v4592_v46 }
 0x28d   : > { %1495 = vmatpush1.msra.mxu0 %v4136_v8  ;;  %3228 = vmatpush3.msra.mxu1 %v4234_v37  ;;  %v5373_v8 = vld [vmem:[#allocation20_spill] sm:$0xff] }
 0x28e   : > { %1496 = vmatprep.subr.mxu0 %v4138_v9  ;;  %3229 = vmatprep.subr.mxu1 %v5358_v57  ;;  %v5374_v9 = vld [vmem:[#allocation24_spill] sm:$0xff] }
 0x28f   : > { %1497 = vmatpush1.msra.mxu0 %v4142_v10  ;;  %3230 = vmatpush3.msra.mxu1 %v4263_v43  ;;  %v5375_v10 = vld [vmem:[#allocation21_spill] sm:$0xff] }
 0x290   : > { %1498 = vmatprep.subr.mxu0 %v4147_v12  ;;  %3231 = vmatprep.subr.mxu1 %v5358_v57  ;;  %v5376_v12 = vld [vmem:[#allocation22_spill] sm:$0xff] }
 0x291   : > { %1499 = vmatpush1.msra.mxu0 %v4150_v13  ;;  %3232 = vmatpush3.msra.mxu1 %v4285_v50  ;;  %v5377_v13 = vld [vmem:[#allocation25_spill] sm:$0xff] }
 0x292   : > { %1500 = vmatprep.subr.mxu0 %v4153_v14  ;;  %3233 = vmatprep.subr.mxu1 %v5358_v57  ;;  %v4661_v14 = vld [vmem:[#allocation2 + $0x170] sm:$0xff] }
 0x293   : > { %1501 = vmatpush1.msra.mxu0 %v4157_v15  ;;  %3234 = vmatpush3.msra.mxu1 %v4294_v52  ;;  %5378 = vst [vmem:[#allocation23_spill] sm:$0xff] %v4661_v14 }
 0x294   : > { %1502 = vmatprep.subr.mxu0 %v4164_v17  ;;  %3235 = vmatprep.subr.mxu1 %v5358_v57 }
 0x295   : > { %1503 = vmatpush1.msra.mxu0 %v4167_v18  ;;  %3236 = vmatpush3.msra.mxu1 %v4300_v53  ;;  %v5379_v18 = vld [vmem:[#allocation41_spill] sm:$0xff] }
 0x296   : > { %1504 = vmatprep.subr.mxu0 %v4170_v19  ;;  %3237 = vmatprep.subr.mxu1 %v5358_v57 }
 0x297   : > { %1505 = vmatpush1.msra.mxu0 %v4175_v20  ;;  %3238 = vmatpush3.msra.mxu1 %v4307_v55 }
 0x298   : > { %1506 = vmatprep.subr.mxu0 %v4185_v23  ;;  %3239 = vmatprep.subr.mxu1 %v5358_v57 }
 0x299   : > { %1507 = vmatpush1.msra.mxu0 %v4188_v24  ;;  %3240 = vmatpush3.msra.mxu1 %v4313_v56  ;;  %v5380_v24 = vld [vmem:[#allocation29_spill] sm:$0xff] }
 0x29a   : > { %1508 = vmatprep.subr.mxu0 %v4191_v25  ;;  %3241 = vmatprep.subr.mxu1 %v5358_v57 }
 0x29b   : > { %1509 = vmatpush1.msra.mxu0 %v4199_v27  ;;  %3242 = vmatpush3.msra.mxu1 %v4323_v58 }
 0x29c   : > { %1510 = vmatprep.subr.mxu0 %v4206_v29  ;;  %3243 = vmatprep.subr.mxu1 %v5358_v57 }
 0x29d   : > { %1511 = vmatpush1.msra.mxu0 %v4209_v30  ;;  %3244 = vmatpush3.msra.mxu1 %v4328_v59  ;;  %v5381_v30 = vld [vmem:[#allocation30_spill] sm:$0xff] }
 0x29e   : > { %1512 = vmatprep.subr.mxu0 %v4212_v31  ;;  %3245 = vmatprep.subr.mxu1 %v5358_v57 }
 0x29f   : > { %1513 = vmatpush1.msra.mxu0 %v4217_v32  ;;  %3246 = vmatpush3.msra.mxu1 %v4338_v61 }
 0x2a0   : > { %1514 = vmatprep.subr.mxu0 %v4224_v34  ;;  %3247 = vmatprep.subr.mxu1 %v5358_v57 }
 0x2a1   : > { %1515 = vmatpush1.msra.mxu0 %v4227_v35  ;;  %3248 = vmatpush3.msra.mxu1 %v4343_v62 }
 0x2a2   : > { %1516 = vmatprep.subr.mxu0 %v4231_v36  ;;  %3249 = vmatprep.subr.mxu1 %v5358_v57 }
 0x2a3   : > { %1517 = vmatpush1.msra.mxu0 %v4242_v38  ;;  %3250 = vmatpush3.msra.mxu1 %v4351_v2 }
 0x2a4   : > { %1518 = vmatprep.subr.mxu0 %v4249_v40  ;;  %3251 = vmatprep.subr.mxu1 %v5358_v57 }
 0x2a5   : > { %1519 = vmatpush1.msra.mxu0 %v4252_v41  ;;  %3252 = vmatpush3.msra.mxu1 %v4356_v3 }
 0x2a6   : > { %1520 = vmatprep.subr.mxu0 %v4260_v42  ;;  %3253 = vmatprep.subr.mxu1 %v5358_v57 }
 0x2a7   : > { %1521 = vmatpush1.msra.mxu0 %v4268_v44  ;;  %3254 = vmatpush3.msra.mxu1 %v5359_v45  ;;  %v5382_v44 = vld [vmem:[#allocation44_spill] sm:$0xff] }
 0x2a8   : > { %1522 = vmatprep.subr.mxu0 %v5360_v48  ;;  %3255 = vmatprep.subr.mxu1 %v5358_v57 }
 0x2a9   : > { %1523 = vmatpush1.msra.mxu0 %v5373_v8  ;;  %3256 = vmatpush3.msra.mxu1 %v5374_v9 }
 0x2aa   : > { %1524 = vmatprep.subr.mxu0 %v5375_v10  ;;  %3257 = vmatprep.subr.mxu1 %v5358_v57 }
 0x2ab   : > { %1525 = vmatpush1.msra.mxu0 %v5376_v12  ;;  %1558 = vmatprep.mubr.f32.mxu0 %v5358_v57 }
 0x2ac   : > { %3258 = vmatpush3.msra.mxu1 %v5377_v13  ;;  %3259 = vmatprep.mubr.msk.f32.mxu1 %vm3840_vm5, %v5358_v57 }
 0x2ad   : > { %1663 = vmatprep.subr.mxu0 %v4661_v14  ;;  %3262 = vmatprep.subr.mxu1 %v5358_v57 }
 0x34c   : > { %v1391_v15 = vpop.f32.mrf.mxu0  ;;  %v1462_v17 = vpop.f32.mrf.mxu1 }
 0x34d   : > { %v1392_v19 = vadd.f32 %v1391_v15, %v5379_v18  ;;  %v1463_v40 = vadd.f32 %v1462_v17, %v4500_v22  ;;  %v4741_v15 = vld [vmem:[#allocation2 + $0xa8] sm:$0xff]  ;;  %v4749_v17 = vld [vmem:[#allocation2 + $0x90] sm:$0xff] }
 0x34e   : > { %v1393_v20 = vpop.f32.mrf.mxu0  ;;  %v3226_v23 = vpop.f32.mrf.mxu1 }
 0x34f   : > { %v1466_v25 = vadd.f32 %v1392_v19, %v5380_v24  ;;  %v1394_v29 = vadd.f32 %v1393_v20, %v4485_v51  ;;  %v4757_v19 = vld [vmem:[#allocation2 + $0x78] sm:$0xff]  ;;  %v4765_v20 = vld [vmem:[#allocation2 + $0x60] sm:$0xff]  ;;  %v4773_v23 = vld [vmem:[#allocation2 + $0x48] sm:$0xff] }
 0x350   : > { %v4781_v24 = vld [vmem:[#allocation2 + $0x30] sm:$0xff] }
 0x351   : > { %v2902_v27 = vmul.f32 -1.442695, %v1466_v25  ;;  %v1473_v31 = vadd.f32 %v1394_v29, %v5381_v30 }
 0x353   : > { %3563 = vpow2.f32 %v2902_v27  ;;  %v2903_v32 = vmul.f32 -1.442695, %v1473_v31 }
 0x355   : > { %3565 = vpow2.f32 %v2903_v32 }
 0x360   : > { %v3564_v34 = vpop.eup %3563 }
 0x361   : > { %v1470_v35 = vadd.f32 1.0, %v3564_v34 }
 0x362   : > { %v3566_v36 = vpop.eup %3565 }
 0x363   : > { %3567 = vrcp.f32 %v1470_v35  ;;  %v1477_v38 = vadd.f32 1.0, %v3566_v36 }
 0x365   : > { %3569 = vrcp.f32 %v1477_v38 }
 0x370   : > { %v3568_v41 = vpop.eup %3567 }
 0x371   : > { %v1480_v42 = vmul.f32 %v3568_v41, %v1463_v40  ;;  %v5385_v40 = vld [vmem:[#allocation43_spill] sm:$0xff] }
 0x372   : > { %v3570_v26 = vpop.eup %3569 }
 0x373   : > { %v1481_v6 = vadd.f32 %v1480_v42, %v5382_v44  ;;  %v1483_v16 = vsub.f32 1.0, %v3570_v26  ;;  %v1485_v4 = vmul.f32 %v3570_v26, %v4592_v46 }
 0x375   : > { %3571 = vtanh.f32 %v1481_v6 }
 0x382   : > { %v3572_v54 = vpop.eup %3571 }
 0x383   : > { %v1484_v28 = vmul.f32 %v3572_v54, %v1483_v16  ;;  %v1660_v54 = vpop.permute.xlu1 %1659 }
 0x384   : > { %vm1661_vm13 = vcmp.eq.s32.totalorder %v1660_v54, 1  ;;  %v5392_v54 = vld [vmem:[#allocation34_spill] sm:$0xff] }
 0x385   : > { %v1486_v5 = vadd.f32 %v1485_v4, %v1484_v28  ;;  %v4811_v4 = vld [vmem:[#allocation2 + $0x178] sm:$0xff] }
 0x387   : > { %v4673_v21 = vsel %vm1492_vm12, %v1486_v5, %v4592_v46  ;;  %v4733_v46 = vld [vmem:[#allocation2 + $0xc0] sm:$0xff] }
 0x388   : > { %1559 = vmatmul.mubr.f32.vlgmr.msra.gmra.mxu0 %v4673_v21  ;;  %3260 = vmatmul.mubr.f32.vlgmr.msra.gmra.mxu1 %v4673_v21  ;;  %v4817_v5 = vld [vmem:[#allocation2 + $0x160] sm:$0xff] }
 0x389   : > { %1664 = vmatpush1.msra.mxu0 %v4677_v39  ;;  %3263 = vmatpush3.msra.mxu1 %v4234_v37  ;;  %v4697_v37 = vld [vmem:[#allocation2 + $0x128] sm:$0xff] }
 0x38a   : > { %1665 = vmatprep.subr.mxu0 %v4681_v49  ;;  %3264 = vmatprep.subr.mxu1 %v5358_v57 }
 0x38b   : > { %1666 = vmatpush1.msra.mxu0 %v4685_v11  ;;  %3265 = vmatpush3.msra.mxu1 %v4263_v43  ;;  %v4705_v43 = vld [vmem:[#allocation2 + $0x110] sm:$0xff] }
 0x38c   : > { %1667 = vmatprep.subr.mxu0 %v4689_v63  ;;  %3266 = vmatprep.subr.mxu1 %v5358_v57 }
 0x38d   : > { %1668 = vmatpush1.msra.mxu0 %v4693_v47  ;;  %3267 = vmatpush3.msra.mxu1 %v4285_v50  ;;  %v4713_v50 = vld [vmem:[#allocation2 + $0xf8] sm:$0xff] }
 0x38e   : > { %1669 = vmatprep.subr.mxu0 %v4697_v37  ;;  %3268 = vmatprep.subr.mxu1 %v5358_v57 }
 0x38f   : > { %1670 = vmatpush1.msra.mxu0 %v4701_v0  ;;  %3269 = vmatpush3.msra.mxu1 %v4294_v52  ;;  %v4721_v52 = vld [vmem:[#allocation2 + $0xe0] sm:$0xff] }
 0x390   : > { %1671 = vmatprep.subr.mxu0 %v4705_v43  ;;  %3270 = vmatprep.subr.mxu1 %v5358_v57 }
 0x391   : > { %1672 = vmatpush1.msra.mxu0 %v4709_v1  ;;  %3271 = vmatpush3.msra.mxu1 %v4300_v53  ;;  %v4729_v53 = vld [vmem:[#allocation2 + $0xc8] sm:$0xff] }
 0x392   : > { %1673 = vmatprep.subr.mxu0 %v4713_v50  ;;  %3272 = vmatprep.subr.mxu1 %v5358_v57 }
 0x393   : > { %1674 = vmatpush1.msra.mxu0 %v4717_v33  ;;  %3273 = vmatpush3.msra.mxu1 %v4307_v55  ;;  %v4737_v55 = vld [vmem:[#allocation2 + $0xb0] sm:$0xff] }
 0x394   : > { %1675 = vmatprep.subr.mxu0 %v4721_v52  ;;  %3274 = vmatprep.subr.mxu1 %v5358_v57 }
 0x395   : > { %1676 = vmatpush1.msra.mxu0 %v4725_v7  ;;  %3275 = vmatpush3.msra.mxu1 %v4313_v56  ;;  %v4745_v56 = vld [vmem:[#allocation2 + $0x98] sm:$0xff] }
 0x396   : > { %1677 = vmatprep.subr.mxu0 %v4729_v53  ;;  %3276 = vmatprep.subr.mxu1 %v5358_v57 }
 0x397   : > { %1678 = vmatpush1.msra.mxu0 %v4733_v46  ;;  %3277 = vmatpush3.msra.mxu1 %v4323_v58  ;;  %v4753_v58 = vld [vmem:[#allocation2 + $0x80] sm:$0xff] }
 0x398   : > { %1679 = vmatprep.subr.mxu0 %v4737_v55  ;;  %3278 = vmatprep.subr.mxu1 %v5358_v57 }
 0x399   : > { %1680 = vmatpush1.msra.mxu0 %v4741_v15  ;;  %3279 = vmatpush3.msra.mxu1 %v4328_v59  ;;  %v4761_v59 = vld [vmem:[#allocation2 + $0x68] sm:$0xff] }
 0x39a   : > { %1681 = vmatprep.subr.mxu0 %v4745_v56  ;;  %3280 = vmatprep.subr.mxu1 %v5358_v57 }
 0x39b   : > { %1682 = vmatpush1.msra.mxu0 %v4749_v17  ;;  %3281 = vmatpush3.msra.mxu1 %v4338_v61  ;;  %v4769_v61 = vld [vmem:[#allocation2 + $0x50] sm:$0xff] }
 0x39c   : > { %1683 = vmatprep.subr.mxu0 %v4753_v58  ;;  %3282 = vmatprep.subr.mxu1 %v5358_v57 }
 0x39d   : > { %1684 = vmatpush1.msra.mxu0 %v4757_v19  ;;  %3283 = vmatpush3.msra.mxu1 %v4343_v62  ;;  %v4777_v62 = vld [vmem:[#allocation2 + $0x38] sm:$0xff] }
 0x39e   : > { %1685 = vmatprep.subr.mxu0 %v4761_v59  ;;  %3284 = vmatprep.subr.mxu1 %v5358_v57 }
 0x39f   : > { %1686 = vmatpush1.msra.mxu0 %v4765_v20  ;;  %3285 = vmatpush3.msra.mxu1 %v4351_v2 }
 0x3a0   : > { %1687 = vmatprep.subr.mxu0 %v4769_v61  ;;  %3286 = vmatprep.subr.mxu1 %v5358_v57 }
 0x3a1   : > { %1688 = vmatpush1.msra.mxu0 %v4773_v23  ;;  %3287 = vmatpush3.msra.mxu1 %v4356_v3 }
 0x3a2   : > { %1689 = vmatprep.subr.mxu0 %v4777_v62  ;;  %3288 = vmatprep.subr.mxu1 %v5358_v57 }
 0x3a3   : > { %1690 = vmatpush1.msra.mxu0 %v4781_v24  ;;  %3289 = vmatpush3.msra.mxu1 %v5359_v45 }
 0x3a4   : > { %1691 = vmatprep.subr.mxu0 %v5360_v48  ;;  %3290 = vmatprep.subr.mxu1 %v5358_v57 }
 0x3a5   : > { %1692 = vmatpush1.msra.mxu0 %v5373_v8  ;;  %3291 = vmatpush3.msra.mxu1 %v5374_v9  ;;  %v5383_v9 = vld [vmem:[#allocation31_spill] sm:$0xff] }
 0x3a6   : > { %1693 = vmatprep.subr.mxu0 %v5375_v10  ;;  %3292 = vmatprep.subr.mxu1 %v5358_v57 }
 0x3a7   : > { %1694 = vmatpush1.msra.mxu0 %v5376_v12  ;;  %1727 = vmatprep.mubr.f32.mxu0 %v5358_v57 }
 0x3a8   : > { %3293 = vmatpush3.msra.mxu1 %v5377_v13  ;;  %3294 = vmatprep.mubr.msk.f32.mxu1 %vm3840_vm5, %v5358_v57  ;;  %v5384_v13 = vld [vmem:[#allocation32_spill] sm:$0xff] }
 0x3a9   : > { %1832 = vmatprep.subr.mxu0 %v4661_v14  ;;  %3297 = vmatprep.subr.mxu1 %v5358_v57 }
 0x448   : > { %v1560_v2 = vpop.f32.mrf.mxu0  ;;  %v1631_v3 = vpop.f32.mrf.mxu1 }
 0x449   : > { %v1561_v45 = vadd.f32 %v1560_v2, %v5379_v18  ;;  %v1632_v35 = vadd.f32 %v1631_v3, %v4500_v22  ;;  %v4829_v2 = vld [vmem:[#allocation2 + $0x130] sm:$0xff]  ;;  %v4835_v3 = vld [vmem:[#allocation2 + $0x118] sm:$0xff] }
 0x44a   : > { %v1562_v48 = vpop.f32.mrf.mxu0  ;;  %v3261_v8 = vpop.f32.mrf.mxu1 }
 0x44b   : > { %v1635_v10 = vadd.f32 %v1561_v45, %v5383_v9  ;;  %v1563_v25 = vadd.f32 %v1562_v48, %v4485_v51  ;;  %v4841_v45 = vld [vmem:[#allocation2 + $0x100] sm:$0xff]  ;;  %v4847_v48 = vld [vmem:[#allocation2 + $0xe8] sm:$0xff]  ;;  %v4853_v8 = vld [vmem:[#allocation2 + $0xd0] sm:$0xff] }
 0x44c   : > { %v4859_v9 = vld [vmem:[#allocation2 + $0xb8] sm:$0xff] }
 0x44d   : > { %v2904_v12 = vmul.f32 -1.442695, %v1635_v10  ;;  %v1642_v27 = vadd.f32 %v1563_v25, %v5384_v13  ;;  %v4865_v10 = vld [vmem:[#allocation2 + $0xa0] sm:$0xff]  ;;  %v4877_v25 = vld [vmem:[#allocation2 + $0x70] sm:$0xff]  ;;  %v4883_v13 = vld [vmem:[#allocation2 + $0x58] sm:$0xff] }
 0x44f   : > { %3573 = vpow2.f32 %v2904_v12  ;;  %v2905_v29 = vmul.f32 -1.442695, %v1642_v27  ;;  %v4871_v12 = vld [vmem:[#allocation2 + $0x88] sm:$0xff]  ;;  %v4889_v27 = vld [vmem:[#allocation2 + $0x40] sm:$0xff] }
 0x451   : > { %3575 = vpow2.f32 %v2905_v29  ;;  %v4892_v29 = vld [vmem:[#allocation2 + $0x20] sm:$0xff] }
 0x45c   : > { %v3574_v30 = vpop.eup %3573 }
 0x45d   : > { %v1639_v31 = vadd.f32 1.0, %v3574_v30  ;;  %v4896_v30 = vld [vmem:[#allocation2 + $0x18] sm:$0xff] }
 0x45e   : > { %v3576_v32 = vpop.eup %3575  ;;  %5386 = vst [vmem:[#allocation18_spill] sm:$0xff] %v4896_v30 }
 0x45f   : > { %3577 = vrcp.f32 %v1639_v31  ;;  %v1646_v34 = vadd.f32 1.0, %v3576_v32  ;;  %v4899_v31 = vld [vmem:[#allocation2 + $0x28] sm:$0xff] }
 0x460   : > { %5387 = vst [vmem:[#allocation17_spill] sm:$0xff] %v4899_v31  ;;  %v4902_v32 = vld [vmem:[#allocation2 + $0x8] sm:$0xff] }
 0x461   : > { %3579 = vrcp.f32 %v1646_v34  ;;  %5388 = vst [vmem:[#allocation19_spill] sm:$0xff] %v4902_v32  ;;  %v4906_v34 = vld [vmem:[#allocation2] sm:$0xff] }
 0x462   : > { %5389 = vst [vmem:[#allocation27_spill] sm:$0xff] %v4906_v34 }
 0x46c   : > { %v3578_v36 = vpop.eup %3577 }
 0x46d   : > { %v1649_v38 = vmul.f32 %v3578_v36, %v1632_v35  ;;  %v4910_v35 = vld [vmem:[#allocation2 + $0x10] sm:$0xff] }
 0x46e   : > { %v3580_v42 = vpop.eup %3579  ;;  %5390 = vst [vmem:[#allocation28_spill] sm:$0xff] %v4910_v35 }
 0x46f   : > { %v1650_v41 = vadd.f32 %v1649_v38, %v5385_v40  ;;  %v1652_v44 = vsub.f32 1.0, %v3580_v42  ;;  %v1654_v16 = vmul.f32 %v3580_v42, %v4673_v21 }
 0x471   : > { %3581 = vtanh.f32 %v1650_v41 }
 0x47e   : > { %v3582_v6 = vpop.eup %3581 }
 0x47f   : > { %v1653_v26 = vmul.f32 %v3582_v6, %v1652_v44  ;;  %v5391_v44 = vld [vmem:[#allocation33_spill] sm:$0xff] }
 0x481   : > { %v1655_v60 = vadd.f32 %v1654_v16, %v1653_v26 }
 0x483   : > { %v4806_v28 = vsel %vm1661_vm13, %v1655_v60, %v4673_v21  ;;  %v4823_v21 = vld [vmem:[#allocation2 + $0x148] sm:$0xff] }
 0x484   : > { %1728 = vmatmul.mubr.f32.vlgmr.msra.gmra.mxu0 %v4806_v28  ;;  %3295 = vmatmul.mubr.f32.vlgmr.msra.gmra.mxu1 %v4806_v28 }
 0x485   : > { %1833 = vmatpush1.msra.mxu0 %v4677_v39  ;;  %3298 = vmatpush3.msra.mxu1 %v4811_v4 }
 0x486   : > { %1834 = vmatprep.subr.mxu0 %v4681_v49  ;;  %3299 = vmatprep.subr.mxu1 %v5358_v57 }
 0x487   : > { %1835 = vmatpush1.msra.mxu0 %v4685_v11  ;;  %3300 = vmatpush3.msra.mxu1 %v4817_v5 }
 0x488   : > { %1836 = vmatprep.subr.mxu0 %v4689_v63  ;;  %3301 = vmatprep.subr.mxu1 %v5358_v57 }
 0x489   : > { %1837 = vmatpush1.msra.mxu0 %v4693_v47  ;;  %3302 = vmatpush3.msra.mxu1 %v4823_v21 }
 0x48a   : > { %1838 = vmatprep.subr.mxu0 %v4697_v37  ;;  %3303 = vmatprep.subr.mxu1 %v5358_v57 }
 0x48b   : > { %1839 = vmatpush1.msra.mxu0 %v4701_v0  ;;  %3304 = vmatpush3.msra.mxu1 %v4829_v2 }
 0x48c   : > { %1840 = vmatprep.subr.mxu0 %v4705_v43  ;;  %3305 = vmatprep.subr.mxu1 %v5358_v57 }
 0x48d   : > { %1841 = vmatpush1.msra.mxu0 %v4709_v1  ;;  %3306 = vmatpush3.msra.mxu1 %v4835_v3 }
 0x48e   : > { %1842 = vmatprep.subr.mxu0 %v4713_v50  ;;  %3307 = vmatprep.subr.mxu1 %v5358_v57 }
 0x48f   : > { %1843 = vmatpush1.msra.mxu0 %v4717_v33  ;;  %3308 = vmatpush3.msra.mxu1 %v4841_v45 }
 0x490   : > { %1844 = vmatprep.subr.mxu0 %v4721_v52  ;;  %3309 = vmatprep.subr.mxu1 %v5358_v57 }
 0x491   : > { %1845 = vmatpush1.msra.mxu0 %v4725_v7  ;;  %3310 = vmatpush3.msra.mxu1 %v4847_v48 }
 0x492   : > { %1846 = vmatprep.subr.mxu0 %v4729_v53  ;;  %3311 = vmatprep.subr.mxu1 %v5358_v57 }
 0x493   : > { %1847 = vmatpush1.msra.mxu0 %v4733_v46  ;;  %3312 = vmatpush3.msra.mxu1 %v4853_v8 }
 0x494   : > { %1848 = vmatprep.subr.mxu0 %v4737_v55  ;;  %3313 = vmatprep.subr.mxu1 %v5358_v57 }
 0x495   : > { %1849 = vmatpush1.msra.mxu0 %v4741_v15  ;;  %3314 = vmatpush3.msra.mxu1 %v4859_v9 }
 0x496   : > { %1850 = vmatprep.subr.mxu0 %v4745_v56  ;;  %3315 = vmatprep.subr.mxu1 %v5358_v57 }
 0x497   : > { %1851 = vmatpush1.msra.mxu0 %v4749_v17  ;;  %3316 = vmatpush3.msra.mxu1 %v4865_v10 }
 0x498   : > { %1852 = vmatprep.subr.mxu0 %v4753_v58  ;;  %3317 = vmatprep.subr.mxu1 %v5358_v57 }
 0x499   : > { %1853 = vmatpush1.msra.mxu0 %v4757_v19  ;;  %3318 = vmatpush3.msra.mxu1 %v4871_v12 }
 0x49a   : > { %1854 = vmatprep.subr.mxu0 %v4761_v59  ;;  %3319 = vmatprep.subr.mxu1 %v5358_v57 }
 0x49b   : > { %1855 = vmatpush1.msra.mxu0 %v4765_v20  ;;  %3320 = vmatpush3.msra.mxu1 %v4877_v25 }
 0x49c   : > { %1856 = vmatprep.subr.mxu0 %v4769_v61  ;;  %3321 = vmatprep.subr.mxu1 %v5358_v57 }
 0x49d   : > { %1857 = vmatpush1.msra.mxu0 %v4773_v23  ;;  %3322 = vmatpush3.msra.mxu1 %v4883_v13 }
 0x49e   : > { %1858 = vmatprep.subr.mxu0 %v4777_v62  ;;  %3323 = vmatprep.subr.mxu1 %v5358_v57 }
 0x49f   : > { %1859 = vmatpush1.msra.mxu0 %v4781_v24  ;;  %3324 = vmatpush3.msra.mxu1 %v4889_v27 }
 0x4a0   : > { %1860 = vmatprep.subr.mxu0 %v4892_v29  ;;  %3325 = vmatprep.subr.mxu1 %v5358_v57 }
 0x4a1   : > { %1861 = vmatpush1.msra.mxu0 %v4896_v30  ;;  %3326 = vmatpush3.msra.mxu1 %v4899_v31 }
 0x4a2   : > { %1862 = vmatprep.subr.mxu0 %v4902_v32  ;;  %3327 = vmatprep.subr.mxu1 %v5358_v57 }
 0x4a3   : > { %1863 = vmatpush1.msra.mxu0 %v4906_v34  ;;  %1896 = vmatprep.mubr.f32.mxu0 %v5358_v57 }
 0x4a4   : > { %3328 = vmatpush3.msra.mxu1 %v4910_v35  ;;  %3329 = vmatprep.mubr.msk.f32.mxu1 %vm3840_vm5, %v5358_v57 }
 0x4a5   : > { %2001 = vmatprep.subr.mxu0 %v4661_v14  ;;  %3332 = vmatprep.subr.mxu1 %v5358_v57 }
 0x544   : > { %v1729_v36 = vpop.f32.mrf.mxu0  ;;  %v1800_v38 = vpop.f32.mrf.mxu1 }
 0x545   : > { %v1730_v40 = vadd.f32 %v1729_v36, %v5379_v18  ;;  %v1801_v30 = vadd.f32 %v1800_v38, %v4500_v22 }
 0x546   : > { %v1731_v41 = vpop.f32.mrf.mxu0  ;;  %v3296_v42 = vpop.f32.mrf.mxu1 }
 0x547   : > { %v1804_v6 = vadd.f32 %v1730_v40, %v5391_v44  ;;  %v1732_v16 = vadd.f32 %v1731_v41, %v4485_v51  ;;  %v5393_v42 = vld [vmem:[#allocation46_spill] sm:$0xff] }
 0x549   : > { %v2906_v26 = vmul.f32 -1.442695, %v1804_v6  ;;  %v1811_v60 = vadd.f32 %v1732_v16, %v5392_v54 }
 0x54b   : > { %3583 = vpow2.f32 %v2906_v26  ;;  %v2907_v35 = vmul.f32 -1.442695, %v1811_v60 }
 0x54d   : > { %3585 = vpow2.f32 %v2907_v35  ;;  %v1829_v35 = vpop.permute.xlu0 %1828 }
 0x54e   : > { %vm1830_vm14 = vcmp.eq.s32.totalorder %v1829_v35, 1  ;;  %v5402_v35 = vld [vmem:[#allocation37_spill] sm:$0xff] }
 0x558   : > { %v3584_v34 = vpop.eup %3583 }
 0x559   : > { %v1808_v14 = vadd.f32 1.0, %v3584_v34  ;;  %v5399_v34 = vld [vmem:[#allocation23_spill] sm:$0xff] }
 0x55a   : > { %v3586_v32 = vpop.eup %3585 }
 0x55b   : > { %3587 = vrcp.f32 %v1808_v14  ;;  %v1815_v31 = vadd.f32 1.0, %v3586_v32  ;;  %v5398_v32 = vld [vmem:[#allocation28_spill] sm:$0xff] }
 0x55d   : > { %3589 = vrcp.f32 %v1815_v31  ;;  %v5397_v31 = vld [vmem:[#allocation27_spill] sm:$0xff] }
 0x568   : > { %v3588_v36 = vpop.eup %3587 }
 0x569   : > { %v1818_v18 = vmul.f32 %v3588_v36, %v1801_v30  ;;  %v5396_v30 = vld [vmem:[#allocation19_spill] sm:$0xff]  ;;  %v5400_v36 = vld [vmem:[#allocation41_spill] sm:$0xff] }
 0x56a   : > { %v3590_v44 = vpop.eup %3589 }
 0x56b   : > { %v1819_v40 = vadd.f32 %v1818_v18, %v5393_v42  ;;  %v1821_v41 = vsub.f32 1.0, %v3590_v44  ;;  %v1823_v16 = vmul.f32 %v3590_v44, %v4806_v28  ;;  %v5394_v18 = vld [vmem:[#allocation18_spill] sm:$0xff] }
 0x56d   : > { %3591 = vtanh.f32 %v1819_v40 }
 0x57a   : > { %v3592_v6 = vpop.eup %3591 }
 0x57b   : > { %v1822_v26 = vmul.f32 %v3592_v6, %v1821_v41  ;;  %v5401_v41 = vld [vmem:[#allocation36_spill] sm:$0xff] }
 0x57d   : > { %v1824_v54 = vadd.f32 %v1823_v16, %v1822_v26 }
 0x57f   : > { %v4925_v14 = vsel %vm1830_vm14, %v1824_v54, %v4806_v28  ;;  %v5395_v28 = vld [vmem:[#allocation17_spill] sm:$0xff] }
 0x580   : > { %1897 = vmatmul.mubr.f32.vlgmr.msra.gmra.mxu0 %v4925_v14  ;;  %3330 = vmatmul.mubr.f32.vlgmr.msra.gmra.mxu1 %v4925_v14 }
 0x581   : > { %2002 = vmatpush1.msra.mxu0 %v4677_v39  ;;  %3333 = vmatpush3.msra.mxu1 %v4811_v4 }
 0x582   : > { %2003 = vmatprep.subr.mxu0 %v4681_v49  ;;  %3334 = vmatprep.subr.mxu1 %v5358_v57 }
 0x583   : > { %2004 = vmatpush1.msra.mxu0 %v4685_v11  ;;  %3335 = vmatpush3.msra.mxu1 %v4817_v5 }
 0x584   : > { %2005 = vmatprep.subr.mxu0 %v4689_v63  ;;  %3336 = vmatprep.subr.mxu1 %v5358_v57 }
 0x585   : > { %2006 = vmatpush1.msra.mxu0 %v4693_v47  ;;  %3337 = vmatpush3.msra.mxu1 %v4823_v21 }
 0x586   : > { %2007 = vmatprep.subr.mxu0 %v4697_v37  ;;  %3338 = vmatprep.subr.mxu1 %v5358_v57 }
 0x587   : > { %2008 = vmatpush1.msra.mxu0 %v4701_v0  ;;  %3339 = vmatpush3.msra.mxu1 %v4829_v2 }
 0x588   : > { %2009 = vmatprep.subr.mxu0 %v4705_v43  ;;  %3340 = vmatprep.subr.mxu1 %v5358_v57 }
 0x589   : > { %2010 = vmatpush1.msra.mxu0 %v4709_v1  ;;  %3341 = vmatpush3.msra.mxu1 %v4835_v3 }
 0x58a   : > { %2011 = vmatprep.subr.mxu0 %v4713_v50  ;;  %3342 = vmatprep.subr.mxu1 %v5358_v57 }
 0x58b   : > { %2012 = vmatpush1.msra.mxu0 %v4717_v33  ;;  %3343 = vmatpush3.msra.mxu1 %v4841_v45 }
 0x58c   : > { %2013 = vmatprep.subr.mxu0 %v4721_v52  ;;  %3344 = vmatprep.subr.mxu1 %v5358_v57 }
 0x58d   : > { %2014 = vmatpush1.msra.mxu0 %v4725_v7  ;;  %3345 = vmatpush3.msra.mxu1 %v4847_v48 }
 0x58e   : > { %2015 = vmatprep.subr.mxu0 %v4729_v53  ;;  %3346 = vmatprep.subr.mxu1 %v5358_v57 }
 0x58f   : > { %2016 = vmatpush1.msra.mxu0 %v4733_v46  ;;  %3347 = vmatpush3.msra.mxu1 %v4853_v8 }
 0x590   : > { %2017 = vmatprep.subr.mxu0 %v4737_v55  ;;  %3348 = vmatprep.subr.mxu1 %v5358_v57 }
 0x591   : > { %2018 = vmatpush1.msra.mxu0 %v4741_v15  ;;  %3349 = vmatpush3.msra.mxu1 %v4859_v9 }
 0x592   : > { %2019 = vmatprep.subr.mxu0 %v4745_v56  ;;  %3350 = vmatprep.subr.mxu1 %v5358_v57 }
 0x593   : > { %2020 = vmatpush1.msra.mxu0 %v4749_v17  ;;  %3351 = vmatpush3.msra.mxu1 %v4865_v10 }
 0x594   : > { %2021 = vmatprep.subr.mxu0 %v4753_v58  ;;  %3352 = vmatprep.subr.mxu1 %v5358_v57 }
 0x595   : > { %2022 = vmatpush1.msra.mxu0 %v4757_v19  ;;  %3353 = vmatpush3.msra.mxu1 %v4871_v12 }
 0x596   : > { %2023 = vmatprep.subr.mxu0 %v4761_v59  ;;  %3354 = vmatprep.subr.mxu1 %v5358_v57 }
 0x597   : > { %2024 = vmatpush1.msra.mxu0 %v4765_v20  ;;  %3355 = vmatpush3.msra.mxu1 %v4877_v25 }
 0x598   : > { %2025 = vmatprep.subr.mxu0 %v4769_v61  ;;  %3356 = vmatprep.subr.mxu1 %v5358_v57 }
 0x599   : > { %2026 = vmatpush1.msra.mxu0 %v4773_v23  ;;  %3357 = vmatpush3.msra.mxu1 %v4883_v13 }
 0x59a   : > { %2027 = vmatprep.subr.mxu0 %v4777_v62  ;;  %3358 = vmatprep.subr.mxu1 %v5358_v57 }
 0x59b   : > { %2028 = vmatpush1.msra.mxu0 %v4781_v24  ;;  %3359 = vmatpush3.msra.mxu1 %v4889_v27 }
 0x59c   : > { %2029 = vmatprep.subr.mxu0 %v4892_v29  ;;  %3360 = vmatprep.subr.mxu1 %v5358_v57 }
 0x59d   : > { %2030 = vmatpush1.msra.mxu0 %v5394_v18  ;;  %3361 = vmatpush3.msra.mxu1 %v5395_v28 }
 0x59e   : > { %2031 = vmatprep.subr.mxu0 %v5396_v30  ;;  %3362 = vmatprep.subr.mxu1 %v5358_v57 }
 0x59f   : > { %2032 = vmatpush1.msra.mxu0 %v5397_v31  ;;  %2065 = vmatprep.mubr.f32.mxu0 %v5358_v57 }
 0x5a0   : > { %3363 = vmatpush3.msra.mxu1 %v5398_v32  ;;  %3364 = vmatprep.mubr.msk.f32.mxu1 %vm3840_vm5, %v5358_v57 }
 0x5a1   : > { %2170 = vmatprep.subr.mxu0 %v5399_v34  ;;  %3367 = vmatprep.subr.mxu1 %v5358_v57 }
 0x640   : > { %v1898_v38 = vpop.f32.mrf.mxu0  ;;  %v1969_v60 = vpop.f32.mrf.mxu1 }
 0x641   : > { %v1899_v42 = vadd.f32 %v1898_v38, %v5400_v36  ;;  %v1970_v18 = vadd.f32 %v1969_v60, %v4500_v22  ;;  %v2343_v60 = vld [vmem:[%s4101_s24 + $0x20] sm:$0xff] }
 0x642   : > { %v1900_v40 = vpop.f32.mrf.mxu0  ;;  %v3331_v44 = vpop.f32.mrf.mxu1 }
 0x643   : > { %v1973_v6 = vadd.f32 %v1899_v42, %v5401_v41  ;;  %v1901_v16 = vadd.f32 %v1900_v40, %v4485_v51  ;;  %v5403_v44 = vld [vmem:[#allocation45_spill] sm:$0xff] }
 0x645   : > { %v2908_v26 = vmul.f32 -1.442695, %v1973_v6  ;;  %v1980_v54 = vadd.f32 %v1901_v16, %v5402_v35 }
 0x647   : > { %3593 = vpow2.f32 %v2908_v26  ;;  %v2909_v32 = vmul.f32 -1.442695, %v1980_v54  ;;  %v2341_v54 = vld [vmem:[%s4101_s24 + $0x10] sm:$0xff] }
 0x649   : > { %3595 = vpow2.f32 %v2909_v32  ;;  %v1998_v32 = vpop.permute.xlu1 %1997 }
 0x64a   : > { %vm1999_vm15 = vcmp.eq.s32.totalorder %v1998_v32, 1  ;;  %v2441_v32 = vld [vmem:[%s5124_s19 + $0x40] sm:$0xff] }
 0x654   : > { %v3594_v31 = vpop.eup %3593 }
 0x655   : > { %v1977_v34 = vadd.f32 1.0, %v3594_v31 }
 0x656   : > { %v3596_v30 = vpop.eup %3595 }
 0x657   : > { %3597 = vrcp.f32 %v1977_v34  ;;  %v1984_v28 = vadd.f32 1.0, %v3596_v30  ;;  %v2344_v30 = vld [vmem:[%s4101_s24 + $0x28] sm:$0xff] }
 0x658   : > { %v2340_v34 = vld [vmem:[%s4101_s24 + $0x8] sm:$0xff] }
 0x659   : > { %3599 = vrcp.f32 %v1984_v28  ;;  %v2345_v28 = vld [vmem:[%s4101_s24 + $0x30] sm:$0xff] }
 0x664   : > { %v3598_v38 = vpop.eup %3597 }
 0x665   : > { %v1987_v36 = vmul.f32 %v3598_v38, %v1970_v18  ;;  %v2346_v18 = vld [vmem:[%s4101_s24 + $0x38] sm:$0xff]  ;;  %v2339_v38 = vld [vmem:[%s4101_s24] sm:$0xff] }
 0x666   : > { %v3600_v41 = vpop.eup %3599 }
 0x667   : > { %v1988_v42 = vadd.f32 %v1987_v36, %v5403_v44  ;;  %v1990_v40 = vsub.f32 1.0, %v3600_v41  ;;  %v1992_v16 = vmul.f32 %v3600_v41, %v4925_v14  ;;  %v2342_v36 = vld [vmem:[%s4101_s24 + $0x18] sm:$0xff]  ;;  %v2446_v41 = vld [vmem:[%s5124_s19 + $0x68] sm:$0xff] }
 0x668   : > { %v2448_v44 = vld [vmem:[%s5124_s19 + $0x78] sm:$0xff] }
 0x669   : > { %3601 = vtanh.f32 %v1988_v42  ;;  %v2447_v42 = vld [vmem:[%s5124_s19 + $0x70] sm:$0xff] }
 0x676   : > { %v3602_v6 = vpop.eup %3601 }
 0x677   : > { %v1991_v26 = vmul.f32 %v3602_v6, %v1990_v40  ;;  %v2445_v40 = vld [vmem:[%s5124_s19 + $0x60] sm:$0xff]  ;;  %v2444_v6 = vld [vmem:[%s5124_s19 + $0x58] sm:$0xff] }
 0x679   : > { %v1993_v35 = vadd.f32 %v1992_v16, %v1991_v26  ;;  %v2443_v26 = vld [vmem:[%s5124_s19 + $0x50] sm:$0xff]  ;;  %v2442_v16 = vld [vmem:[%s5124_s19 + $0x48] sm:$0xff] }
 0x67b   : > { %v5004_v31 = vsel %vm1999_vm15, %v1993_v35, %v4925_v14  ;;  %v2347_v14 = vld [vmem:[%s4101_s24 + $0x40] sm:$0xff]  ;;  %v2440_v35 = vld [vmem:[%s5124_s19 + $0x38] sm:$0xff] }
 0x67c   : > { %2066 = vmatmul.mubr.f32.vlgmr.msra.gmra.mxu0 %v5004_v31  ;;  %3365 = vmatmul.mubr.f32.vlgmr.msra.gmra.mxu1 %v5004_v31 }
 0x67d   : > { %2171 = vmatpush1.msra.mxu0 %v4677_v39  ;;  %3368 = vmatpush3.msra.mxu1 %v4811_v4  ;;  %v5404_v39 = vld [vmem:[#allocation18_spill] sm:$0xff] }
 0x67e   : > { %2172 = vmatprep.subr.mxu0 %v4681_v49  ;;  %3369 = vmatprep.subr.mxu1 %v5358_v57  ;;  %v5405_v49 = vld [vmem:[#allocation17_spill] sm:$0xff] }
 0x67f   : > { %2173 = vmatpush1.msra.mxu0 %v4685_v11  ;;  %3370 = vmatpush3.msra.mxu1 %v4817_v5  ;;  %v5406_v11 = vld [vmem:[#allocation19_spill] sm:$0xff] }
 0x680   : > { %2174 = vmatprep.subr.mxu0 %v4689_v63  ;;  %3371 = vmatprep.subr.mxu1 %v5358_v57  ;;  %v5407_v63 = vld [vmem:[#allocation27_spill] sm:$0xff] }
 0x681   : > { %2175 = vmatpush1.msra.mxu0 %v4693_v47  ;;  %3372 = vmatpush3.msra.mxu1 %v4823_v21  ;;  %v5408_v47 = vld [vmem:[#allocation28_spill] sm:$0xff] }
 0x682   : > { %2176 = vmatprep.subr.mxu0 %v4697_v37  ;;  %3373 = vmatprep.subr.mxu1 %v5358_v57 }
 0x683   : > { %2177 = vmatpush1.msra.mxu0 %v4701_v0  ;;  %3374 = vmatpush3.msra.mxu1 %v4829_v2  ;;  %v2167_v2 = vpop.permute.xlu0 %2166 }
 0x684   : > { %2178 = vmatprep.subr.mxu0 %v4705_v43  ;;  %3375 = vmatprep.subr.mxu1 %v5358_v57  ;;  %v5409_v43 = vld [vmem:[#allocation41_spill] sm:$0xff]  ;;  %vm2168_vm0 = vcmp.eq.s32.totalorder %v2167_v2, 1 }
 0x685   : > { %2179 = vmatpush1.msra.mxu0 %v4709_v1  ;;  %3376 = vmatpush3.msra.mxu1 %v4835_v3  ;;  %v2435_v2 = vld [vmem:[%s5124_s19 + $0x10] sm:$0xff] }
 0x686   : > { %2180 = vmatprep.subr.mxu0 %v4713_v50  ;;  %3377 = vmatprep.subr.mxu1 %v5358_v57 }
 0x687   : > { %2181 = vmatpush1.msra.mxu0 %v4717_v33  ;;  %3378 = vmatpush3.msra.mxu1 %v4841_v45 }
 0x688   : > { %2182 = vmatprep.subr.mxu0 %v4721_v52  ;;  %3379 = vmatprep.subr.mxu1 %v5358_v57  ;;  %v5410_v52 = vld [vmem:[#allocation38_spill] sm:$0xff] }
 0x689   : > { %2183 = vmatpush1.msra.mxu0 %v4725_v7  ;;  %3380 = vmatpush3.msra.mxu1 %v4847_v48 }
 0x68a   : > { %2184 = vmatprep.subr.mxu0 %v4729_v53  ;;  %3381 = vmatprep.subr.mxu1 %v5358_v57 }
 0x68b   : > { %2185 = vmatpush1.msra.mxu0 %v4733_v46  ;;  %3382 = vmatpush3.msra.mxu1 %v4853_v8 }
 0x68c   : > { %2186 = vmatprep.subr.mxu0 %v4737_v55  ;;  %3383 = vmatprep.subr.mxu1 %v5358_v57  ;;  %v5411_v55 = vld [vmem:[#allocation39_spill] sm:$0xff] }
 0x68d   : > { %2187 = vmatpush1.msra.mxu0 %v4741_v15  ;;  %3384 = vmatpush3.msra.mxu1 %v4859_v9  ;;  %v2354_v9 = vld [vmem:[%s4101_s24 + $0x78] sm:$0xff] }
 0x68e   : > { %2188 = vmatprep.subr.mxu0 %v4745_v56  ;;  %3385 = vmatprep.subr.mxu1 %v5358_v57 }
 0x68f   : > { %2189 = vmatpush1.msra.mxu0 %v4749_v17  ;;  %3386 = vmatpush3.msra.mxu1 %v4865_v10  ;;  %v2353_v10 = vld [vmem:[%s4101_s24 + $0x70] sm:$0xff] }
 0x690   : > { %2190 = vmatprep.subr.mxu0 %v4753_v58  ;;  %3387 = vmatprep.subr.mxu1 %v5358_v57 }
 0x691   : > { %2191 = vmatpush1.msra.mxu0 %v4757_v19  ;;  %3388 = vmatpush3.msra.mxu1 %v4871_v12  ;;  %v2352_v12 = vld [vmem:[%s4101_s24 + $0x68] sm:$0xff] }
 0x692   : > { %2192 = vmatprep.subr.mxu0 %v4761_v59  ;;  %3389 = vmatprep.subr.mxu1 %v5358_v57 }
 0x693   : > { %2193 = vmatpush1.msra.mxu0 %v4765_v20  ;;  %3390 = vmatpush3.msra.mxu1 %v4877_v25  ;;  %v2351_v25 = vld [vmem:[%s4101_s24 + $0x60] sm:$0xff] }
 0x694   : > { %2194 = vmatprep.subr.mxu0 %v4769_v61  ;;  %3391 = vmatprep.subr.mxu1 %v5358_v57 }
 0x695   : > { %2195 = vmatpush1.msra.mxu0 %v4773_v23  ;;  %3392 = vmatpush3.msra.mxu1 %v4883_v13  ;;  %v2350_v13 = vld [vmem:[%s4101_s24 + $0x58] sm:$0xff] }
 0x696   : > { %2196 = vmatprep.subr.mxu0 %v4777_v62  ;;  %3393 = vmatprep.subr.mxu1 %v5358_v57  ;;  %v5412_v62 = vld [vmem:[#allocation48_spill] sm:$0xff] }
 0x697   : > { %2197 = vmatpush1.msra.mxu0 %v4781_v24  ;;  %3394 = vmatpush3.msra.mxu1 %v4889_v27  ;;  %v2349_v27 = vld [vmem:[%s4101_s24 + $0x50] sm:$0xff] }
 0x698   : > { %2198 = vmatprep.subr.mxu0 %v4892_v29  ;;  %3395 = vmatprep.subr.mxu1 %v5358_v57  ;;  %v2348_v29 = vld [vmem:[%s4101_s24 + $0x48] sm:$0xff] }
 0x699   : > { %2199 = vmatpush1.msra.mxu0 %v5404_v39  ;;  %3396 = vmatpush3.msra.mxu1 %v5405_v49  ;;  %v2438_v39 = vld [vmem:[%s5124_s19 + $0x28] sm:$0xff]  ;;  %v2437_v49 = vld [vmem:[%s5124_s19 + $0x20] sm:$0xff] }
 0x69a   : > { %2200 = vmatprep.subr.mxu0 %v5406_v11  ;;  %3397 = vmatprep.subr.mxu1 %v5358_v57  ;;  %v2436_v11 = vld [vmem:[%s5124_s19 + $0x18] sm:$0xff] }
 0x69b   : > { %2201 = vmatpush1.msra.mxu0 %v5407_v63  ;;  %2234 = vmatprep.mubr.f32.mxu0 %v5358_v57 }
 0x69c   : > { %3398 = vmatpush3.msra.mxu1 %v5408_v47  ;;  %3399 = vmatprep.mubr.msk.f32.mxu1 %vm3840_vm5, %v5358_v57 }
 0x69d   : > { %3402 = vmatprep.subr.mxu0 %v5358_v57  ;;  %3437 = vmatprep.subr.mxu1 %v5358_v57 }
 0x73c   : > { %v2067_v37 = vpop.f32.mrf.mxu0  ;;  %v2138_v0 = vpop.f32.mrf.mxu1 }
 0x73d   : > { %v2068_v1 = vadd.f32 %v2067_v37, %v5409_v43  ;;  %v2139_v20 = vadd.f32 %v2138_v0, %v4500_v22 }
 0x73e   : > { %v2069_v50 = vpop.f32.mrf.mxu0  ;;  %v3366_v33 = vpop.f32.mrf.mxu1 }
 0x73f   : > { %v2142_v7 = vadd.f32 %v2068_v1, %v5410_v52  ;;  %v2070_v46 = vadd.f32 %v2069_v50, %v4485_v51  ;;  %v5414_v50 = vld [vmem:[#allocation40_spill] sm:$0xff] }
 0x741   : > { %v2910_v53 = vmul.f32 -1.442695, %v2142_v7  ;;  %v2149_v15 = vadd.f32 %v2070_v46, %v5411_v55 }
 0x743   : > { %3603 = vpow2.f32 %v2910_v53  ;;  %v2911_v56 = vmul.f32 -1.442695, %v2149_v15  ;;  %v5415_v53 = vld [vmem:[#allocation42_spill] sm:$0xff] }
 0x745   : > { %3605 = vpow2.f32 %v2911_v56 }
 0x750   : > { %v3604_v17 = vpop.eup %3603 }
 0x751   : > { %v2146_v58 = vadd.f32 1.0, %v3604_v17 }
 0x752   : > { %v3606_v19 = vpop.eup %3605 }
 0x753   : > { %3607 = vrcp.f32 %v2146_v58  ;;  %v2153_v59 = vadd.f32 1.0, %v3606_v19 }
 0x755   : > { %3609 = vrcp.f32 %v2153_v59 }
 0x760   : > { %v3608_v61 = vpop.eup %3607 }
 0x761   : > { %v2156_v23 = vmul.f32 %v3608_v61, %v2139_v20  ;;  %v5416_v20 = vld [vmem:[#allocation47_spill] sm:$0xff] }
 0x762   : > { %v3610_v4 = vpop.eup %3609 }
 0x763   : > { %v2157_v24 = vadd.f32 %v2156_v23, %v5412_v62  ;;  %v2159_v5 = vsub.f32 1.0, %v3610_v4  ;;  %v2161_v45 = vmul.f32 %v3610_v4, %v5004_v31 }
 0x765   : > { %3611 = vtanh.f32 %v2157_v24 }
 0x772   : > { %v3612_v21 = vpop.eup %3611 }
 0x773   : > { %v2160_v3 = vmul.f32 %v3612_v21, %v2159_v5  ;;  %v2336_v5 = vpop.permute.xlu1 %2335 }
 0x774   : > { %vm2337_vm1 = vcmp.eq.s32.totalorder %v2336_v5, 1 }
 0x775   : > { %v2162_v48 = vadd.f32 %v2161_v45, %v2160_v3  ;;  %v2434_v3 = vld [vmem:[%s5124_s19 + $0x8] sm:$0xff]  ;;  %v2433_v45 = vld [vmem:[%s5124_s19] sm:$0xff] }
 0x777   : > { %v5083_v8 = vsel %vm2168_vm0, %v2162_v48, %v5004_v31  ;;  %v2439_v31 = vld [vmem:[%s5124_s19 + $0x30] sm:$0xff]  ;;  %v2914_v48 = vld [vmem:[%s633_s28] ss:$0 sm:$0xff] }
 0x778   : > { %2235 = vmatmul.mubr.f32.vlgmr.msra.gmra.mxu0 %v5083_v8  ;;  %3400 = vmatmul.mubr.f32.vlgmr.msra.gmra.mxu1 %v5083_v8 }
 0x779   : > { %3434 = vmatprep.mubr.msk.f32.mxu0 %vm3840_vm5, %v5358_v57  ;;  %3469 = vmatprep.mubr.msk.f32.mxu1 %vm3840_vm5, %v5358_v57 }
 0x77a   : > { %3403 = vmatpush3.msra.mxu0 %v2354_v9  ;;  %3438 = vmatpush3.msra.mxu1 %v2448_v44 }
 0x77b   : > { %3404 = vmatprep.subr.mxu0 %v5358_v57  ;;  %3439 = vmatprep.subr.mxu1 %v5358_v57 }
 0x77c   : > { %3405 = vmatpush3.msra.mxu0 %v2353_v10  ;;  %3440 = vmatpush3.msra.mxu1 %v2447_v42 }
 0x77d   : > { %3406 = vmatprep.subr.mxu0 %v5358_v57  ;;  %3441 = vmatprep.subr.mxu1 %v5358_v57 }
 0x77e   : > { %3407 = vmatpush3.msra.mxu0 %v2352_v12  ;;  %3442 = vmatpush3.msra.mxu1 %v2446_v41 }
 0x77f   : > { %3408 = vmatprep.subr.mxu0 %v5358_v57  ;;  %3443 = vmatprep.subr.mxu1 %v5358_v57 }
 0x780   : > { %3409 = vmatpush3.msra.mxu0 %v2351_v25  ;;  %3444 = vmatpush3.msra.mxu1 %v2445_v40  ;;  %v2915_v25 = vld [vmem:[%s636_s21] ss:$0 sm:$0xff]  ;;  %s640_s21 = scalar_lea.vmem %s5419_s22, %s4237_s20 }
 0x781   : > { %3410 = vmatprep.subr.mxu0 %v5358_v57  ;;  %3445 = vmatprep.subr.mxu1 %v5358_v57 }
 0x782   : > { %3411 = vmatpush3.msra.mxu0 %v2350_v13  ;;  %3446 = vmatpush3.msra.mxu1 %v2444_v6 }
 0x783   : > { %3412 = vmatprep.subr.mxu0 %v5358_v57  ;;  %3447 = vmatprep.subr.mxu1 %v5358_v57 }
 0x784   : > { %3413 = vmatpush3.msra.mxu0 %v2349_v27  ;;  %3448 = vmatpush3.msra.mxu1 %v2443_v26 }
 0x785   : > { %3414 = vmatprep.subr.mxu0 %v5358_v57  ;;  %3449 = vmatprep.subr.mxu1 %v5358_v57 }
 0x786   : > { %3415 = vmatpush3.msra.mxu0 %v2348_v29  ;;  %3450 = vmatpush3.msra.mxu1 %v2442_v16 }
 0x787   : > { %3416 = vmatprep.subr.mxu0 %v5358_v57  ;;  %3451 = vmatprep.subr.mxu1 %v5358_v57 }
 0x788   : > { %3417 = vmatpush3.msra.mxu0 %v2347_v14  ;;  %3452 = vmatpush3.msra.mxu1 %v2441_v32  ;;  %v5417_v14 = vlaneseq }
 0x789   : > { %3418 = vmatprep.subr.mxu0 %v5358_v57  ;;  %3453 = vmatprep.subr.mxu1 %v5358_v57 }
 0x78a   : > { %3419 = vmatpush3.msra.mxu0 %v2346_v18  ;;  %3454 = vmatpush3.msra.mxu1 %v2440_v35  ;;  %v2528_v18 = vand.u32 127, %v5417_v14 }
 0x78b   : > { %3420 = vmatprep.subr.mxu0 %v5358_v57  ;;  %3455 = vmatprep.subr.mxu1 %v5358_v57 }
 0x78c   : > { %3421 = vmatpush3.msra.mxu0 %v2345_v28  ;;  %3456 = vmatpush3.msra.mxu1 %v2439_v31 }
 0x78d   : > { %3422 = vmatprep.subr.mxu0 %v5358_v57  ;;  %3457 = vmatprep.subr.mxu1 %v5358_v57 }
 0x78e   : > { %3423 = vmatpush3.msra.mxu0 %v2344_v30  ;;  %3458 = vmatpush3.msra.mxu1 %v2438_v39  ;;  %v5418_v39 = vld [vmem:[#allocation26_spill] sm:$0xff] }
 0x78f   : > { %3424 = vmatprep.subr.mxu0 %v5358_v57  ;;  %3459 = vmatprep.subr.mxu1 %v5358_v57  ;;  %vm2551_vm6 = vcmp.lt.s32.totalorder %v5418_v39, 2 }
 0x790   : > { %3425 = vmatpush3.msra.mxu0 %v2343_v60  ;;  %3460 = vmatpush3.msra.mxu1 %v2437_v49 }
 0x791   : > { %3426 = vmatprep.subr.mxu0 %v5358_v57  ;;  %3461 = vmatprep.subr.mxu1 %v5358_v57 }
 0x792   : > { %3427 = vmatpush3.msra.mxu0 %v2342_v36  ;;  %3462 = vmatpush3.msra.mxu1 %v2436_v11  ;;  %v2916_v11 = vsel %vm2551_vm6, 1.0, %v5358_v57 }
 0x793   : > { %3428 = vmatprep.subr.mxu0 %v5358_v57  ;;  %3463 = vmatprep.subr.mxu1 %v5358_v57 }
 0x794   : > { %3429 = vmatpush3.msra.mxu0 %v2341_v54  ;;  %3464 = vmatpush3.msra.mxu1 %v2435_v2 }
 0x795   : > { %3430 = vmatprep.subr.mxu0 %v5358_v57  ;;  %3465 = vmatprep.subr.mxu1 %v5358_v57 }
 0x796   : > { %3431 = vmatpush3.msra.mxu0 %v2340_v34  ;;  %3466 = vmatpush3.msra.mxu1 %v2434_v3 }
 0x797   : > { %3432 = vmatprep.subr.mxu0 %v5358_v57  ;;  %3467 = vmatprep.subr.mxu1 %v5358_v57 }
 0x798   : > { %3433 = vmatpush3.msra.mxu0 %v2339_v38  ;;  %3468 = vmatpush3.msra.mxu1 %v2433_v45  ;;  %v2557_v38 = vpop.permute.xlu1 %2556 }
 0x799   : > { %vm2558_vm3 = vcmp.eq.s32.totalorder %v2528_v18, %v2557_v38 }
 0x79a   : > { %v2917_v42 = vsel %vm2558_vm3, 1.0, %v5358_v57 }
 0x838   : > { %v2236_v63 = vpop.f32.mrf.mxu0  ;;  %v2307_v47 = vpop.f32.mrf.mxu1 }
 0x839   : > { %v2237_v37 = vadd.f32 %v2236_v63, %v5409_v43  ;;  %v2308_v19 = vadd.f32 %v2307_v47, %v4500_v22 }
 0x83a   : > { %v2238_v0 = vpop.f32.mrf.mxu0  ;;  %v3401_v1 = vpop.f32.mrf.mxu1 }
 0x83b   : > { %v2311_v33 = vadd.f32 %v2237_v37, %v5414_v50  ;;  %v2239_v7 = vadd.f32 %v2238_v0, %v4485_v51 }
 0x83d   : > { %v2912_v52 = vmul.f32 -1.442695, %v2311_v33  ;;  %v2318_v46 = vadd.f32 %v2239_v7, %v5415_v53 }
 0x83f   : > { %3613 = vpow2.f32 %v2912_v52  ;;  %v2913_v55 = vmul.f32 -1.442695, %v2318_v46 }
 0x841   : > { %3615 = vpow2.f32 %v2913_v55 }
 0x84c   : > { %v3614_v15 = vpop.eup %3613 }
 0x84d   : > { %v2315_v56 = vadd.f32 1.0, %v3614_v15 }
 0x84e   : > { %v3616_v17 = vpop.eup %3615 }
 0x84f   : > { %3617 = vrcp.f32 %v2315_v56  ;;  %v2322_v58 = vadd.f32 1.0, %v3616_v17 }
 0x851   : > { %3619 = vrcp.f32 %v2322_v58 }
 0x85c   : > { %v3618_v43 = vpop.eup %3617 }
 0x85d   : > { %v2325_v59 = vmul.f32 %v3618_v43, %v2308_v19 }
 0x85e   : > { %v3620_v51 = vpop.eup %3619 }
 0x85f   : > { %v2326_v61 = vadd.f32 %v2325_v59, %v5416_v20  ;;  %v2328_v23 = vsub.f32 1.0, %v3620_v51  ;;  %v2330_v4 = vmul.f32 %v3620_v51, %v5083_v8 }
 0x861   : > { %3621 = vtanh.f32 %v2326_v61 }
 0x86e   : > { %v3622_v62 = vpop.eup %3621 }
 0x86f   : > { %v2329_v24 = vmul.f32 %v3622_v62, %v2328_v23 }
 0x871   : > { %v2331_v21 = vadd.f32 %v2330_v4, %v2329_v24 }
 0x873   : > { %v2338_v22 = vsel %vm2337_vm1, %v2331_v21, %v5083_v8 }
 0x874   : > { %3435 = vmatmul.mubr.f32.vlgmr.msra.gmra.mxu0 %v2338_v22 }
 0x934   : > { %v2428_v9 = vpop.f32.mrf.mxu0 }
 0x935   : > { %v2429_v8 = vadd.f32 %v2914_v48, %v2428_v9 }
 0x936   : > { %v3436_v10 = vpop.f32.mrf.mxu0 }
 0x937   : > { %v2432_v12 = vmax.f32 %v2429_v8, 0.0 }
 0x939   : > { %3470 = vmatmul.mubr.f32.vlgmr.msra.gmra.mxu1 %v2432_v12 }
 0x9f9   : > { %v2522_v13 = vpop.f32.mrf.mxu1 }
 0x9fa   : > { %v2523_v27 = vadd.f32 %v2915_v25, %v2522_v13 }
 0x9fb   : > { %v3471_v29 = vpop.f32.mrf.mxu1 }
 0x9fc   : > { %2526 = vst [vmem:[%s5174_s11] sm:$0xff] %v2523_v27  ;;  %2529 = vmax.xlane.f32.xlu0 %v2523_v27  ;;  %v2569_v41 = vmul.f32 %v2917_v42, %v2523_v27 }
 0xa85   : > { %v2530_v28 = vpop.xlane.xlu0 %2529 }
 0xa86   : > { %vm2531_vm2 = vcmp.eq.f32.partialorder %v2523_v27, %v2530_v28  ;;  %v2561_v30 = vsub.f32 %v2523_v27, %v2530_v28 }
 0xa87   : > { %v2532_v60 = vsel %vm2531_vm2, %v2528_v18, 128 }
 0xa88   : > { %v2562_v36 = vmul.f32 1.442695, %v2561_v30  ;;  %v2534_v54 = vshra.s32 %v2532_v60, 16  ;;  %v2533_v40 = vand.u32 65535, %v2532_v60 }
 0xa8a   : > { %3623 = vpow2.f32 %v2562_v36  ;;  %v2536_v34 = vcvt.s32.f32 %v2534_v54  ;;  %v2535_v26 = vcvt.s32.f32 %v2533_v40 }
 0xa8c   : > { %2537 = vmin.xlane.f32.xlu1 %v2536_v34 }
 0xa97   : > { %v3624_v44 = vpop.eup %3623 }
 0xa98   : > { %2564 = vadd.xlane.f32.xlu0 %v3624_v44 }
 0xa9c   : > { %2570 = vadd.xlane.f32.xlu0 %v2569_v41 }
 0xb15   : > { %v2538_v6 = vpop.xlane.xlu1 %2537 }
 0xb16   : > { %vm2539_vm5 = vcmp.eq.f32.partialorder %v2536_v34, %v2538_v6  ;;  %v2544_v46 = vcvt.f32.s32 %v2538_v6 }
 0xb17   : > { %v2540_v16 = vsel %vm2539_vm5, %v2535_v26, inf }
 0xb18   : > { %2541 = vmin.xlane.f32.xlu0 %v2540_v16  ;;  %v2545_v57 = vshll.u32 %v2544_v46, 16 }
 0xb21   : > { %v2565_v32 = vpop.xlane.xlu0 %2564 }
 0xb22   : > { %3625 = vlog2.f32 %v2565_v32 }
 0xb25   : > { %v2571_v63 = vpop.xlane.xlu0 %2570 }
 0xb2f   : > { %v3626_v35 = vpop.eup %3625 }
 0xb30   : > { %v2567_v31 = vmul.f32 0.6931472, %v3626_v35 }
 0xb32   : > { %v2568_v49 = vadd.f32 %v2567_v31, %v2530_v28 }
 0xb34   : > { %v2572_v47 = vsub.f32 %v2568_v49, %v2571_v63 }
 0xb36   : > { %v2573_v37 = vmul.f32 %v2916_v11, %v2572_v47 }
 0xb38   : > { %v2574_v0 = vrot.slane %v2573_v37, 4 }
 0xb3a   : > { %v2575_v1 = vadd.f32 %v2574_v0, %v2573_v37 }
 0xb3c   : > { %v2576_v50 = vrot.slane %v2575_v1, 2 }
 0xb3e   : > { %v2577_v33 = vadd.f32 %v2576_v50, %v2575_v1 }
 0xb40   : > { %v2578_v52 = vrot.slane %v2577_v33, 1 }
 0xb42   : > { %v2579_v7 = vadd.f32 %v2578_v52, %v2577_v33 }
 0xb44   : > { %v2580_v53 = vmul.f32 0.5, %v2579_v7 }
 0xb46   : > { %2582 = vst.msk [vmem:[%s643_s18] sm:$0x1] %vm2581_vm4, %v2580_v53 }
 0xba1   : > { %v2542_v55 = vpop.xlane.xlu0 %2541 }
 0xba2   : > { %v2543_v15 = vcvt.f32.s32 %v2542_v55  ;;  %2587 = sbr.rel (%p5420_p10) target bundleno = 3180 (0xc6c), region = 80 }
 0xba4   : > { %v2546_v56 = vadd.s32 %v2545_v57, %v2543_v15 }
 0xba6   : > { %2548 = vst.msk [vmem:[%s640_s21] sm:$0xff] %vm2547_vm7, %v2546_v56 }
 0xba7   : > { %3675 = vrcp.f32 %v2565_v32 }
 0xbb4   : > { %v3676_v17 = vpop.eup %3675 }
 0xbb5   : > { %v2589_v58 = vmul.f32 %v3676_v17, %v3624_v44 }
 0xbb7   : > { %v2590_v19 = vadd.f32 1e-10, %v2589_v58 }
 0xbb9   : > { %3677 = vlog2.f32 %v2590_v19 }
 0xbc6   : > { %v3678_v43 = vpop.eup %3677 }
 0xbc7   : > { %v2592_v59 = vmul.f32 0.6931472, %v3678_v43 }
 0xbc9   : > { %v2593_v20 = vmul.f32 %v2592_v59, %v2589_v58 }
 0xbcb   : > { %2594 = vadd.xlane.f32.xlu0 %v2593_v20 }
 0xc54   : > { %v2595_v61 = vpop.xlane.xlu0 %2594 }
 0xc55   : > { %v2596_v51 = vsub.f32 0.0, %v2595_v61 }
 0xc57   : > { %v2598_v23 = vmul.f32 0.43429446, %v2596_v51 }
 0xc59   : > { %v2599_v62 = vmul.f32 %v2916_v11, %v2598_v23 }
 0xc5b   : > { %v2600_v24 = vmul.f32 %v2599_v62, %v2596_v51 }
 0xc5d   : > { %v2601_v4 = vrot.slane %v2600_v24, 4 }
 0xc5f   : > { %v2602_v5 = vadd.f32 %v2601_v4, %v2600_v24 }
 0xc61   : > { %v2603_v21 = vrot.slane %v2602_v5, 2 }
 0xc63   : > { %v2604_v22 = vadd.f32 %v2603_v21, %v2602_v5 }
 0xc65   : > { %v2605_v2 = vrot.slane %v2604_v22, 1 }
 0xc67   : > { %v2606_v3 = vadd.f32 %v2605_v2, %v2604_v22 }
 0xc69   : > { %v2607_v45 = vmul.f32 0.5, %v2606_v3 }
 0xc6b   : > { %2608 = vst.msk [vmem:[%s5183_s16] sm:$0x1] %vm2581_vm4, %v2607_v45 }
 0xc6c PF: > { %s2920_s12 = sshll.u32 %s4012_s7, 7  ;;  %s5421_s25 = sld [smem:[#allocation50_spill]] }
 0xc6d   : > { %s2633_s19 = sshll.u32 %s5174_s11, 4  ;;  %s2610_s24 = scalar_lea.sflag [#allocation4], %s4096_s26  ;;  %s2634_s19 = int_to_ptr.vmem [resolvable:$true] %s2633_s19 }
 0xc6e   : > { %s3761_s18 = scalar_lea.vmem %s2634_s19, 128  ;;  %p5422_p1 = scmp.ne.s32.totalorder %s5315_s23, 0 }
 0xc6f   : > { %p3762_p4 = scmp.ne.s32.totalorder %s2634_s19, %s3761_s18  ;;  %s3841_s28 = smov [#allocation8]  }
 0xc70   : > { %s3765_s16 = sshll.u32 %s3841_s28, 4  ;;  %s3766_s16 = int_to_ptr.vmem [resolvable:$false] %s3765_s16 }
 0xc71   : > { %p3763_p5 = pnand %p3762_p4, %p5422_p1  ;;  %s3767_s27 = scalar_lea.vmem %s3766_s16, 256 }
 0xc72   : > { %s2631_s15 = scalar_lea.hbm %s5421_s25, %s2920_s12  ;;  %p3768_p0 = scmp.lt.s32.totalorder %s2634_s19, %s3766_s16 }
 0xc73   : > { %p3764_p9 = pneg %p3763_p5  ;;  %p3769_p13 = scmp.lt.s32.totalorder %s3767_s27, %s3761_s18 }
 0xc75   : > { %p3770_p7 = por %p3769_p13, %p3768_p0 }
 0xc77   : > { %p3771_p3 = pnand %p3770_p7, %p3764_p9 }
 0xc79   : > { %3774 = shalt.err (!%p3771_p3)
}
 0xc7a   : > { %s3775_s7 = scalar_lea.hbm %s2631_s15, 128  ;;  %s3779_s22 = scalar_lea.hbm %s5421_s25, 256 }
 0xc7b   : > { %p3776_p12 = scmp.ne.s32.totalorder %s2631_s15, %s3775_s7  ;;  %p3780_p11 = scmp.lt.s32.totalorder %s2631_s15, %s5421_s25 }
 0xc7c   : > { %p3781_p8 = scmp.lt.s32.totalorder %s3779_s22, %s3775_s7 }
 0xc7d   : > { %p3777_p6 = pnand %p3776_p12, %p5422_p1 }
 0xc7e   : > { %p3782_p10 = por %p3781_p8, %p3780_p11 }
 0xc7f   : > { %p3778_p2 = pneg %p3777_p6 }
 0xc81   : > { %p3783_p4 = pnand %p3782_p10, %p3778_p2 }
 0xc83   : > { %3786 = shalt.err (!%p3783_p4)
}
 0xc84   : > { %3480 = dma.vmem_to_hbm [thread:$0]  (%p5422_p1), %s2634_s19, 128, %s2631_s15, %s2610_s24  }
 0xc85 PF: > { %s5423_s20 = sld [smem:[#allocation16_spill]]  ;;  %s2654_s18 = sand.u32 1, %s3817_s29  }
 0xc86   : > { %s5424_s17 = sld [smem:[#allocation13_spill]]  ;;  %s2655_s28 = scalar_lea.sflag [#allocation4], %s2654_s18 }
 0xc8b   : > { %p5425_p5 = scmp.ne.s32.totalorder %s5423_s20, 0 }
 0xc8c   : > { %p5426_p9 = scmp.ge.s32.totalorder %s5424_s17, 2 }
 0xc8e   : > { %p3494_p0 = pnand %p5426_p9, %p5425_p5 }
 0xc90   : > { %p3495_p13 = pneg %p3494_p0 }
 0xc92   : > { %3812 = dma.done.wait (%p3495_p13), %s2655_s28, 128  }
 0xc93   : > { %3814 = vsyncadd (%p3495_p13), %s2655_s28, 4294967168  ;;  %s5427_s16 = sld [smem:[#allocation14_spill]]  ;;  %s5430_s29 = smov %s3821_s30 }
 0xc94   : > { %s5428_s27 = sld [smem:[#allocation12_spill]] }
 0xc95   : > { %s5429_s15 = sld [smem:[#allocation15_spill]] }
 0xc99   : > { %p29_p7 = scmp.ge.s32.totalorder %s5427_s16, 4  }
 0xc9a   : > { %s5431_s30 = smov %s5428_s27 }
 0xc9b   :  { %31 = sbr.rel (!%p29_p7) target bundleno = 10 (0xa), region = 180 }
 0xca0   :  { %2679 = vsyncpa [#allocation3], 1 }
 0xca1   :  { %2681 = vsyncpa [#allocation3 + $0x1], 1 }
 0xca2   :  { %2682 = vsyncpa [#allocation6], 1 }
 0xca3   :  { %2684 = vsyncpa [#allocation6 + $0x1], 1 }
 0xca4   :  { %2685 = vsyncpa [#allocation4], 1 }
 0xca5   :  { %2687 = vsyncpa [#allocation4 + $0x1], 1 }

</bundles_post_ra>
